<compile_context>
chip_gen: v7x
topology: tpu7x:2x2x1
jax: 0.10.0
libtpu: 0.0.40
codegen_flags: <defaults>
</compile_context>

<pallas_src>
import functools

import jax
import jax.numpy as jnp
from jax import lax
from jax.experimental import pallas as pl
from jax.experimental.pallas import tpu as pltpu

GROUPS = 4                    # GroupNorm(4, planes)
GN_EPS = 1e-5                 # PyTorch GroupNorm default eps
MATMUL_DTYPE = jnp.bfloat16   # MXU-native; accumulation stays f32


# ---------------------------------------------------------------------------
# Parameter preparation (runs once, outside the per-step path).
# ---------------------------------------------------------------------------
def _banded_weights(wgt, H, W, dtype):
    """wgt: (3,3,3,Ci,Co) [kd,kh,kw,ci,co] (DHWIO) -> (3*Ci*H*W, Co*H*W).

    Row (kd, ci, h', w'), col (co, h, w) holds wgt[kd, h'-h+1, w'-w+1, ci, co]
    when both offsets lie in [0,3), else 0: the H/W zero padding of the
    3x3x3 / stride-1 / pad-1 conv is folded into the matrix, and the three
    depth taps are stacked along K so the whole conv is ONE matmul.
    """
    k = jnp.arange(3)
    h = jnp.arange(H)
    w = jnp.arange(W)
    Eh = (h[None, :, None] == (h[None, None, :] + k[:, None, None] - 1)).astype(wgt.dtype)
    Ew = (w[None, :, None] == (w[None, None, :] + k[:, None, None] - 1)).astype(wgt.dtype)
    Ci, Co = wgt.shape[3], wgt.shape[4]
    # M[kd, ci, h', w', co, h, w]   (built in f32, cast once at the end)
    M = jnp.einsum('ipx,jqy,dijco->dcpqoxy', Eh, Ew, wgt)
    return M.reshape(3 * Ci * H * W, Co * H * W).astype(dtype)


def _vmem_budget_bytes():
    phys = 64 * 1024 * 1024                       # conservative default (v7x/TC)
    try:
        info = pltpu.get_tpu_info()
        phys = int(getattr(info, "vmem_capacity_bytes", phys))
    except Exception:
        pass
    return (phys * 3) // 4                        # leave compiler headroom


def prepare_convd(params, spatial, first=False):
    """Build kernel-side operands (banded conv matrices, GN lane vectors)."""
    D0, H0, W0 = spatial
    H, W = (H0, W0) if first else (H0 // 2, W0 // 2)
    HW = H * W
    Cout = params["g1"].shape[0]
    assert Cout % GROUPS == 0

    M1 = _banded_weights(params["w1"], H, W, MATMUL_DTYPE)   # (3*Cin*HW,  Cout*HW)
    M3 = _banded_weights(params["w3"], H, W, MATMUL_DTYPE)   # (3*Cout*HW, Cout*HW)

    weight_bytes = (M1.size + M3.size) * M1.dtype.itemsize
    # Guard: banded-weight footprint scales as (C*H*W)^2; double-buffered it
    # must fit VMEM.  TODO(synk): H/W-tiled roll-based conv for levels where it doesn't.
    if 2 * weight_bytes > _vmem_budget_bytes():
        raise NotImplementedError(
            "banded conv weights do not fit VMEM at this (C, H, W); "
            "an H/W-tiled conv variant is required for this level")

    def vec(p):   # per-channel param -> per-lane vector (lanes ordered (c, h, w))
        return jnp.repeat(p.astype(jnp.float32), HW).reshape(1, -1)

    return {"M1": M1, "M3": M3,
            "g1": vec(params["g1"]), "b1": vec(params["b1"]),
            "g3": vec(params["g3"]), "b3": vec(params["b3"])}


# ---------------------------------------------------------------------------
# Fused kernel: conv1 -> GN1 -> conv3 -> GN3 -> +residual -> ReLU
# (MaxPool3d(2,2) is reduced in XLA before the kernel; see wrapper.)
# ---------------------------------------------------------------------------
def _make_convd_kernel(Nb, D, Lout, GW, matmul_dtype):
    inv_cnt = 1.0 / float(D * GW)

    def conv3x3x3(x, m_ref):
        # x: (Nb, D, L) f32, lanes ordered (c, h, w); m_ref: (3*L, Lout).
        # H/W padding is folded into m_ref; only D is zero-padded here
        # (per sample, so taps never leak across the Nb boundary).
        L = x.shape[-1]
        xm = x.astype(matmul_dtype)
        z = jnp.zeros((Nb, 1, L), matmul_dtype)
        slab = jnp.concatenate([z, xm, z], axis=1)                 # (Nb, D+2, L)
        lhs = jnp.concatenate(
            [slab[:, 0:D, :], slab[:, 1:D + 1, :], slab[:, 2:D + 2, :]],
            axis=-1).reshape(Nb * D, 3 * L)                        # (Nb*D, 3L)
        y = jnp.dot(lhs, m_ref[...], preferred_element_type=jnp.float32)
        return y.reshape(Nb, D, m_ref.shape[-1])                   # f32

    def gn_scale_shift(y, g_ref, b_ref):
        # Per-(sample, group) stats -> per-sample (scale, shift) lane vectors
        # such that GroupNorm(y) == y * scale + shift (one fused VPU sweep).
        mus, rss = [], []
        for g in range(GROUPS):
            blk = y[:, :, g * GW:(g + 1) * GW]                     # (Nb, D, GW)
            s = jnp.sum(blk, axis=2, keepdims=True)
            s = jnp.sum(s, axis=1, keepdims=True)                  # (Nb, 1, 1)
            ss = jnp.sum(blk * blk, axis=2, keepdims=True)
            ss = jnp.sum(ss, axis=1, keepdims=True)
            mu = s * inv_cnt
            var = jnp.maximum(ss * inv_cnt - mu * mu, 0.0)
            rstd = lax.rsqrt(var + GN_EPS)
            mus.append(jnp.broadcast_to(mu, (Nb, 1, GW)))
            rss.append(jnp.broadcast_to(rstd, (Nb, 1, GW)))
        mu_v = jnp.concatenate(mus, axis=-1) if GROUPS > 1 else mus[0]
        rs_v = jnp.concatenate(rss, axis=-1) if GROUPS > 1 else rss[0]
        gamma = g_ref[...][None]                                   # (1, 1, Lout)
        beta = b_ref[...][None]
        scale = rs_v * gamma
        shift = beta - mu_v * scale
        return scale, shift

    def kernel(xp_ref, m1_ref, m3_ref, g1_ref, b1_ref, g3_ref, b3_ref, out_ref):
        x = xp_ref[...].astype(jnp.float32)                        # (Nb, D, Lin)

        # x1 = bn1(conv1(x))
        y1 = conv3x3x3(x, m1_ref)
        s1, t1 = gn_scale_shift(y1, g1_ref, b1_ref)
        x1 = y1 * s1 + t1

        # y = bn3(conv3(x1)); out = relu(x1 + y)
        # (the conv2/bn2/relu branch of the PyTorch forward is dead code:
        #  its result is always overwritten by the conv3 branch, so it is
        #  omitted — dropout=0.0 as well.)
        y3 = conv3x3x3(x1, m3_ref)
        s3, t3 = gn_scale_shift(y3, g3_ref, b3_ref)
        out_ref[...] = jnp.maximum(x1 + (y3 * s3 + t3), 0.0).astype(out_ref.dtype)

    return kernel


# ---------------------------------------------------------------------------
# ConvD forward (dropout=0.0, norm='gn')
# ---------------------------------------------------------------------------
def _pick_nb(N, D, per_sample_bytes, fixed_bytes, budget, target_rows=256):
    nb = 1
    for cand in range(1, N + 1):
        if N % cand:
            continue
        if fixed_bytes + cand * per_sample_bytes > budget:
            break
        nb = cand
        if cand * D >= target_rows:       # MXU M-dim is fat enough; stop growing
            break
    return nb


@functools.partial(jax.jit, static_argnames=("first",))
def convd_forward(x_ncdhw, prepared, first=False):
    N, Cin, D0, H0, W0 = x_ncdhw.shape
    if first:
        D, H, W = D0, H0, W0
        xp = x_ncdhw
    else:
        # MaxPool3d(2, 2): reduce in XLA over the raw NCDHW tensor, so only the
        # 8x-smaller pooled tensor needs a layout change before the kernel.
        D, H, W = D0 // 2, H0 // 2, W0 // 2
        xp = x_ncdhw[:, :, :2 * D, :2 * H, :2 * W].reshape(
            N, Cin, D, 2, H, 2, W, 2).max(axis=(3, 5, 7))
    HW = H * W
    Lin = Cin * HW
    Lout = prepared["M1"].shape[1]
    Cout = Lout // HW
    GW = (Cout // GROUPS) * HW
    assert prepared["M1"].shape[0] == 3 * Lin
    assert prepared["M3"].shape == (3 * Lout, Lout)

    # channels-major lanes: (N, D, (c, h, w))
    x_slab = xp.transpose(0, 2, 1, 3, 4).reshape(N, D, Lin)

    # --- choose Nb (samples per grid step) to feed the MXU and fit VMEM -----
    budget = _vmem_budget_bytes()
    w_item = prepared["M1"].dtype.itemsize
    weight_bytes = 2 * (prepared["M1"].size + prepared["M3"].size) * w_item  # dbl-buffered
    per_sample = (D * (Lin + Lout) * 4 * 2                  # in/out blocks, 2 buffers
                  + D * 3 * (Lin + Lout) * (4 + w_item)     # shifted-tap LHS slabs
                  + 4 * D * Lout * 4)                       # y1/x1/y3/epilogue temps
    nb = _pick_nb(N, D, per_sample, weight_bytes + (1 << 20), budget)

    cost = pl.CostEstimate(
        flops=int(2 * N * D * 3 * (Lin + Lout) * Lout),
        transcendentals=int(2 * N * GROUPS),
        bytes_accessed=int(x_slab.size * x_slab.dtype.itemsize
                           + (prepared["M1"].size + prepared["M3"].size) * w_item
                           + 4 * Lout * 4 + N * D * Lout * 4))

    kernel = _make_convd_kernel(nb, D, Lout, GW, MATMUL_DTYPE)
    out = pl.pallas_call(
        kernel,
        out_shape=jax.ShapeDtypeStruct((N, D, Lout), x_ncdhw.dtype),
        grid_spec=pltpu.PrefetchScalarGridSpec(
            num_scalar_prefetch=0,
            grid=(N // nb,),
            in_specs=[
                pl.BlockSpec((nb, D, Lin), lambda n: (n, 0, 0)),
                pl.BlockSpec((3 * Lin, Lout), lambda n: (0, 0)),    # grid-invariant
                pl.BlockSpec((3 * Lout, Lout), lambda n: (0, 0)),   # grid-invariant
                pl.BlockSpec((1, Lout), lambda n: (0, 0)),
                pl.BlockSpec((1, Lout), lambda n: (0, 0)),
                pl.BlockSpec((1, Lout), lambda n: (0, 0)),
                pl.BlockSpec((1, Lout), lambda n: (0, 0)),
            ],
            out_specs=pl.BlockSpec((nb, D, Lout), lambda n: (n, 0, 0)),
        ),
        compiler_params=pltpu.CompilerParams(
            dimension_semantics=("parallel",),     # N blocks map onto the TCs
            vmem_limit_bytes=int(budget),
        ),
        cost_estimate=cost,
    )(x_slab, prepared["M1"], prepared["M3"],
      prepared["g1"], prepared["b1"], prepared["g3"], prepared["b3"])

    # lanes are already (co, h, w): reshape + one small D<->C swap -> NCDHW
    return out.reshape(N, D, Cout, H, W).transpose(0, 2, 1, 3, 4)


# ---------------------------------------------------------------------------
# Pure-JAX reference (for the correctness check only)
# ---------------------------------------------------------------------------
def _ref_gn(x, gamma, beta):
    N, D, H, W, C = x.shape
    xg = x.reshape(N, D, H, W, GROUPS, C // GROUPS)
    mu = jnp.mean(xg, axis=(1, 2, 3, 5), keepdims=True)
    var = jnp.mean((xg - mu) ** 2, axis=(1, 2, 3, 5), keepdims=True)
    xn = ((xg - mu) / jnp.sqrt(var + GN_EPS)).reshape(N, D, H, W, C)
    return xn * gamma + beta


def _ref_forward(x_ncdhw, params, first=False):
    x = jnp.transpose(x_ncdhw, (0, 2, 3, 4, 1))
    if not first:
        x = lax.reduce_window(x, -jnp.inf, lax.max,
                              (1, 2, 2, 2, 1), (1, 2, 2, 2, 1), "VALID")

    def conv(v, w):
        return lax.conv_general_dilated(
            v, w, (1, 1, 1), "SAME",
            dimension_numbers=("NDHWC", "DHWIO", "NDHWC"))

    x = _ref_gn(conv(x, params["w1"]), params["g1"], params["b1"])
    y = _ref_gn(conv(x, params["w3"]), params["g3"], params["b3"])
    y = jax.nn.relu(x + y)
    return jnp.transpose(y, (0, 4, 1, 2, 3))


if __name__ == "__main__":
    # ConvD(inplanes=4, planes=8, dropout=0.0, norm='gn', first=False)
    N, Cin, Dd, Hh, Ww = 2, 4, 16, 16, 16
    planes = 8

    key = jax.random.PRNGKey(0)
    kx, k1, k3, kg1, kb1, kg3, kb3 = jax.random.split(key, 7)
    x = jax.random.normal(kx, (N, Cin, Dd, Hh, Ww), jnp.float32)

    # Deterministic synthetic parameters (conv weights in DHWIO layout).
    params = {
        "w1": 0.1 * jax.random.normal(k1, (3, 3, 3, Cin, planes), jnp.float32),
        "g1": 1.0 + 0.1 * jax.random.normal(kg1, (planes,), jnp.float32),
        "b1": 0.1 * jax.random.normal(kb1, (planes,), jnp.float32),
        "w3": 0.1 * jax.random.normal(k3, (3, 3, 3, planes, planes), jnp.float32),
        "g3": 1.0 + 0.1 * jax.random.normal(kg3, (planes,), jnp.float32),
        "b3": 0.1 * jax.random.normal(kb3, (planes,), jnp.float32),
    }

    prepared = prepare_convd(params, (Dd, Hh, Ww), first=False)
    out = jax.block_until_ready(convd_forward(x, prepared, first=False))

    ref = jax.block_until_ready(_ref_forward(x, params, first=False))
    assert out.shape == (N, planes, Dd // 2, Hh // 2, Ww // 2), out.shape
    max_err = float(jnp.max(jnp.abs(out - ref)))
    # bf16 MXU path: tolerance loosened per review (f32 reference).
    assert jnp.allclose(out, ref, atol=3e-2, rtol=3e-2), max_err

    print("KERNEL_OK")
</pallas_src>

<mosaic_0001>
module attributes {stable_mosaic.version = 11 : i64} {
  func.func @kernel(%arg0: i32, %arg1: memref<2x8x256xf32, #tpu.memory_space<vmem>>, %arg2: memref<768x512xbf16, #tpu.memory_space<vmem>>, %arg3: memref<1536x512xbf16, #tpu.memory_space<vmem>>, %arg4: memref<1x512xf32, #tpu.memory_space<vmem>>, %arg5: memref<1x512xf32, #tpu.memory_space<vmem>>, %arg6: memref<1x512xf32, #tpu.memory_space<vmem>>, %arg7: memref<1x512xf32, #tpu.memory_space<vmem>>, %arg8: memref<2x8x512xf32, #tpu.memory_space<vmem>>) attributes {dimension_semantics = [#tpu.dimension_semantics<parallel>], iteration_bounds = array<i64: 1>, scalar_prefetch = 0 : i64, scratch_operands = 0 : i64, tpu.core_type = #tpu.core_type<tc>, window_params = [{transform_indices = @transform_0, window_bounds = array<i64: 2, 8, 256>}, {pipeline_mode = #tpu.pipeline_mode<synchronous>, transform_indices = @transform_1, window_bounds = array<i64: 768, 512>}, {pipeline_mode = #tpu.pipeline_mode<synchronous>, transform_indices = @transform_2, window_bounds = array<i64: 1536, 512>}, {pipeline_mode = #tpu.pipeline_mode<synchronous>, transform_indices = @transform_3, window_bounds = array<i64: 1, 512>}, {pipeline_mode = #tpu.pipeline_mode<synchronous>, transform_indices = @transform_4, window_bounds = array<i64: 1, 512>}, {pipeline_mode = #tpu.pipeline_mode<synchronous>, transform_indices = @transform_5, window_bounds = array<i64: 1, 512>}, {pipeline_mode = #tpu.pipeline_mode<synchronous>, transform_indices = @transform_6, window_bounds = array<i64: 1, 512>}, {transform_indices = @transform_7, window_bounds = array<i64: 2, 8, 512>}]} {
    %c0 = arith.constant 0 : index
    %c0_0 = arith.constant 0 : index
    %c0_1 = arith.constant 0 : index
    %0 = vector.load %arg1[%c0, %c0_0, %c0_1] : memref<2x8x256xf32, #tpu.memory_space<vmem>>, vector<2x8x256xf32>
    %1 = arith.truncf %0 : vector<2x8x256xf32> to vector<2x8x256xbf16>
    %cst = arith.constant 0.000000e+00 : bf16
    %2 = vector.broadcast %cst : bf16 to vector<2x1x256xbf16>
    %3 = tpu.concatenate %2, %1, %2 in 1 : vector<2x1x256xbf16>, vector<2x8x256xbf16>, vector<2x1x256xbf16> -> vector<2x10x256xbf16>
    %4 = vector.extract_strided_slice %3 {offsets = [0, 0, 0], sizes = [2, 8, 256], strides = [1, 1, 1]} : vector<2x10x256xbf16> to vector<2x8x256xbf16>
    %5 = vector.extract_strided_slice %3 {offsets = [0, 1, 0], sizes = [2, 8, 256], strides = [1, 1, 1]} : vector<2x10x256xbf16> to vector<2x8x256xbf16>
    %6 = vector.extract_strided_slice %3 {offsets = [0, 2, 0], sizes = [2, 8, 256], strides = [1, 1, 1]} : vector<2x10x256xbf16> to vector<2x8x256xbf16>
    %7 = tpu.concatenate %4, %5, %6 in 2 : vector<2x8x256xbf16>, vector<2x8x256xbf16>, vector<2x8x256xbf16> -> vector<2x8x768xbf16>
    %8 = vector.shape_cast %7 : vector<2x8x768xbf16> to vector<16x768xbf16>
    %c0_2 = arith.constant 0 : index
    %c0_3 = arith.constant 0 : index
    %9 = vector.load %arg2[%c0_2, %c0_3] : memref<768x512xbf16, #tpu.memory_space<vmem>>, vector<768x512xbf16>
    %cst_4 = arith.constant dense<0.000000e+00> : vector<16x512xf32>
    %10 = tpu.matmul %8, %9, %cst_4 {dimension_numbers = #tpu.dot_dimension_numbers<[1], [0], [0], [1], [0, 0, 1, 1], [], []>} : vector<16x768xbf16>, vector<768x512xbf16>, vector<16x512xf32> -> vector<16x512xf32>
    %11 = vector.shape_cast %10 : vector<16x512xf32> to vector<2x8x512xf32>
    %12 = vector.extract_strided_slice %11 {offsets = [0, 0, 0], sizes = [2, 8, 128], strides = [1, 1, 1]} : vector<2x8x512xf32> to vector<2x8x128xf32>
    %cst_5 = arith.constant dense<0.000000e+00> : vector<2x8xf32>
    %13 = vector.multi_reduction <add>, %12, %cst_5 [2] : vector<2x8x128xf32> to vector<2x8xf32>
    %14 = vector.shape_cast %13 : vector<2x8xf32> to vector<2x8x1xf32>
    %cst_6 = arith.constant dense<0.000000e+00> : vector<2x1xf32>
    %15 = vector.multi_reduction <add>, %14, %cst_6 [1] : vector<2x8x1xf32> to vector<2x1xf32>
    %16 = vector.shape_cast %15 : vector<2x1xf32> to vector<2x1x1xf32>
    %17 = arith.mulf %12, %12 : vector<2x8x128xf32>
    %cst_7 = arith.constant dense<0.000000e+00> : vector<2x8xf32>
    %18 = vector.multi_reduction <add>, %17, %cst_7 [2] : vector<2x8x128xf32> to vector<2x8xf32>
    %19 = vector.shape_cast %18 : vector<2x8xf32> to vector<2x8x1xf32>
    %cst_8 = arith.constant dense<0.000000e+00> : vector<2x1xf32>
    %20 = vector.multi_reduction <add>, %19, %cst_8 [1] : vector<2x8x1xf32> to vector<2x1xf32>
    %21 = vector.shape_cast %20 : vector<2x1xf32> to vector<2x1x1xf32>
    %cst_9 = arith.constant 9.765625E-4 : f32
    %22 = vector.broadcast %cst_9 : f32 to vector<2x1x1xf32>
    %23 = arith.mulf %16, %22 : vector<2x1x1xf32>
    %cst_10 = arith.constant 9.765625E-4 : f32
    %24 = vector.broadcast %cst_10 : f32 to vector<2x1x1xf32>
    %25 = arith.mulf %21, %24 : vector<2x1x1xf32>
    %26 = arith.mulf %23, %23 : vector<2x1x1xf32>
    %27 = arith.subf %25, %26 : vector<2x1x1xf32>
    %cst_11 = arith.constant 0.000000e+00 : f32
    %28 = vector.broadcast %cst_11 : f32 to vector<2x1x1xf32>
    %29 = arith.maximumf %27, %28 : vector<2x1x1xf32>
    %cst_12 = arith.constant 9.99999974E-6 : f32
    %30 = vector.broadcast %cst_12 : f32 to vector<2x1x1xf32>
    %31 = arith.addf %29, %30 : vector<2x1x1xf32>
    %32 = math.rsqrt %31 : vector<2x1x1xf32>
    %33 = vector.shape_cast %23 : vector<2x1x1xf32> to vector<2x1x1xf32>
    %34 = vector.broadcast %33 : vector<2x1x1xf32> to vector<2x1x128xf32>
    %35 = vector.shape_cast %32 : vector<2x1x1xf32> to vector<2x1x1xf32>
    %36 = vector.broadcast %35 : vector<2x1x1xf32> to vector<2x1x128xf32>
    %37 = vector.extract_strided_slice %11 {offsets = [0, 0, 128], sizes = [2, 8, 128], strides = [1, 1, 1]} : vector<2x8x512xf32> to vector<2x8x128xf32>
    %cst_13 = arith.constant dense<0.000000e+00> : vector<2x8xf32>
    %38 = vector.multi_reduction <add>, %37, %cst_13 [2] : vector<2x8x128xf32> to vector<2x8xf32>
    %39 = vector.shape_cast %38 : vector<2x8xf32> to vector<2x8x1xf32>
    %cst_14 = arith.constant dense<0.000000e+00> : vector<2x1xf32>
    %40 = vector.multi_reduction <add>, %39, %cst_14 [1] : vector<2x8x1xf32> to vector<2x1xf32>
    %41 = vector.shape_cast %40 : vector<2x1xf32> to vector<2x1x1xf32>
    %42 = arith.mulf %37, %37 : vector<2x8x128xf32>
    %cst_15 = arith.constant dense<0.000000e+00> : vector<2x8xf32>
    %43 = vector.multi_reduction <add>, %42, %cst_15 [2] : vector<2x8x128xf32> to vector<2x8xf32>
    %44 = vector.shape_cast %43 : vector<2x8xf32> to vector<2x8x1xf32>
    %cst_16 = arith.constant dense<0.000000e+00> : vector<2x1xf32>
    %45 = vector.multi_reduction <add>, %44, %cst_16 [1] : vector<2x8x1xf32> to vector<2x1xf32>
    %46 = vector.shape_cast %45 : vector<2x1xf32> to vector<2x1x1xf32>
    %cst_17 = arith.constant 9.765625E-4 : f32
    %47 = vector.broadcast %cst_17 : f32 to vector<2x1x1xf32>
    %48 = arith.mulf %41, %47 : vector<2x1x1xf32>
    %cst_18 = arith.constant 9.765625E-4 : f32
    %49 = vector.broadcast %cst_18 : f32 to vector<2x1x1xf32>
    %50 = arith.mulf %46, %49 : vector<2x1x1xf32>
    %51 = arith.mulf %48, %48 : vector<2x1x1xf32>
    %52 = arith.subf %50, %51 : vector<2x1x1xf32>
    %cst_19 = arith.constant 0.000000e+00 : f32
    %53 = vector.broadcast %cst_19 : f32 to vector<2x1x1xf32>
    %54 = arith.maximumf %52, %53 : vector<2x1x1xf32>
    %cst_20 = arith.constant 9.99999974E-6 : f32
    %55 = vector.broadcast %cst_20 : f32 to vector<2x1x1xf32>
    %56 = arith.addf %54, %55 : vector<2x1x1xf32>
    %57 = math.rsqrt %56 : vector<2x1x1xf32>
    %58 = vector.shape_cast %48 : vector<2x1x1xf32> to vector<2x1x1xf32>
    %59 = vector.broadcast %58 : vector<2x1x1xf32> to vector<2x1x128xf32>
    %60 = vector.shape_cast %57 : vector<2x1x1xf32> to vector<2x1x1xf32>
    %61 = vector.broadcast %60 : vector<2x1x1xf32> to vector<2x1x128xf32>
    %62 = vector.extract_strided_slice %11 {offsets = [0, 0, 256], sizes = [2, 8, 128], strides = [1, 1, 1]} : vector<2x8x512xf32> to vector<2x8x128xf32>
    %cst_21 = arith.constant dense<0.000000e+00> : vector<2x8xf32>
    %63 = vector.multi_reduction <add>, %62, %cst_21 [2] : vector<2x8x128xf32> to vector<2x8xf32>
    %64 = vector.shape_cast %63 : vector<2x8xf32> to vector<2x8x1xf32>
    %cst_22 = arith.constant dense<0.000000e+00> : vector<2x1xf32>
    %65 = vector.multi_reduction <add>, %64, %cst_22 [1] : vector<2x8x1xf32> to vector<2x1xf32>
    %66 = vector.shape_cast %65 : vector<2x1xf32> to vector<2x1x1xf32>
    %67 = arith.mulf %62, %62 : vector<2x8x128xf32>
    %cst_23 = arith.constant dense<0.000000e+00> : vector<2x8xf32>
    %68 = vector.multi_reduction <add>, %67, %cst_23 [2] : vector<2x8x128xf32> to vector<2x8xf32>
    %69 = vector.shape_cast %68 : vector<2x8xf32> to vector<2x8x1xf32>
    %cst_24 = arith.constant dense<0.000000e+00> : vector<2x1xf32>
    %70 = vector.multi_reduction <add>, %69, %cst_24 [1] : vector<2x8x1xf32> to vector<2x1xf32>
    %71 = vector.shape_cast %70 : vector<2x1xf32> to vector<2x1x1xf32>
    %cst_25 = arith.constant 9.765625E-4 : f32
    %72 = vector.broadcast %cst_25 : f32 to vector<2x1x1xf32>
    %73 = arith.mulf %66, %72 : vector<2x1x1xf32>
    %cst_26 = arith.constant 9.765625E-4 : f32
    %74 = vector.broadcast %cst_26 : f32 to vector<2x1x1xf32>
    %75 = arith.mulf %71, %74 : vector<2x1x1xf32>
    %76 = arith.mulf %73, %73 : vector<2x1x1xf32>
    %77 = arith.subf %75, %76 : vector<2x1x1xf32>
    %cst_27 = arith.constant 0.000000e+00 : f32
    %78 = vector.broadcast %cst_27 : f32 to vector<2x1x1xf32>
    %79 = arith.maximumf %77, %78 : vector<2x1x1xf32>
    %cst_28 = arith.constant 9.99999974E-6 : f32
    %80 = vector.broadcast %cst_28 : f32 to vector<2x1x1xf32>
    %81 = arith.addf %79, %80 : vector<2x1x1xf32>
    %82 = math.rsqrt %81 : vector<2x1x1xf32>
    %83 = vector.shape_cast %73 : vector<2x1x1xf32> to vector<2x1x1xf32>
    %84 = vector.broadcast %83 : vector<2x1x1xf32> to vector<2x1x128xf32>
    %85 = vector.shape_cast %82 : vector<2x1x1xf32> to vector<2x1x1xf32>
    %86 = vector.broadcast %85 : vector<2x1x1xf32> to vector<2x1x128xf32>
    %87 = vector.extract_strided_slice %11 {offsets = [0, 0, 384], sizes = [2, 8, 128], strides = [1, 1, 1]} : vector<2x8x512xf32> to vector<2x8x128xf32>
    %cst_29 = arith.constant dense<0.000000e+00> : vector<2x8xf32>
    %88 = vector.multi_reduction <add>, %87, %cst_29 [2] : vector<2x8x128xf32> to vector<2x8xf32>
    %89 = vector.shape_cast %88 : vector<2x8xf32> to vector<2x8x1xf32>
    %cst_30 = arith.constant dense<0.000000e+00> : vector<2x1xf32>
    %90 = vector.multi_reduction <add>, %89, %cst_30 [1] : vector<2x8x1xf32> to vector<2x1xf32>
    %91 = vector.shape_cast %90 : vector<2x1xf32> to vector<2x1x1xf32>
    %92 = arith.mulf %87, %87 : vector<2x8x128xf32>
    %cst_31 = arith.constant dense<0.000000e+00> : vector<2x8xf32>
    %93 = vector.multi_reduction <add>, %92, %cst_31 [2] : vector<2x8x128xf32> to vector<2x8xf32>
    %94 = vector.shape_cast %93 : vector<2x8xf32> to vector<2x8x1xf32>
    %cst_32 = arith.constant dense<0.000000e+00> : vector<2x1xf32>
    %95 = vector.multi_reduction <add>, %94, %cst_32 [1] : vector<2x8x1xf32> to vector<2x1xf32>
    %96 = vector.shape_cast %95 : vector<2x1xf32> to vector<2x1x1xf32>
    %cst_33 = arith.constant 9.765625E-4 : f32
    %97 = vector.broadcast %cst_33 : f32 to vector<2x1x1xf32>
    %98 = arith.mulf %91, %97 : vector<2x1x1xf32>
    %cst_34 = arith.constant 9.765625E-4 : f32
    %99 = vector.broadcast %cst_34 : f32 to vector<2x1x1xf32>
    %100 = arith.mulf %96, %99 : vector<2x1x1xf32>
    %101 = arith.mulf %98, %98 : vector<2x1x1xf32>
    %102 = arith.subf %100, %101 : vector<2x1x1xf32>
    %cst_35 = arith.constant 0.000000e+00 : f32
    %103 = vector.broadcast %cst_35 : f32 to vector<2x1x1xf32>
    %104 = arith.maximumf %102, %103 : vector<2x1x1xf32>
    %cst_36 = arith.constant 9.99999974E-6 : f32
    %105 = vector.broadcast %cst_36 : f32 to vector<2x1x1xf32>
    %106 = arith.addf %104, %105 : vector<2x1x1xf32>
    %107 = math.rsqrt %106 : vector<2x1x1xf32>
    %108 = vector.shape_cast %98 : vector<2x1x1xf32> to vector<2x1x1xf32>
    %109 = vector.broadcast %108 : vector<2x1x1xf32> to vector<2x1x128xf32>
    %110 = vector.shape_cast %107 : vector<2x1x1xf32> to vector<2x1x1xf32>
    %111 = vector.broadcast %110 : vector<2x1x1xf32> to vector<2x1x128xf32>
    %112 = tpu.concatenate %34, %59, %84, %109 in 2 : vector<2x1x128xf32>, vector<2x1x128xf32>, vector<2x1x128xf32>, vector<2x1x128xf32> -> vector<2x1x512xf32>
    %113 = tpu.concatenate %36, %61, %86, %111 in 2 : vector<2x1x128xf32>, vector<2x1x128xf32>, vector<2x1x128xf32>, vector<2x1x128xf32> -> vector<2x1x512xf32>
    %c0_37 = arith.constant 0 : index
    %c0_38 = arith.constant 0 : index
    %114 = vector.load %arg4[%c0_37, %c0_38] : memref<1x512xf32, #tpu.memory_space<vmem>>, vector<1x512xf32>
    %115 = vector.shape_cast %114 : vector<1x512xf32> to vector<1x1x512xf32>
    %c0_39 = arith.constant 0 : index
    %c0_40 = arith.constant 0 : index
    %116 = vector.load %arg5[%c0_39, %c0_40] : memref<1x512xf32, #tpu.memory_space<vmem>>, vector<1x512xf32>
    %117 = vector.shape_cast %116 : vector<1x512xf32> to vector<1x1x512xf32>
    %118 = vector.broadcast %115 : vector<1x1x512xf32> to vector<2x1x512xf32>
    %119 = arith.mulf %113, %118 : vector<2x1x512xf32>
    %120 = arith.mulf %112, %119 : vector<2x1x512xf32>
    %121 = vector.broadcast %117 : vector<1x1x512xf32> to vector<2x1x512xf32>
    %122 = arith.subf %121, %120 : vector<2x1x512xf32>
    %123 = vector.broadcast %119 : vector<2x1x512xf32> to vector<2x8x512xf32>
    %124 = arith.mulf %11, %123 : vector<2x8x512xf32>
    %125 = vector.broadcast %122 : vector<2x1x512xf32> to vector<2x8x512xf32>
    %126 = arith.addf %124, %125 : vector<2x8x512xf32>
    %127 = arith.truncf %126 : vector<2x8x512xf32> to vector<2x8x512xbf16>
    %cst_41 = arith.constant 0.000000e+00 : bf16
    %128 = vector.broadcast %cst_41 : bf16 to vector<2x1x512xbf16>
    %129 = tpu.concatenate %128, %127, %128 in 1 : vector<2x1x512xbf16>, vector<2x8x512xbf16>, vector<2x1x512xbf16> -> vector<2x10x512xbf16>
    %130 = vector.extract_strided_slice %129 {offsets = [0, 0, 0], sizes = [2, 8, 512], strides = [1, 1, 1]} : vector<2x10x512xbf16> to vector<2x8x512xbf16>
    %131 = vector.extract_strided_slice %129 {offsets = [0, 1, 0], sizes = [2, 8, 512], strides = [1, 1, 1]} : vector<2x10x512xbf16> to vector<2x8x512xbf16>
    %132 = vector.extract_strided_slice %129 {offsets = [0, 2, 0], sizes = [2, 8, 512], strides = [1, 1, 1]} : vector<2x10x512xbf16> to vector<2x8x512xbf16>
    %133 = tpu.concatenate %130, %131, %132 in 2 : vector<2x8x512xbf16>, vector<2x8x512xbf16>, vector<2x8x512xbf16> -> vector<2x8x1536xbf16>
    %134 = vector.shape_cast %133 : vector<2x8x1536xbf16> to vector<16x1536xbf16>
    %c0_42 = arith.constant 0 : index
    %c0_43 = arith.constant 0 : index
    %135 = vector.load %arg3[%c0_42, %c0_43] : memref<1536x512xbf16, #tpu.memory_space<vmem>>, vector<1536x512xbf16>
    %cst_44 = arith.constant dense<0.000000e+00> : vector<16x512xf32>
    %136 = tpu.matmul %134, %135, %cst_44 {dimension_numbers = #tpu.dot_dimension_numbers<[1], [0], [0], [1], [0, 0, 1, 1], [], []>} : vector<16x1536xbf16>, vector<1536x512xbf16>, vector<16x512xf32> -> vector<16x512xf32>
    %137 = vector.shape_cast %136 : vector<16x512xf32> to vector<2x8x512xf32>
    %138 = vector.extract_strided_slice %137 {offsets = [0, 0, 0], sizes = [2, 8, 128], strides = [1, 1, 1]} : vector<2x8x512xf32> to vector<2x8x128xf32>
    %cst_45 = arith.constant dense<0.000000e+00> : vector<2x8xf32>
    %139 = vector.multi_reduction <add>, %138, %cst_45 [2] : vector<2x8x128xf32> to vector<2x8xf32>
    %140 = vector.shape_cast %139 : vector<2x8xf32> to vector<2x8x1xf32>
    %cst_46 = arith.constant dense<0.000000e+00> : vector<2x1xf32>
    %141 = vector.multi_reduction <add>, %140, %cst_46 [1] : vector<2x8x1xf32> to vector<2x1xf32>
    %142 = vector.shape_cast %141 : vector<2x1xf32> to vector<2x1x1xf32>
    %143 = arith.mulf %138, %138 : vector<2x8x128xf32>
    %cst_47 = arith.constant dense<0.000000e+00> : vector<2x8xf32>
    %144 = vector.multi_reduction <add>, %143, %cst_47 [2] : vector<2x8x128xf32> to vector<2x8xf32>
    %145 = vector.shape_cast %144 : vector<2x8xf32> to vector<2x8x1xf32>
    %cst_48 = arith.constant dense<0.000000e+00> : vector<2x1xf32>
    %146 = vector.multi_reduction <add>, %145, %cst_48 [1] : vector<2x8x1xf32> to vector<2x1xf32>
    %147 = vector.shape_cast %146 : vector<2x1xf32> to vector<2x1x1xf32>
    %cst_49 = arith.constant 9.765625E-4 : f32
    %148 = vector.broadcast %cst_49 : f32 to vector<2x1x1xf32>
    %149 = arith.mulf %142, %148 : vector<2x1x1xf32>
    %cst_50 = arith.constant 9.765625E-4 : f32
    %150 = vector.broadcast %cst_50 : f32 to vector<2x1x1xf32>
    %151 = arith.mulf %147, %150 : vector<2x1x1xf32>
    %152 = arith.mulf %149, %149 : vector<2x1x1xf32>
    %153 = arith.subf %151, %152 : vector<2x1x1xf32>
    %cst_51 = arith.constant 0.000000e+00 : f32
    %154 = vector.broadcast %cst_51 : f32 to vector<2x1x1xf32>
    %155 = arith.maximumf %153, %154 : vector<2x1x1xf32>
    %cst_52 = arith.constant 9.99999974E-6 : f32
    %156 = vector.broadcast %cst_52 : f32 to vector<2x1x1xf32>
    %157 = arith.addf %155, %156 : vector<2x1x1xf32>
    %158 = math.rsqrt %157 : vector<2x1x1xf32>
    %159 = vector.shape_cast %149 : vector<2x1x1xf32> to vector<2x1x1xf32>
    %160 = vector.broadcast %159 : vector<2x1x1xf32> to vector<2x1x128xf32>
    %161 = vector.shape_cast %158 : vector<2x1x1xf32> to vector<2x1x1xf32>
    %162 = vector.broadcast %161 : vector<2x1x1xf32> to vector<2x1x128xf32>
    %163 = vector.extract_strided_slice %137 {offsets = [0, 0, 128], sizes = [2, 8, 128], strides = [1, 1, 1]} : vector<2x8x512xf32> to vector<2x8x128xf32>
    %cst_53 = arith.constant dense<0.000000e+00> : vector<2x8xf32>
    %164 = vector.multi_reduction <add>, %163, %cst_53 [2] : vector<2x8x128xf32> to vector<2x8xf32>
    %165 = vector.shape_cast %164 : vector<2x8xf32> to vector<2x8x1xf32>
    %cst_54 = arith.constant dense<0.000000e+00> : vector<2x1xf32>
    %166 = vector.multi_reduction <add>, %165, %cst_54 [1] : vector<2x8x1xf32> to vector<2x1xf32>
    %167 = vector.shape_cast %166 : vector<2x1xf32> to vector<2x1x1xf32>
    %168 = arith.mulf %163, %163 : vector<2x8x128xf32>
    %cst_55 = arith.constant dense<0.000000e+00> : vector<2x8xf32>
    %169 = vector.multi_reduction <add>, %168, %cst_55 [2] : vector<2x8x128xf32> to vector<2x8xf32>
    %170 = vector.shape_cast %169 : vector<2x8xf32> to vector<2x8x1xf32>
    %cst_56 = arith.constant dense<0.000000e+00> : vector<2x1xf32>
    %171 = vector.multi_reduction <add>, %170, %cst_56 [1] : vector<2x8x1xf32> to vector<2x1xf32>
    %172 = vector.shape_cast %171 : vector<2x1xf32> to vector<2x1x1xf32>
    %cst_57 = arith.constant 9.765625E-4 : f32
    %173 = vector.broadcast %cst_57 : f32 to vector<2x1x1xf32>
    %174 = arith.mulf %167, %173 : vector<2x1x1xf32>
    %cst_58 = arith.constant 9.765625E-4 : f32
    %175 = vector.broadcast %cst_58 : f32 to vector<2x1x1xf32>
    %176 = arith.mulf %172, %175 : vector<2x1x1xf32>
    %177 = arith.mulf %174, %174 : vector<2x1x1xf32>
    %178 = arith.subf %176, %177 : vector<2x1x1xf32>
    %cst_59 = arith.constant 0.000000e+00 : f32
    %179 = vector.broadcast %cst_59 : f32 to vector<2x1x1xf32>
    %180 = arith.maximumf %178, %179 : vector<2x1x1xf32>
    %cst_60 = arith.constant 9.99999974E-6 : f32
    %181 = vector.broadcast %cst_60 : f32 to vector<2x1x1xf32>
    %182 = arith.addf %180, %181 : vector<2x1x1xf32>
    %183 = math.rsqrt %182 : vector<2x1x1xf32>
    %184 = vector.shape_cast %174 : vector<2x1x1xf32> to vector<2x1x1xf32>
    %185 = vector.broadcast %184 : vector<2x1x1xf32> to vector<2x1x128xf32>
    %186 = vector.shape_cast %183 : vector<2x1x1xf32> to vector<2x1x1xf32>
    %187 = vector.broadcast %186 : vector<2x1x1xf32> to vector<2x1x128xf32>
    %188 = vector.extract_strided_slice %137 {offsets = [0, 0, 256], sizes = [2, 8, 128], strides = [1, 1, 1]} : vector<2x8x512xf32> to vector<2x8x128xf32>
    %cst_61 = arith.constant dense<0.000000e+00> : vector<2x8xf32>
    %189 = vector.multi_reduction <add>, %188, %cst_61 [2] : vector<2x8x128xf32> to vector<2x8xf32>
    %190 = vector.shape_cast %189 : vector<2x8xf32> to vector<2x8x1xf32>
    %cst_62 = arith.constant dense<0.000000e+00> : vector<2x1xf32>
    %191 = vector.multi_reduction <add>, %190, %cst_62 [1] : vector<2x8x1xf32> to vector<2x1xf32>
    %192 = vector.shape_cast %191 : vector<2x1xf32> to vector<2x1x1xf32>
    %193 = arith.mulf %188, %188 : vector<2x8x128xf32>
    %cst_63 = arith.constant dense<0.000000e+00> : vector<2x8xf32>
    %194 = vector.multi_reduction <add>, %193, %cst_63 [2] : vector<2x8x128xf32> to vector<2x8xf32>
    %195 = vector.shape_cast %194 : vector<2x8xf32> to vector<2x8x1xf32>
    %cst_64 = arith.constant dense<0.000000e+00> : vector<2x1xf32>
    %196 = vector.multi_reduction <add>, %195, %cst_64 [1] : vector<2x8x1xf32> to vector<2x1xf32>
    %197 = vector.shape_cast %196 : vector<2x1xf32> to vector<2x1x1xf32>
    %cst_65 = arith.constant 9.765625E-4 : f32
    %198 = vector.broadcast %cst_65 : f32 to vector<2x1x1xf32>
    %199 = arith.mulf %192, %198 : vector<2x1x1xf32>
    %cst_66 = arith.constant 9.765625E-4 : f32
    %200 = vector.broadcast %cst_66 : f32 to vector<2x1x1xf32>
    %201 = arith.mulf %197, %200 : vector<2x1x1xf32>
    %202 = arith.mulf %199, %199 : vector<2x1x1xf32>
    %203 = arith.subf %201, %202 : vector<2x1x1xf32>
    %cst_67 = arith.constant 0.000000e+00 : f32
    %204 = vector.broadcast %cst_67 : f32 to vector<2x1x1xf32>
    %205 = arith.maximumf %203, %204 : vector<2x1x1xf32>
    %cst_68 = arith.constant 9.99999974E-6 : f32
    %206 = vector.broadcast %cst_68 : f32 to vector<2x1x1xf32>
    %207 = arith.addf %205, %206 : vector<2x1x1xf32>
    %208 = math.rsqrt %207 : vector<2x1x1xf32>
    %209 = vector.shape_cast %199 : vector<2x1x1xf32> to vector<2x1x1xf32>
    %210 = vector.broadcast %209 : vector<2x1x1xf32> to vector<2x1x128xf32>
    %211 = vector.shape_cast %208 : vector<2x1x1xf32> to vector<2x1x1xf32>
    %212 = vector.broadcast %211 : vector<2x1x1xf32> to vector<2x1x128xf32>
    %213 = vector.extract_strided_slice %137 {offsets = [0, 0, 384], sizes = [2, 8, 128], strides = [1, 1, 1]} : vector<2x8x512xf32> to vector<2x8x128xf32>
    %cst_69 = arith.constant dense<0.000000e+00> : vector<2x8xf32>
    %214 = vector.multi_reduction <add>, %213, %cst_69 [2] : vector<2x8x128xf32> to vector<2x8xf32>
    %215 = vector.shape_cast %214 : vector<2x8xf32> to vector<2x8x1xf32>
    %cst_70 = arith.constant dense<0.000000e+00> : vector<2x1xf32>
    %216 = vector.multi_reduction <add>, %215, %cst_70 [1] : vector<2x8x1xf32> to vector<2x1xf32>
    %217 = vector.shape_cast %216 : vector<2x1xf32> to vector<2x1x1xf32>
    %218 = arith.mulf %213, %213 : vector<2x8x128xf32>
    %cst_71 = arith.constant dense<0.000000e+00> : vector<2x8xf32>
    %219 = vector.multi_reduction <add>, %218, %cst_71 [2] : vector<2x8x128xf32> to vector<2x8xf32>
    %220 = vector.shape_cast %219 : vector<2x8xf32> to vector<2x8x1xf32>
    %cst_72 = arith.constant dense<0.000000e+00> : vector<2x1xf32>
    %221 = vector.multi_reduction <add>, %220, %cst_72 [1] : vector<2x8x1xf32> to vector<2x1xf32>
    %222 = vector.shape_cast %221 : vector<2x1xf32> to vector<2x1x1xf32>
    %cst_73 = arith.constant 9.765625E-4 : f32
    %223 = vector.broadcast %cst_73 : f32 to vector<2x1x1xf32>
    %224 = arith.mulf %217, %223 : vector<2x1x1xf32>
    %cst_74 = arith.constant 9.765625E-4 : f32
    %225 = vector.broadcast %cst_74 : f32 to vector<2x1x1xf32>
    %226 = arith.mulf %222, %225 : vector<2x1x1xf32>
    %227 = arith.mulf %224, %224 : vector<2x1x1xf32>
    %228 = arith.subf %226, %227 : vector<2x1x1xf32>
    %cst_75 = arith.constant 0.000000e+00 : f32
    %229 = vector.broadcast %cst_75 : f32 to vector<2x1x1xf32>
    %230 = arith.maximumf %228, %229 : vector<2x1x1xf32>
    %cst_76 = arith.constant 9.99999974E-6 : f32
    %231 = vector.broadcast %cst_76 : f32 to vector<2x1x1xf32>
    %232 = arith.addf %230, %231 : vector<2x1x1xf32>
    %233 = math.rsqrt %232 : vector<2x1x1xf32>
    %234 = vector.shape_cast %224 : vector<2x1x1xf32> to vector<2x1x1xf32>
    %235 = vector.broadcast %234 : vector<2x1x1xf32> to vector<2x1x128xf32>
    %236 = vector.shape_cast %233 : vector<2x1x1xf32> to vector<2x1x1xf32>
    %237 = vector.broadcast %236 : vector<2x1x1xf32> to vector<2x1x128xf32>
    %238 = tpu.concatenate %160, %185, %210, %235 in 2 : vector<2x1x128xf32>, vector<2x1x128xf32>, vector<2x1x128xf32>, vector<2x1x128xf32> -> vector<2x1x512xf32>
    %239 = tpu.concatenate %162, %187, %212, %237 in 2 : vector<2x1x128xf32>, vector<2x1x128xf32>, vector<2x1x128xf32>, vector<2x1x128xf32> -> vector<2x1x512xf32>
    %c0_77 = arith.constant 0 : index
    %c0_78 = arith.constant 0 : index
    %240 = vector.load %arg6[%c0_77, %c0_78] : memref<1x512xf32, #tpu.memory_space<vmem>>, vector<1x512xf32>
    %241 = vector.shape_cast %240 : vector<1x512xf32> to vector<1x1x512xf32>
    %c0_79 = arith.constant 0 : index
    %c0_80 = arith.constant 0 : index
    %242 = vector.load %arg7[%c0_79, %c0_80] : memref<1x512xf32, #tpu.memory_space<vmem>>, vector<1x512xf32>
    %243 = vector.shape_cast %242 : vector<1x512xf32> to vector<1x1x512xf32>
    %244 = vector.broadcast %241 : vector<1x1x512xf32> to vector<2x1x512xf32>
    %245 = arith.mulf %239, %244 : vector<2x1x512xf32>
    %246 = arith.mulf %238, %245 : vector<2x1x512xf32>
    %247 = vector.broadcast %243 : vector<1x1x512xf32> to vector<2x1x512xf32>
    %248 = arith.subf %247, %246 : vector<2x1x512xf32>
    %249 = vector.broadcast %245 : vector<2x1x512xf32> to vector<2x8x512xf32>
    %250 = arith.mulf %137, %249 : vector<2x8x512xf32>
    %251 = vector.broadcast %248 : vector<2x1x512xf32> to vector<2x8x512xf32>
    %252 = arith.addf %250, %251 : vector<2x8x512xf32>
    %253 = arith.addf %126, %252 : vector<2x8x512xf32>
    %cst_81 = arith.constant 0.000000e+00 : f32
    %254 = vector.broadcast %cst_81 : f32 to vector<2x8x512xf32>
    %255 = arith.maximumf %253, %254 : vector<2x8x512xf32>
    %c0_82 = arith.constant 0 : index
    %c0_83 = arith.constant 0 : index
    %c0_84 = arith.constant 0 : index
    %256 = vector.load %arg8[%c0_82, %c0_83, %c0_84] : memref<2x8x512xf32, #tpu.memory_space<vmem>>, vector<2x8x512xf32>
    tpu.vector_store %arg8[%c0_82, %c0_83, %c0_84], %255 {strides = array<i32>} : memref<2x8x512xf32, #tpu.memory_space<vmem>>, vector<2x8x512xf32>,
    return
  }
  func.func @transform_0(%arg0: i32) -> (i32, i32, i32) {
    %c0_i32 = arith.constant 0 : i32
    %c0_i32_0 = arith.constant 0 : i32
    %c0_i32_1 = arith.constant 0 : i32
    return %arg0, %c0_i32, %c0_i32_0 : i32, i32, i32
  }
  func.func @transform_1(%arg0: i32) -> (i32, i32) {
    %c0_i32 = arith.constant 0 : i32
    %c0_i32_0 = arith.constant 0 : i32
    %c0_i32_1 = arith.constant 0 : i32
    return %c0_i32, %c0_i32_0 : i32, i32
  }
  func.func @transform_2(%arg0: i32) -> (i32, i32) {
    %c0_i32 = arith.constant 0 : i32
    %c0_i32_0 = arith.constant 0 : i32
    %c0_i32_1 = arith.constant 0 : i32
    return %c0_i32, %c0_i32_0 : i32, i32
  }
  func.func @transform_3(%arg0: i32) -> (i32, i32) {
    %c0_i32 = arith.constant 0 : i32
    %c0_i32_0 = arith.constant 0 : i32
    %c0_i32_1 = arith.constant 0 : i32
    return %c0_i32, %c0_i32_0 : i32, i32
  }
  func.func @transform_4(%arg0: i32) -> (i32, i32) {
    %c0_i32 = arith.constant 0 : i32
    %c0_i32_0 = arith.constant 0 : i32
    %c0_i32_1 = arith.constant 0 : i32
    return %c0_i32, %c0_i32_0 : i32, i32
  }
  func.func @transform_5(%arg0: i32) -> (i32, i32) {
    %c0_i32 = arith.constant 0 : i32
    %c0_i32_0 = arith.constant 0 : i32
    %c0_i32_1 = arith.constant 0 : i32
    return %c0_i32, %c0_i32_0 : i32, i32
  }
  func.func @transform_6(%arg0: i32) -> (i32, i32) {
    %c0_i32 = arith.constant 0 : i32
    %c0_i32_0 = arith.constant 0 : i32
    %c0_i32_1 = arith.constant 0 : i32
    return %c0_i32, %c0_i32_0 : i32, i32
  }
  func.func @transform_7(%arg0: i32) -> (i32, i32, i32) {
    %c0_i32 = arith.constant 0 : i32
    %c0_i32_0 = arith.constant 0 : i32
    %c0_i32_1 = arith.constant 0 : i32
    return %arg0, %c0_i32, %c0_i32_0 : i32, i32, i32
  }
}

</mosaic_0001>

<bundles_post_ra>
// kernel: convd_forward.1
= control target key start
LH: loop header
LB: loop body
LE: loop exit
PB: predicated region body
PF: predicated region fallthrough
CT: control target
= control target key end

     0   :  { %vm67_vm0 = vcmask 1040384   ;;  %vm68_vm1 = vsmask.f32 256  ;;  %vm75_vm2 = vsmask.f32 4352  ;;  %vm74_vm3 = vcmask 1044480   ;;  %s9193_s1 = inlined_call_operand.vmem [shape: bf16[768,512], index: 1, kind: input, shape index: {}]   ;;  %s9194_s0 = inlined_call_operand.vmem [shape: f32[2,8,256], index: 0, kind: input, shape index: {}]   ;;  %s9195_s2 = inlined_call_operand.vmem [shape: bf16[1536,512], index: 2, kind: input, shape index: {}]   ;;  %s9196_s3 = inlined_call_operand.vmem [shape: f32[1,512], index: 3, kind: input, shape index: {}]   ;;  %s9197_s4 = inlined_call_operand.vmem [shape: f32[1,512], index: 4, kind: input, shape index: {}]   ;;  %s9198_s5 = inlined_call_operand.vmem [shape: f32[1,512], index: 5, kind: input, shape index: {}]   ;;  %s9199_s6 = inlined_call_operand.vmem [shape: f32[1,512], index: 6, kind: input, shape index: {}]   ;;  %s9200_s7 = inlined_call_operand.vmem [shape: f32[2,8,512], index: 7, kind: output, shape index: {}]  }
   0x1   :  { %v6020_v0 = vld [vmem:[%s9193_s1 + $0x4] ss:$16 sps:$4 sm:$0xff]   ;;  %v6022_v1 = vld [vmem:[%s9193_s1 + $0xc] ss:$16 sps:$4 sm:$0xff]   ;;  %v6024_v2 = vld [vmem:[%s9193_s1] ss:$16 sps:$4 sm:$0xff]  }
   0x2   :  { %1293 = vmatprep.subr.bf16.mxu0 %v6020_v0  ;;  %v6025_v3 = vld [vmem:[%s9193_s1 + $0x8] ss:$16 sps:$4 sm:$0xff]   ;;  %1422 = vmatprep.subr.bf16.mxu1 %v6022_v1  ;;  %v6026_v4 = vld [vmem:[%s9193_s1 + $0x24] ss:$16 sps:$4 sm:$0xff]   ;;  %v6028_v5 = vld [vmem:[%s9193_s1 + $0x2c] ss:$16 sps:$4 sm:$0xff]  }
   0x3   :  { %1294 = vmatpush1.bf16.msra.mxu0 %v6024_v2  ;;  %1423 = vmatpush1.bf16.msra.mxu1 %v6025_v3  ;;  %v6030_v6 = vld [vmem:[%s9193_s1 + $0x20] ss:$16 sps:$4 sm:$0xff]   ;;  %v6031_v7 = vld [vmem:[%s9193_s1 + $0x28] ss:$16 sps:$4 sm:$0xff]   ;;  %v6032_v8 = vld [vmem:[%s9193_s1 + $0x44] ss:$16 sps:$4 sm:$0xff]  }
   0x4   :  { %1295 = vmatprep.subr.bf16.mxu0 %v6026_v4  ;;  %1424 = vmatprep.subr.bf16.mxu1 %v6028_v5  ;;  %v6034_v9 = vld [vmem:[%s9193_s1 + $0x4c] ss:$16 sps:$4 sm:$0xff]   ;;  %v6036_v10 = vld [vmem:[%s9193_s1 + $0x40] ss:$16 sps:$4 sm:$0xff]   ;;  %v6037_v11 = vld [vmem:[%s9193_s1 + $0x48] ss:$16 sps:$4 sm:$0xff]  }
   0x5   :  { %v6038_v12 = vld [vmem:[%s9193_s1 + $0x64] ss:$16 sps:$4 sm:$0xff]   ;;  %v6040_v13 = vld [vmem:[%s9193_s1 + $0x6c] ss:$16 sps:$4 sm:$0xff]   ;;  %v6042_v14 = vld [vmem:[%s9193_s1 + $0x60] ss:$16 sps:$4 sm:$0xff]  }
   0x6   :  { %v6043_v15 = vld [vmem:[%s9193_s1 + $0x68] ss:$16 sps:$4 sm:$0xff]   ;;  %v6044_v16 = vld [vmem:[%s9193_s1 + $0x84] ss:$16 sps:$4 sm:$0xff]   ;;  %v6046_v17 = vld [vmem:[%s9193_s1 + $0x8c] ss:$16 sps:$4 sm:$0xff]  }
   0x7   :  { %1296 = vmatpush1.bf16.msra.mxu0 %v6030_v6  ;;  %1425 = vmatpush1.bf16.msra.mxu1 %v6031_v7  ;;  %v6048_v18 = vld [vmem:[%s9193_s1 + $0x80] ss:$16 sps:$4 sm:$0xff]   ;;  %v6049_v19 = vld [vmem:[%s9193_s1 + $0x88] ss:$16 sps:$4 sm:$0xff]   ;;  %v6050_v20 = vld [vmem:[%s9193_s1 + $0xa4] ss:$16 sps:$4 sm:$0xff]  }
   0x8   :  { %1297 = vmatprep.subr.bf16.mxu0 %v6032_v8  ;;  %1426 = vmatprep.subr.bf16.mxu1 %v6034_v9  ;;  %v6052_v21 = vld [vmem:[%s9193_s1 + $0xac] ss:$16 sps:$4 sm:$0xff]   ;;  %v6054_v22 = vld [vmem:[%s9193_s1 + $0xa0] ss:$16 sps:$4 sm:$0xff]   ;;  %v6055_v23 = vld [vmem:[%s9193_s1 + $0xa8] ss:$16 sps:$4 sm:$0xff]  }
   0x9   :  { %v6056_v24 = vld [vmem:[%s9193_s1 + $0xc4] ss:$16 sps:$4 sm:$0xff]   ;;  %v6058_v25 = vld [vmem:[%s9193_s1 + $0xcc] ss:$16 sps:$4 sm:$0xff]   ;;  %v6060_v26 = vld [vmem:[%s9193_s1 + $0xc0] ss:$16 sps:$4 sm:$0xff]  }
   0xa   :  { %v6061_v27 = vld [vmem:[%s9193_s1 + $0xc8] ss:$16 sps:$4 sm:$0xff]   ;;  %v6062_v28 = vld [vmem:[%s9193_s1 + $0xe4] ss:$16 sps:$4 sm:$0xff]   ;;  %v6064_v29 = vld [vmem:[%s9193_s1 + $0xec] ss:$16 sps:$4 sm:$0xff]  }
   0xb   :  { %1298 = vmatpush1.bf16.msra.mxu0 %v6036_v10  ;;  %1427 = vmatpush1.bf16.msra.mxu1 %v6037_v11  ;;  %v6066_v30 = vld [vmem:[%s9193_s1 + $0xe0] ss:$16 sps:$4 sm:$0xff]   ;;  %v6067_v31 = vld [vmem:[%s9193_s1 + $0xe8] ss:$16 sps:$4 sm:$0xff]   ;;  %v6068_v32 = vld [vmem:[%s9193_s1 + $0x104] ss:$16 sps:$4 sm:$0xff]  }
   0xc   :  { %1299 = vmatprep.subr.bf16.mxu0 %v6038_v12  ;;  %1428 = vmatprep.subr.bf16.mxu1 %v6040_v13  ;;  %v6070_v33 = vld [vmem:[%s9193_s1 + $0x10c] ss:$16 sps:$4 sm:$0xff]   ;;  %v6072_v34 = vld [vmem:[%s9193_s1 + $0x100] ss:$16 sps:$4 sm:$0xff]   ;;  %v6073_v35 = vld [vmem:[%s9193_s1 + $0x108] ss:$16 sps:$4 sm:$0xff]  }
   0xd   :  { %v6074_v36 = vld [vmem:[%s9193_s1 + $0x124] ss:$16 sps:$4 sm:$0xff]   ;;  %v6076_v37 = vld [vmem:[%s9193_s1 + $0x12c] ss:$16 sps:$4 sm:$0xff]   ;;  %v6078_v38 = vld [vmem:[%s9193_s1 + $0x120] ss:$16 sps:$4 sm:$0xff]  }
   0xe   :  { %v6079_v39 = vld [vmem:[%s9193_s1 + $0x128] ss:$16 sps:$4 sm:$0xff]   ;;  %v6080_v40 = vld [vmem:[%s9193_s1 + $0x144] ss:$16 sps:$4 sm:$0xff]   ;;  %v6082_v41 = vld [vmem:[%s9193_s1 + $0x14c] ss:$16 sps:$4 sm:$0xff]  }
   0xf   :  { %1300 = vmatpush1.bf16.msra.mxu0 %v6042_v14  ;;  %1429 = vmatpush1.bf16.msra.mxu1 %v6043_v15  ;;  %v6084_v42 = vld [vmem:[%s9193_s1 + $0x140] ss:$16 sps:$4 sm:$0xff]   ;;  %v6085_v43 = vld [vmem:[%s9193_s1 + $0x148] ss:$16 sps:$4 sm:$0xff]   ;;  %v6086_v44 = vld [vmem:[%s9193_s1 + $0x164] ss:$16 sps:$4 sm:$0xff]  }
  0x10   :  { %1301 = vmatprep.subr.bf16.mxu0 %v6044_v16  ;;  %1430 = vmatprep.subr.bf16.mxu1 %v6046_v17  ;;  %v6088_v45 = vld [vmem:[%s9193_s1 + $0x16c] ss:$16 sps:$4 sm:$0xff]   ;;  %v6090_v47 = vld [vmem:[%s9193_s1 + $0x160] ss:$16 sps:$4 sm:$0xff]   ;;  %v6091_v50 = vld [vmem:[%s9193_s1 + $0x168] ss:$16 sps:$4 sm:$0xff]  }
  0x11   :  { %v28_v46 = vld [vmem:[%s9194_s0 + $0x8] sm:$0xff]  ;;  %v30_v48 = vld [vmem:[%s9194_s0 + $0x18] sm:$0xff]  ;;  %v6092_v51 = vld [vmem:[%s9193_s1 + $0x184] ss:$16 sps:$4 sm:$0xff]  }
  0x12   :  { %v32_v49 = vpack.c.bf16 %v28_v46, %v28_v46  ;;  %v34_v52 = vpack.c.bf16 %v30_v48, %v30_v48  ;;  %v6094_v53 = vld [vmem:[%s9193_s1 + $0x18c] ss:$16 sps:$4 sm:$0xff]   ;;  %v6096_v56 = vld [vmem:[%s9193_s1 + $0x180] ss:$16 sps:$4 sm:$0xff]   ;;  %v6097_v57 = vld [vmem:[%s9193_s1 + $0x188] ss:$16 sps:$4 sm:$0xff]  }
  0x13   :  { %1302 = vmatpush1.bf16.msra.mxu0 %v6048_v18  ;;  %1431 = vmatpush1.bf16.msra.mxu1 %v6049_v19  ;;  %v6098_v60 = vld [vmem:[%s9193_s1 + $0x1a4] ss:$16 sps:$4 sm:$0xff]   ;;  %v6100_v0 = vld [vmem:[%s9193_s1 + $0x1ac] ss:$16 sps:$4 sm:$0xff]   ;;  %vm7133_vm4 = vmand %vm67_vm0, %vm68_vm1 }
  0x14   :  { %1303 = vmatprep.subr.bf16.mxu0 %v6050_v20  ;;  %1432 = vmatprep.subr.bf16.mxu1 %v6052_v21  ;;  %v43_v54 = vshrl.u32 %v32_v49, 16  ;;  %v46_v55 = vshll.u32 %v32_v49, 16  ;;  %v57_v58 = vshrl.u32 %v34_v52, 16  ;;  %v60_v59 = vshll.u32 %v34_v52, 16  ;;  %v27_v62 = vld [vmem:[%s9194_s0] sm:$0xff]  ;;  %v29_v63 = vld [vmem:[%s9194_s0 + $0x10] sm:$0xff]  ;;  %vm7139_vm5 = vmand %vm74_vm3, %vm75_vm2 }
  0x15   :  { %v31_v3 = vpack.c.bf16 %v27_v62, %v27_v62  ;;  %v33_v4 = vpack.c.bf16 %v29_v63, %v29_v63  ;;  %v6102_v11 = vld [vmem:[%s9193_s1 + $0x1a0] ss:$16 sps:$4 sm:$0xff]   ;;  %v6103_v14 = vld [vmem:[%s9193_s1 + $0x1a8] ss:$16 sps:$4 sm:$0xff]   ;;  %v6104_v19 = vld [vmem:[%s9193_s1 + $0x1c4] ss:$16 sps:$4 sm:$0xff]  }
  0x16   :  { %v45_v61 = vrot.slane %v43_v54, 7  ;;  %v59_v1 = vrot.slane %v57_v58, 7  ;;  %v6106_v20 = vld [vmem:[%s9193_s1 + $0x1cc] ss:$16 sps:$4 sm:$0xff]   ;;  %v6119_v48 = vld [vmem:[%s9193_s1 + $0x208] ss:$16 sps:$4 sm:$0xff]  }
  0x17   :  { %1304 = vmatpush1.bf16.msra.mxu0 %v6054_v22  ;;  %1433 = vmatpush1.bf16.msra.mxu1 %v6055_v23  ;;  %v36_v8 = vshrl.u32 %v31_v3, 16  ;;  %v39_v9 = vshll.u32 %v31_v3, 16  ;;  %v50_v10 = vshrl.u32 %v33_v4, 16  ;;  %v53_v13 = vshll.u32 %v33_v4, 16  ;;  %v6124_v49 = vld [vmem:[%s9193_s1 + $0x224] ss:$16 sps:$4 sm:$0xff]  }
  0x18   :  { %1305 = vmatprep.subr.bf16.mxu0 %v6056_v24  ;;  %1434 = vmatprep.subr.bf16.mxu1 %v6058_v25  ;;  %v48_v5 = vor.u32 %v46_v55, %v45_v61  ;;  %v62_v7 = vor.u32 %v60_v59, %v59_v1  ;;  %v6122_v55 = vld [vmem:[%s9193_s1 + $0x220] ss:$16 sps:$4 sm:$0xff]   ;;  %v6130_v58 = vld [vmem:[%s9193_s1 + $0x244] ss:$16 sps:$4 sm:$0xff]   ;;  %v6131_v62 = vld [vmem:[%s9193_s1 + $0x248] ss:$16 sps:$4 sm:$0xff]  }
  0x19   :  { %v38_v17 = vrot.slane %v36_v8, 7  ;;  %v52_v18 = vrot.slane %v50_v10, 7  ;;  %v6128_v61 = vld [vmem:[%s9193_s1 + $0x240] ss:$16 sps:$4 sm:$0xff]   ;;  %v6136_v63 = vld [vmem:[%s9193_s1 + $0x264] ss:$16 sps:$4 sm:$0xff]  }
  0x1a   :  { %v71_v12 = vsel %vm7133_vm4, 0, %v48_v5  ;;  %v73_v15 = vsel %vm7133_vm4, 0, %v62_v7  ;;  %v6134_v1 = vld [vmem:[%s9193_s1 + $0x260] ss:$16 sps:$4 sm:$0xff]   ;;  %v6137_v3 = vld [vmem:[%s9193_s1 + $0x268] ss:$16 sps:$4 sm:$0xff]  }
  0x1b   :  { %1306 = vmatpush1.bf16.msra.mxu0 %v6060_v26  ;;  %1435 = vmatpush1.bf16.msra.mxu1 %v6061_v27  ;;  %v78_v16 = vsel %vm7139_vm5, %v71_v12, 0  ;;  %v80_v21 = vsel %vm7139_vm5, %v73_v15, 0  ;;  %v41_v23 = vor.u32 %v39_v9, %v38_v17  ;;  %v55_v24 = vor.u32 %v53_v13, %v52_v18  ;;  %v6108_v26 = vld [vmem:[%s9193_s1 + $0x1c0] ss:$16 sps:$4 sm:$0xff]   ;;  %v6109_v27 = vld [vmem:[%s9193_s1 + $0x1c8] ss:$16 sps:$4 sm:$0xff]  }
  0x1c   :  { %1307 = vmatprep.subr.bf16.mxu0 %v6062_v28  ;;  %1436 = vmatprep.subr.bf16.mxu1 %v6064_v29  ;;  %v5370_v22 = vcombine.low %v78_v16, %v80_v21  ;;  %v91_v25 = vshll.u32 %v78_v16, 16  ;;  %v6110_v28 = vld [vmem:[%s9193_s1 + $0x1e4] ss:$16 sps:$4 sm:$0xff]   ;;  %v6112_v29 = vld [vmem:[%s9193_s1 + $0x1ec] ss:$16 sps:$4 sm:$0xff]  }
  0x1d   :  { %v6142_v4 = vld [vmem:[%s9193_s1 + $0x284] ss:$16 sps:$4 sm:$0xff]   ;;  %v6145_v5 = vld [vmem:[%s9193_s1 + $0x28c] ss:$16 sps:$4 sm:$0xff]   ;;  %v6140_v7 = vld [vmem:[%s9193_s1 + $0x280] ss:$16 sps:$4 sm:$0xff]  }
  0x1e   :  { %1325 = vmatprep.mubr.bf16.mxu0 %v5370_v22  ;;  %1454 = vmatprep.mubr.bf16.mxu1 %v5370_v22  ;;  %v6143_v8 = vld [vmem:[%s9193_s1 + $0x288] ss:$16 sps:$4 sm:$0xff]   ;;  %v6148_v9 = vld [vmem:[%s9193_s1 + $0x2a4] ss:$16 sps:$4 sm:$0xff]   ;;  %v6151_v10 = vld [vmem:[%s9193_s1 + $0x2ac] ss:$16 sps:$4 sm:$0xff]  }
  0x1f   :  { %1308 = vmatpush1.bf16.msra.mxu0 %v6066_v30  ;;  %1437 = vmatpush1.bf16.msra.mxu1 %v6067_v31  ;;  %v70_v30 = vsel %vm7133_vm4, 0, %v41_v23  ;;  %v72_v31 = vsel %vm7133_vm4, 0, %v55_v24  ;;  %v6149_v12 = vld [vmem:[%s9193_s1 + $0x2a8] ss:$16 sps:$4 sm:$0xff]   ;;  %v6154_v13 = vld [vmem:[%s9193_s1 + $0x2c4] ss:$16 sps:$4 sm:$0xff]  }
  0x20   :  { %1309 = vmatprep.subr.bf16.mxu0 %v6068_v32  ;;  %1438 = vmatprep.subr.bf16.mxu1 %v6070_v33  ;;  %v89_v32 = vshrl.u32 %v78_v16, 16  ;;  %v93_v33 = vrot.slane %v91_v25, 1  ;;  %v6152_v15 = vld [vmem:[%s9193_s1 + $0x2c0] ss:$16 sps:$4 sm:$0xff]   ;;  %v6160_v17 = vld [vmem:[%s9193_s1 + $0x2e4] ss:$16 sps:$4 sm:$0xff]  }
  0x21   :  { %v6163_v18 = vld [vmem:[%s9193_s1 + $0x2ec] ss:$16 sps:$4 sm:$0xff]   ;;  %v6164_v23 = vld [vmem:[%s9193_s1 + $0x300] ss:$16 sps:$4 sm:$0xff]   ;;  %v6167_v24 = vld [vmem:[%s9193_s1 + $0x308] ss:$16 sps:$4 sm:$0xff]  }
  0x22   :  { %v6169_v22 = vld [vmem:[%s9193_s1 + $0x30c] ss:$16 sps:$4 sm:$0xff]   ;;  %v6172_v25 = vld [vmem:[%s9193_s1 + $0x324] ss:$16 sps:$4 sm:$0xff]   ;;  %v6422_v6 = vld [vmem:[%s9195_s2 + $0x260] ss:$16 sps:$4 sm:$0xff]  }
  0x23   :  { %1310 = vmatpush1.bf16.msra.mxu0 %v6072_v34  ;;  %1439 = vmatpush1.bf16.msra.mxu1 %v6073_v35  ;;  %v103_v34 = vshrl.u32 %v80_v21, 16  ;;  %v105_v35 = vshll.u32 %v80_v21, 16 }
  0x24   :  { %1311 = vmatprep.subr.bf16.mxu0 %v6074_v36  ;;  %1440 = vmatprep.subr.bf16.mxu1 %v6076_v37  ;;  %v6114_v36 = vld [vmem:[%s9193_s1 + $0x1e0] ss:$16 sps:$4 sm:$0xff]   ;;  %v6115_v37 = vld [vmem:[%s9193_s1 + $0x1e8] ss:$16 sps:$4 sm:$0xff]  }
  0x27   :  { %1312 = vmatpush1.bf16.msra.mxu0 %v6078_v38  ;;  %1441 = vmatpush1.bf16.msra.mxu1 %v6079_v39  ;;  %v6118_v38 = vld [vmem:[%s9193_s1 + $0x204] ss:$16 sps:$4 sm:$0xff]   ;;  %v7190_v39 = vsel %vm7139_vm5, %v70_v30, 0  ;;  %v6181_v30 = vld [vmem:[%s9193_s1 + $0x34c] ss:$16 sps:$4 sm:$0xff]  }
  0x28   :  { %1313 = vmatprep.subr.bf16.mxu0 %v6080_v40  ;;  %1442 = vmatprep.subr.bf16.mxu1 %v6082_v41  ;;  %v7194_v40 = vsel %vm7139_vm5, %v72_v31, 0  ;;  %v107_v41 = vrot.slane %v105_v35, 1  ;;  %v113_v52 = vrot.slane %v7190_v39, 1  ;;  %v6176_v31 = vld [vmem:[%s9193_s1 + $0x340] ss:$16 sps:$4 sm:$0xff]  }
  0x29   :  { %v5369_v46 = vcombine.low %v7190_v39, %v7194_v40  ;;  %v115_v54 = vrot.slane %v7194_v40, 1  ;;  %v6182_v35 = vld [vmem:[%s9193_s1 + $0x360] ss:$16 sps:$4 sm:$0xff]  }
  0x2b   :  { %1314 = vmatpush1.bf16.msra.mxu0 %v6084_v42  ;;  %1443 = vmatpush1.bf16.msra.mxu1 %v6085_v43  ;;  %v6121_v42 = vld [vmem:[%s9193_s1 + $0x20c] ss:$16 sps:$4 sm:$0xff]   ;;  %v94_v43 = vor.u32 %v93_v33, %v89_v32  ;;  %v7226_v59 = vcombine.low %v113_v52, %v115_v54  ;;  %v6179_v32 = vld [vmem:[%s9193_s1 + $0x348] ss:$16 sps:$4 sm:$0xff]   ;;  %v6184_v33 = vld [vmem:[%s9193_s1 + $0x364] ss:$16 sps:$4 sm:$0xff]  }
  0x2c   :  { %1315 = vmatprep.subr.bf16.mxu0 %v6086_v44  ;;  %1444 = vmatprep.subr.bf16.mxu1 %v6088_v45  ;;  %v108_v44 = vor.u32 %v107_v41, %v103_v34  ;;  %v6116_v45 = vld [vmem:[%s9193_s1 + $0x200] ss:$16 sps:$4 sm:$0xff]   ;;  %v6187_v34 = vld [vmem:[%s9193_s1 + $0x36c] ss:$16 sps:$4 sm:$0xff]   ;;  %v96_v54 = vshrl.u32 %v7194_v40, 16 }
  0x2d   :  { %v6188_v41 = vld [vmem:[%s9193_s1 + $0x380] ss:$16 sps:$4 sm:$0xff]  }
  0x2e   :  { %v6200_v52 = vld [vmem:[%s9193_s1 + $0x3c0] ss:$16 sps:$4 sm:$0xff]  }
  0x2f   :  { %1316 = vmatpush1.bf16.msra.mxu0 %v6090_v47  ;;  %1445 = vmatpush1.bf16.msra.mxu1 %v6091_v50  ;;  %v114_v47 = vrot.slane %v78_v16, 1  ;;  %v6127_v50 = vld [vmem:[%s9193_s1 + $0x22c] ss:$16 sps:$4 sm:$0xff]   ;;  %v6155_v16 = vld [vmem:[%s9193_s1 + $0x2c8] ss:$16 sps:$4 sm:$0xff]  }
  0x30   :  { %1317 = vmatprep.subr.bf16.mxu0 %v6092_v51  ;;  %1446 = vmatprep.subr.bf16.mxu1 %v6094_v53  ;;  %v116_v51 = vrot.slane %v80_v21, 1  ;;  %v5372_v53 = vcombine.low %v94_v43, %v108_v44  ;;  %v6166_v21 = vld [vmem:[%s9193_s1 + $0x304] ss:$16 sps:$4 sm:$0xff]   ;;  %v6199_v44 = vld [vmem:[%s9193_s1 + $0x3ac] ss:$16 sps:$4 sm:$0xff]  }
  0x31   :  { %v6196_v43 = vld [vmem:[%s9193_s1 + $0x3a4] ss:$16 sps:$4 sm:$0xff]  }
  0x33   :  { %1318 = vmatpush1.bf16.msra.mxu0 %v6096_v56  ;;  %1447 = vmatpush1.bf16.msra.mxu1 %v6097_v57  ;;  %v7218_v56 = vcombine.low %v114_v47, %v116_v51  ;;  %v6125_v57 = vld [vmem:[%s9193_s1 + $0x228] ss:$16 sps:$4 sm:$0xff]   ;;  %v98_v47 = vshll.u32 %v7194_v40, 16  ;;  %v82_v51 = vshrl.u32 %v7190_v39, 16  ;;  %v6206_v40 = vld [vmem:[%s9193_s1 + $0x3e0] ss:$16 sps:$4 sm:$0xff]  }
  0x34   :  { %1319 = vmatprep.subr.bf16.mxu0 %v6098_v60  ;;  %1448 = vmatprep.subr.bf16.mxu1 %v6100_v0  ;;  %v6133_v60 = vld [vmem:[%s9193_s1 + $0x24c] ss:$16 sps:$4 sm:$0xff]  }
  0x35   :  { %v6139_v0 = vld [vmem:[%s9193_s1 + $0x26c] ss:$16 sps:$4 sm:$0xff]  }
  0x37   :  { %1320 = vmatpush1.bf16.msra.mxu0 %v6102_v11  ;;  %1449 = vmatpush1.bf16.msra.mxu1 %v6103_v14  ;;  %v6146_v11 = vld [vmem:[%s9193_s1 + $0x2a0] ss:$16 sps:$4 sm:$0xff]   ;;  %v6157_v14 = vld [vmem:[%s9193_s1 + $0x2cc] ss:$16 sps:$4 sm:$0xff]  }
  0x38   :  { %1321 = vmatprep.subr.bf16.mxu0 %v6104_v19  ;;  %1450 = vmatprep.subr.bf16.mxu1 %v6106_v20  ;;  %v6158_v19 = vld [vmem:[%s9193_s1 + $0x2e0] ss:$16 sps:$4 sm:$0xff]   ;;  %v6161_v20 = vld [vmem:[%s9193_s1 + $0x2e8] ss:$16 sps:$4 sm:$0xff]  }
  0x3b   :  { %1322 = vmatpush1.bf16.msra.mxu0 %v6108_v26  ;;  %1451 = vmatpush1.bf16.msra.mxu1 %v6109_v27  ;;  %v6175_v26 = vld [vmem:[%s9193_s1 + $0x32c] ss:$16 sps:$4 sm:$0xff]   ;;  %v6170_v27 = vld [vmem:[%s9193_s1 + $0x320] ss:$16 sps:$4 sm:$0xff]  }
  0x3c   :  { %1323 = vmatprep.subr.bf16.mxu0 %v6110_v28  ;;  %1452 = vmatprep.subr.bf16.mxu1 %v6112_v29  ;;  %v6173_v28 = vld [vmem:[%s9193_s1 + $0x328] ss:$16 sps:$4 sm:$0xff]   ;;  %v6178_v29 = vld [vmem:[%s9193_s1 + $0x344] ss:$16 sps:$4 sm:$0xff]  }
  0x3f   :  { %1324 = vmatpush1.bf16.msra.mxu0 %v6114_v36  ;;  %1453 = vmatpush1.bf16.msra.mxu1 %v6115_v37  ;;  %v6185_v36 = vld [vmem:[%s9193_s1 + $0x368] ss:$16 sps:$4 sm:$0xff]   ;;  %v6190_v37 = vld [vmem:[%s9193_s1 + $0x384] ss:$16 sps:$4 sm:$0xff]  }
  0x40   :  { %1336 = vmatprep.subr.bf16.mxu0 %v6118_v38  ;;  %1465 = vmatprep.subr.bf16.mxu1 %v6121_v42  ;;  %v6193_v38 = vld [vmem:[%s9193_s1 + $0x38c] ss:$16 sps:$4 sm:$0xff]   ;;  %v6191_v42 = vld [vmem:[%s9193_s1 + $0x388] ss:$16 sps:$4 sm:$0xff]  }
  0x42   :  { %1326 = vmatmul.mubr.bf16.vlgmr.msra.gmra.mrb[0].mxu0 %v5369_v46  ;;  %1455 = vmatmul.mubr.bf16.vlgmr.msra.gmra.mrb[0].mxu1 %v5369_v46  ;;  %v84_v46 = vshll.u32 %v7190_v39, 16  ;;  %v6211_v39 = vld [vmem:[%s9193_s1 + $0x3ec] ss:$16 sps:$4 sm:$0xff]  }
  0x43   :  { %1337 = vmatpush1.bf16.msra.mxu0 %v6116_v45  ;;  %1466 = vmatpush1.bf16.msra.mxu1 %v6119_v48  ;;  %v6194_v45 = vld [vmem:[%s9193_s1 + $0x3a0] ss:$16 sps:$4 sm:$0xff]   ;;  %v6197_v48 = vld [vmem:[%s9193_s1 + $0x3a8] ss:$16 sps:$4 sm:$0xff]  }
  0x44   :  { %1338 = vmatprep.subr.bf16.mxu0 %v6124_v49  ;;  %1467 = vmatprep.subr.bf16.mxu1 %v6127_v50  ;;  %v6202_v49 = vld [vmem:[%s9193_s1 + $0x3c4] ss:$16 sps:$4 sm:$0xff]   ;;  %v6205_v50 = vld [vmem:[%s9193_s1 + $0x3cc] ss:$16 sps:$4 sm:$0xff]  }
  0x45   :  { %1368 = vmatprep.mubr.bf16.mxu0 %v5372_v53  ;;  %1497 = vmatprep.mubr.bf16.mxu1 %v5372_v53  ;;  %v86_v53 = vrot.slane %v84_v46, 1  ;;  %v6275_v46 = vld [vmem:[%s9193_s1 + $0x548] ss:$16 sps:$4 sm:$0xff]  }
  0x47   :  { %1339 = vmatpush1.bf16.msra.mxu0 %v6122_v55  ;;  %1468 = vmatpush1.bf16.msra.mxu1 %v6125_v57  ;;  %v100_v55 = vrot.slane %v98_v47, 1  ;;  %v6203_v57 = vld [vmem:[%s9193_s1 + $0x3c8] ss:$16 sps:$4 sm:$0xff]   ;;  %v6280_v47 = vld [vmem:[%s9193_s1 + $0x564] ss:$16 sps:$4 sm:$0xff]  }
  0x48   :  { %1340 = vmatprep.subr.bf16.mxu0 %v6130_v58  ;;  %1469 = vmatprep.subr.bf16.mxu1 %v6133_v60  ;;  %v6208_v58 = vld [vmem:[%s9193_s1 + $0x3e4] ss:$16 sps:$4 sm:$0xff]   ;;  %v87_v60 = vor.u32 %v86_v53, %v82_v51  ;;  %v6284_v53 = vld [vmem:[%s9193_s1 + $0x580] ss:$16 sps:$4 sm:$0xff]  }
  0x49   :  { %v6286_v51 = vld [vmem:[%s9193_s1 + $0x584] ss:$16 sps:$4 sm:$0xff]  }
  0x4b   :  { %1341 = vmatpush1.bf16.msra.mxu0 %v6128_v61  ;;  %1470 = vmatpush1.bf16.msra.mxu1 %v6131_v62  ;;  %v101_v61 = vor.u32 %v100_v55, %v96_v54  ;;  %v6209_v62 = vld [vmem:[%s9193_s1 + $0x3e8] ss:$16 sps:$4 sm:$0xff]   ;;  %v6292_v55 = vld [vmem:[%s9193_s1 + $0x5a4] ss:$16 sps:$4 sm:$0xff]  }
  0x4c   :  { %1342 = vmatprep.subr.bf16.mxu0 %v6136_v63  ;;  %1471 = vmatprep.subr.bf16.mxu1 %v6139_v0  ;;  %v6214_v63 = vld [vmem:[%s9193_s1 + $0x404] ss:$16 sps:$4 sm:$0xff]   ;;  %v6217_v0 = vld [vmem:[%s9193_s1 + $0x40c] ss:$16 sps:$4 sm:$0xff]   ;;  %v6287_v54 = vld [vmem:[%s9193_s1 + $0x588] ss:$16 sps:$4 sm:$0xff]  }
  0x4f   :  { %1343 = vmatpush1.bf16.msra.mxu0 %v6134_v1  ;;  %1472 = vmatpush1.bf16.msra.mxu1 %v6137_v3  ;;  %v6212_v1 = vld [vmem:[%s9193_s1 + $0x400] ss:$16 sps:$4 sm:$0xff]   ;;  %v5371_v3 = vcombine.low %v87_v60, %v101_v61  ;;  %v6301_v60 = vld [vmem:[%s9193_s1 + $0x5cc] ss:$16 sps:$4 sm:$0xff]  }
  0x50   :  { %1344 = vmatprep.subr.bf16.mxu0 %v6142_v4  ;;  %1473 = vmatprep.subr.bf16.mxu1 %v6145_v5  ;;  %v6215_v4 = vld [vmem:[%s9193_s1 + $0x408] ss:$16 sps:$4 sm:$0xff]   ;;  %v6220_v5 = vld [vmem:[%s9193_s1 + $0x424] ss:$16 sps:$4 sm:$0xff]   ;;  %v6296_v61 = vld [vmem:[%s9193_s1 + $0x5c0] ss:$16 sps:$4 sm:$0xff]  }
  0x53   :  { %1345 = vmatpush1.bf16.msra.mxu0 %v6140_v7  ;;  %1474 = vmatpush1.bf16.msra.mxu1 %v6143_v8  ;;  %v6223_v7 = vld [vmem:[%s9193_s1 + $0x42c] ss:$16 sps:$4 sm:$0xff]   ;;  %v6218_v8 = vld [vmem:[%s9193_s1 + $0x420] ss:$16 sps:$4 sm:$0xff]  }
  0x54   :  { %1346 = vmatprep.subr.bf16.mxu0 %v6148_v9  ;;  %1475 = vmatprep.subr.bf16.mxu1 %v6151_v10  ;;  %v6221_v9 = vld [vmem:[%s9193_s1 + $0x428] ss:$16 sps:$4 sm:$0xff]   ;;  %v6226_v10 = vld [vmem:[%s9193_s1 + $0x444] ss:$16 sps:$4 sm:$0xff]  }
  0x57   :  { %1347 = vmatpush1.bf16.msra.mxu0 %v6146_v11  ;;  %1476 = vmatpush1.bf16.msra.mxu1 %v6149_v12  ;;  %v6229_v11 = vld [vmem:[%s9193_s1 + $0x44c] ss:$16 sps:$4 sm:$0xff]   ;;  %v6224_v12 = vld [vmem:[%s9193_s1 + $0x440] ss:$16 sps:$4 sm:$0xff]  }
  0x58   :  { %1348 = vmatprep.subr.bf16.mxu0 %v6154_v13  ;;  %1477 = vmatprep.subr.bf16.mxu1 %v6157_v14  ;;  %v6227_v13 = vld [vmem:[%s9193_s1 + $0x448] ss:$16 sps:$4 sm:$0xff]   ;;  %v6232_v14 = vld [vmem:[%s9193_s1 + $0x464] ss:$16 sps:$4 sm:$0xff]  }
  0x5b   :  { %1349 = vmatpush1.bf16.msra.mxu0 %v6152_v15  ;;  %1478 = vmatpush1.bf16.msra.mxu1 %v6155_v16  ;;  %v6230_v15 = vld [vmem:[%s9193_s1 + $0x460] ss:$16 sps:$4 sm:$0xff]   ;;  %v6233_v16 = vld [vmem:[%s9193_s1 + $0x468] ss:$16 sps:$4 sm:$0xff]  }
  0x5c   :  { %1350 = vmatprep.subr.bf16.mxu0 %v6160_v17  ;;  %1479 = vmatprep.subr.bf16.mxu1 %v6163_v18  ;;  %v6238_v17 = vld [vmem:[%s9193_s1 + $0x484] ss:$16 sps:$4 sm:$0xff]   ;;  %v6241_v18 = vld [vmem:[%s9193_s1 + $0x48c] ss:$16 sps:$4 sm:$0xff]  }
  0x5f   :  { %1351 = vmatpush1.bf16.msra.mxu0 %v6158_v19  ;;  %1480 = vmatpush1.bf16.msra.mxu1 %v6161_v20  ;;  %v6236_v19 = vld [vmem:[%s9193_s1 + $0x480] ss:$16 sps:$4 sm:$0xff]   ;;  %v6239_v20 = vld [vmem:[%s9193_s1 + $0x488] ss:$16 sps:$4 sm:$0xff]  }
  0x60   :  { %1352 = vmatprep.subr.bf16.mxu0 %v6166_v21  ;;  %1481 = vmatprep.subr.bf16.mxu1 %v6169_v22  ;;  %v6244_v21 = vld [vmem:[%s9193_s1 + $0x4a4] ss:$16 sps:$4 sm:$0xff]   ;;  %v6247_v22 = vld [vmem:[%s9193_s1 + $0x4ac] ss:$16 sps:$4 sm:$0xff]  }
  0x63   :  { %1353 = vmatpush1.bf16.msra.mxu0 %v6164_v23  ;;  %1482 = vmatpush1.bf16.msra.mxu1 %v6167_v24  ;;  %v6242_v23 = vld [vmem:[%s9193_s1 + $0x4a0] ss:$16 sps:$4 sm:$0xff]   ;;  %v6245_v24 = vld [vmem:[%s9193_s1 + $0x4a8] ss:$16 sps:$4 sm:$0xff]  }
  0x64   :  { %1354 = vmatprep.subr.bf16.mxu0 %v6172_v25  ;;  %1483 = vmatprep.subr.bf16.mxu1 %v6175_v26  ;;  %v6250_v25 = vld [vmem:[%s9193_s1 + $0x4c4] ss:$16 sps:$4 sm:$0xff]   ;;  %v6253_v26 = vld [vmem:[%s9193_s1 + $0x4cc] ss:$16 sps:$4 sm:$0xff]  }
  0x67   :  { %1355 = vmatpush1.bf16.msra.mxu0 %v6170_v27  ;;  %1484 = vmatpush1.bf16.msra.mxu1 %v6173_v28  ;;  %v6248_v27 = vld [vmem:[%s9193_s1 + $0x4c0] ss:$16 sps:$4 sm:$0xff]   ;;  %v6251_v28 = vld [vmem:[%s9193_s1 + $0x4c8] ss:$16 sps:$4 sm:$0xff]  }
  0x68   :  { %1356 = vmatprep.subr.bf16.mxu0 %v6178_v29  ;;  %1485 = vmatprep.subr.bf16.mxu1 %v6181_v30  ;;  %v6256_v29 = vld [vmem:[%s9193_s1 + $0x4e4] ss:$16 sps:$4 sm:$0xff]   ;;  %v6259_v30 = vld [vmem:[%s9193_s1 + $0x4ec] ss:$16 sps:$4 sm:$0xff]  }
  0x6b   :  { %1357 = vmatpush1.bf16.msra.mxu0 %v6176_v31  ;;  %1486 = vmatpush1.bf16.msra.mxu1 %v6179_v32  ;;  %v6254_v31 = vld [vmem:[%s9193_s1 + $0x4e0] ss:$16 sps:$4 sm:$0xff]   ;;  %v6257_v32 = vld [vmem:[%s9193_s1 + $0x4e8] ss:$16 sps:$4 sm:$0xff]  }
  0x6c   :  { %1358 = vmatprep.subr.bf16.mxu0 %v6184_v33  ;;  %1487 = vmatprep.subr.bf16.mxu1 %v6187_v34  ;;  %v6262_v33 = vld [vmem:[%s9193_s1 + $0x504] ss:$16 sps:$4 sm:$0xff]   ;;  %v6265_v34 = vld [vmem:[%s9193_s1 + $0x50c] ss:$16 sps:$4 sm:$0xff]  }
  0x6f   :  { %1359 = vmatpush1.bf16.msra.mxu0 %v6182_v35  ;;  %1488 = vmatpush1.bf16.msra.mxu1 %v6185_v36  ;;  %v6260_v35 = vld [vmem:[%s9193_s1 + $0x500] ss:$16 sps:$4 sm:$0xff]   ;;  %v6263_v36 = vld [vmem:[%s9193_s1 + $0x508] ss:$16 sps:$4 sm:$0xff]  }
  0x70   :  { %1360 = vmatprep.subr.bf16.mxu0 %v6190_v37  ;;  %1489 = vmatprep.subr.bf16.mxu1 %v6193_v38  ;;  %v6268_v37 = vld [vmem:[%s9193_s1 + $0x524] ss:$16 sps:$4 sm:$0xff]   ;;  %v6271_v38 = vld [vmem:[%s9193_s1 + $0x52c] ss:$16 sps:$4 sm:$0xff]  }
  0x73   :  { %1361 = vmatpush1.bf16.msra.mxu0 %v6188_v41  ;;  %1490 = vmatpush1.bf16.msra.mxu1 %v6191_v42  ;;  %v6266_v41 = vld [vmem:[%s9193_s1 + $0x520] ss:$16 sps:$4 sm:$0xff]   ;;  %v6269_v42 = vld [vmem:[%s9193_s1 + $0x528] ss:$16 sps:$4 sm:$0xff]  }
  0x74   :  { %1362 = vmatprep.subr.bf16.mxu0 %v6196_v43  ;;  %1491 = vmatprep.subr.bf16.mxu1 %v6199_v44  ;;  %v6274_v43 = vld [vmem:[%s9193_s1 + $0x544] ss:$16 sps:$4 sm:$0xff]   ;;  %v6277_v44 = vld [vmem:[%s9193_s1 + $0x54c] ss:$16 sps:$4 sm:$0xff]  }
  0x77   :  { %1363 = vmatpush1.bf16.msra.mxu0 %v6194_v45  ;;  %1492 = vmatpush1.bf16.msra.mxu1 %v6197_v48  ;;  %v6272_v45 = vld [vmem:[%s9193_s1 + $0x540] ss:$16 sps:$4 sm:$0xff]   ;;  %v6283_v48 = vld [vmem:[%s9193_s1 + $0x56c] ss:$16 sps:$4 sm:$0xff]  }
  0x78   :  { %1364 = vmatprep.subr.bf16.mxu0 %v6202_v49  ;;  %1493 = vmatprep.subr.bf16.mxu1 %v6205_v50  ;;  %v6278_v49 = vld [vmem:[%s9193_s1 + $0x560] ss:$16 sps:$4 sm:$0xff]   ;;  %v6281_v50 = vld [vmem:[%s9193_s1 + $0x568] ss:$16 sps:$4 sm:$0xff]  }
  0x7b   :  { %1365 = vmatpush1.bf16.msra.mxu0 %v6200_v52  ;;  %1494 = vmatpush1.bf16.msra.mxu1 %v6203_v57  ;;  %v6289_v52 = vld [vmem:[%s9193_s1 + $0x58c] ss:$16 sps:$4 sm:$0xff]  }
  0x7c   :  { %1366 = vmatprep.subr.bf16.mxu0 %v6208_v58  ;;  %1495 = vmatprep.subr.bf16.mxu1 %v6211_v39  ;;  %v6295_v57 = vld [vmem:[%s9193_s1 + $0x5ac] ss:$16 sps:$4 sm:$0xff]   ;;  %v6290_v58 = vld [vmem:[%s9193_s1 + $0x5a0] ss:$16 sps:$4 sm:$0xff]   ;;  %v6293_v39 = vld [vmem:[%s9193_s1 + $0x5a8] ss:$16 sps:$4 sm:$0xff]  }
  0x7f   :  { %1367 = vmatpush1.bf16.msra.mxu0 %v6206_v40  ;;  %1496 = vmatpush1.bf16.msra.mxu1 %v6209_v62  ;;  %v6298_v40 = vld [vmem:[%s9193_s1 + $0x5c4] ss:$16 sps:$4 sm:$0xff]   ;;  %v6299_v62 = vld [vmem:[%s9193_s1 + $0x5c8] ss:$16 sps:$4 sm:$0xff]  }
  0x80   :  { %1379 = vmatprep.subr.bf16.mxu0 %v6214_v63  ;;  %1508 = vmatprep.subr.bf16.mxu1 %v6217_v0  ;;  %v6304_v63 = vld [vmem:[%s9193_s1 + $0x5e4] ss:$16 sps:$4 sm:$0xff]   ;;  %v6307_v0 = vld [vmem:[%s9193_s1 + $0x5ec] ss:$16 sps:$4 sm:$0xff]  }
  0x82   :  { %1369 = vmatmul.mubr.bf16.vlgmr.msra.gmra.mrb[0].mxu0 %v5371_v3  ;;  %1498 = vmatmul.mubr.bf16.vlgmr.msra.gmra.mrb[0].mxu1 %v5371_v3  ;;  %v6305_v3 = vld [vmem:[%s9193_s1 + $0x5e8] ss:$16 sps:$4 sm:$0xff]  }
  0x83   :  { %1380 = vmatpush1.bf16.msra.mxu0 %v6212_v1  ;;  %1509 = vmatpush1.bf16.msra.mxu1 %v6215_v4  ;;  %v6302_v1 = vld [vmem:[%s9193_s1 + $0x5e0] ss:$16 sps:$4 sm:$0xff]  }
  0x84   :  { %1381 = vmatprep.subr.bf16.mxu0 %v6220_v5  ;;  %1510 = vmatprep.subr.bf16.mxu1 %v6223_v7 }
  0x85   :  { %1411 = vmatprep.mubr.bf16.mxu0 %v7218_v56  ;;  %1540 = vmatprep.mubr.bf16.mxu1 %v7218_v56  ;;  %v6235_v56 = vld [vmem:[%s9193_s1 + $0x46c] ss:$16 sps:$4 sm:$0xff]  }
  0x87   :  { %1382 = vmatpush1.bf16.msra.mxu0 %v6218_v8  ;;  %1511 = vmatpush1.bf16.msra.mxu1 %v6221_v9 }
  0x88   :  { %1383 = vmatprep.subr.bf16.mxu0 %v6226_v10  ;;  %1512 = vmatprep.subr.bf16.mxu1 %v6229_v11 }
  0x8b   :  { %1384 = vmatpush1.bf16.msra.mxu0 %v6224_v12  ;;  %1513 = vmatpush1.bf16.msra.mxu1 %v6227_v13 }
  0x8c   :  { %1385 = vmatprep.subr.bf16.mxu0 %v6232_v14  ;;  %1514 = vmatprep.subr.bf16.mxu1 %v6235_v56 }
  0x8f   :  { %1386 = vmatpush1.bf16.msra.mxu0 %v6230_v15  ;;  %1515 = vmatpush1.bf16.msra.mxu1 %v6233_v16 }
  0x90   :  { %1387 = vmatprep.subr.bf16.mxu0 %v6238_v17  ;;  %1516 = vmatprep.subr.bf16.mxu1 %v6241_v18 }
  0x93   :  { %1388 = vmatpush1.bf16.msra.mxu0 %v6236_v19  ;;  %1517 = vmatpush1.bf16.msra.mxu1 %v6239_v20  ;;  %v6310_v19 = vld [vmem:[%s9195_s2 + $0x4] ss:$16 sps:$4 sm:$0xff]   ;;  %v6308_v20 = vld [vmem:[%s9195_s2] ss:$16 sps:$4 sm:$0xff]  }
  0x94   :  { %1389 = vmatprep.subr.bf16.mxu0 %v6244_v21  ;;  %1518 = vmatprep.subr.bf16.mxu1 %v6247_v22  ;;  %v6311_v21 = vld [vmem:[%s9195_s2 + $0x8] ss:$16 sps:$4 sm:$0xff]   ;;  %v6313_v22 = vld [vmem:[%s9195_s2 + $0xc] ss:$16 sps:$4 sm:$0xff]  }
  0x97   :  { %1390 = vmatpush1.bf16.msra.mxu0 %v6242_v23  ;;  %1519 = vmatpush1.bf16.msra.mxu1 %v6245_v24  ;;  %v6316_v23 = vld [vmem:[%s9195_s2 + $0x24] ss:$16 sps:$4 sm:$0xff]   ;;  %v6319_v24 = vld [vmem:[%s9195_s2 + $0x2c] ss:$16 sps:$4 sm:$0xff]  }
  0x98   :  { %1391 = vmatprep.subr.bf16.mxu0 %v6250_v25  ;;  %1520 = vmatprep.subr.bf16.mxu1 %v6253_v26  ;;  %v6314_v25 = vld [vmem:[%s9195_s2 + $0x20] ss:$16 sps:$4 sm:$0xff]   ;;  %v6317_v26 = vld [vmem:[%s9195_s2 + $0x28] ss:$16 sps:$4 sm:$0xff]  }
  0x9b   :  { %1392 = vmatpush1.bf16.msra.mxu0 %v6248_v27  ;;  %1521 = vmatpush1.bf16.msra.mxu1 %v6251_v28  ;;  %v6322_v27 = vld [vmem:[%s9195_s2 + $0x44] ss:$16 sps:$4 sm:$0xff]   ;;  %v6325_v28 = vld [vmem:[%s9195_s2 + $0x4c] ss:$16 sps:$4 sm:$0xff]  }
  0x9c   :  { %1393 = vmatprep.subr.bf16.mxu0 %v6256_v29  ;;  %1522 = vmatprep.subr.bf16.mxu1 %v6259_v30  ;;  %v6320_v29 = vld [vmem:[%s9195_s2 + $0x40] ss:$16 sps:$4 sm:$0xff]   ;;  %v6323_v30 = vld [vmem:[%s9195_s2 + $0x48] ss:$16 sps:$4 sm:$0xff]  }
  0x9f   :  { %1394 = vmatpush1.bf16.msra.mxu0 %v6254_v31  ;;  %1523 = vmatpush1.bf16.msra.mxu1 %v6257_v32  ;;  %v6328_v31 = vld [vmem:[%s9195_s2 + $0x64] ss:$16 sps:$4 sm:$0xff]   ;;  %v6331_v32 = vld [vmem:[%s9195_s2 + $0x6c] ss:$16 sps:$4 sm:$0xff]  }
  0xa0   :  { %1395 = vmatprep.subr.bf16.mxu0 %v6262_v33  ;;  %1524 = vmatprep.subr.bf16.mxu1 %v6265_v34  ;;  %v6326_v33 = vld [vmem:[%s9195_s2 + $0x60] ss:$16 sps:$4 sm:$0xff]   ;;  %v6329_v34 = vld [vmem:[%s9195_s2 + $0x68] ss:$16 sps:$4 sm:$0xff]  }
  0xa3   :  { %1396 = vmatpush1.bf16.msra.mxu0 %v6260_v35  ;;  %1525 = vmatpush1.bf16.msra.mxu1 %v6263_v36  ;;  %v6334_v35 = vld [vmem:[%s9195_s2 + $0x84] ss:$16 sps:$4 sm:$0xff]   ;;  %v6337_v36 = vld [vmem:[%s9195_s2 + $0x8c] ss:$16 sps:$4 sm:$0xff]  }
  0xa4   :  { %1397 = vmatprep.subr.bf16.mxu0 %v6268_v37  ;;  %1526 = vmatprep.subr.bf16.mxu1 %v6271_v38  ;;  %v6332_v37 = vld [vmem:[%s9195_s2 + $0x80] ss:$16 sps:$4 sm:$0xff]   ;;  %v6335_v38 = vld [vmem:[%s9195_s2 + $0x88] ss:$16 sps:$4 sm:$0xff]  }
  0xa7   :  { %1398 = vmatpush1.bf16.msra.mxu0 %v6266_v41  ;;  %1527 = vmatpush1.bf16.msra.mxu1 %v6269_v42  ;;  %v6340_v41 = vld [vmem:[%s9195_s2 + $0xa4] ss:$16 sps:$4 sm:$0xff]   ;;  %v6343_v42 = vld [vmem:[%s9195_s2 + $0xac] ss:$16 sps:$4 sm:$0xff]  }
  0xa8   :  { %1399 = vmatprep.subr.bf16.mxu0 %v6274_v43  ;;  %1528 = vmatprep.subr.bf16.mxu1 %v6277_v44  ;;  %v6338_v43 = vld [vmem:[%s9195_s2 + $0xa0] ss:$16 sps:$4 sm:$0xff]   ;;  %v6341_v44 = vld [vmem:[%s9195_s2 + $0xa8] ss:$16 sps:$4 sm:$0xff]  }
  0xab   :  { %1400 = vmatpush1.bf16.msra.mxu0 %v6272_v45  ;;  %1529 = vmatpush1.bf16.msra.mxu1 %v6275_v46  ;;  %v6346_v45 = vld [vmem:[%s9195_s2 + $0xc4] ss:$16 sps:$4 sm:$0xff]   ;;  %v6349_v46 = vld [vmem:[%s9195_s2 + $0xcc] ss:$16 sps:$4 sm:$0xff]  }
  0xac   :  { %1401 = vmatprep.subr.bf16.mxu0 %v6280_v47  ;;  %1530 = vmatprep.subr.bf16.mxu1 %v6283_v48  ;;  %v6344_v47 = vld [vmem:[%s9195_s2 + $0xc0] ss:$16 sps:$4 sm:$0xff]   ;;  %v6347_v48 = vld [vmem:[%s9195_s2 + $0xc8] ss:$16 sps:$4 sm:$0xff]  }
  0xaf   :  { %1402 = vmatpush1.bf16.msra.mxu0 %v6278_v49  ;;  %1531 = vmatpush1.bf16.msra.mxu1 %v6281_v50  ;;  %v6352_v49 = vld [vmem:[%s9195_s2 + $0xe4] ss:$16 sps:$4 sm:$0xff]   ;;  %v6355_v50 = vld [vmem:[%s9195_s2 + $0xec] ss:$16 sps:$4 sm:$0xff]  }
  0xb0   :  { %1403 = vmatprep.subr.bf16.mxu0 %v6286_v51  ;;  %1532 = vmatprep.subr.bf16.mxu1 %v6289_v52  ;;  %v6350_v51 = vld [vmem:[%s9195_s2 + $0xe0] ss:$16 sps:$4 sm:$0xff]   ;;  %v6353_v52 = vld [vmem:[%s9195_s2 + $0xe8] ss:$16 sps:$4 sm:$0xff]  }
  0xb3   :  { %1404 = vmatpush1.bf16.msra.mxu0 %v6284_v53  ;;  %1533 = vmatpush1.bf16.msra.mxu1 %v6287_v54  ;;  %v6358_v53 = vld [vmem:[%s9195_s2 + $0x104] ss:$16 sps:$4 sm:$0xff]   ;;  %v6361_v54 = vld [vmem:[%s9195_s2 + $0x10c] ss:$16 sps:$4 sm:$0xff]  }
  0xb4   :  { %1405 = vmatprep.subr.bf16.mxu0 %v6292_v55  ;;  %1534 = vmatprep.subr.bf16.mxu1 %v6295_v57  ;;  %v6356_v55 = vld [vmem:[%s9195_s2 + $0x100] ss:$16 sps:$4 sm:$0xff]   ;;  %v6359_v57 = vld [vmem:[%s9195_s2 + $0x108] ss:$16 sps:$4 sm:$0xff]  }
  0xb7   :  { %1406 = vmatpush1.bf16.msra.mxu0 %v6290_v58  ;;  %1535 = vmatpush1.bf16.msra.mxu1 %v6293_v39  ;;  %v6364_v58 = vld [vmem:[%s9195_s2 + $0x124] ss:$16 sps:$4 sm:$0xff]   ;;  %v6367_v39 = vld [vmem:[%s9195_s2 + $0x12c] ss:$16 sps:$4 sm:$0xff]  }
  0xb8   :  { %1407 = vmatprep.subr.bf16.mxu0 %v6298_v40  ;;  %1536 = vmatprep.subr.bf16.mxu1 %v6301_v60  ;;  %v6362_v40 = vld [vmem:[%s9195_s2 + $0x120] ss:$16 sps:$4 sm:$0xff]   ;;  %v6365_v60 = vld [vmem:[%s9195_s2 + $0x128] ss:$16 sps:$4 sm:$0xff]  }
  0xbb   :  { %1408 = vmatpush1.bf16.msra.mxu0 %v6296_v61  ;;  %1537 = vmatpush1.bf16.msra.mxu1 %v6299_v62  ;;  %v6370_v61 = vld [vmem:[%s9195_s2 + $0x144] ss:$16 sps:$4 sm:$0xff]   ;;  %v6373_v62 = vld [vmem:[%s9195_s2 + $0x14c] ss:$16 sps:$4 sm:$0xff]  }
  0xbc   :  { %1409 = vmatprep.subr.bf16.mxu0 %v6304_v63  ;;  %1538 = vmatprep.subr.bf16.mxu1 %v6307_v0  ;;  %v6368_v63 = vld [vmem:[%s9195_s2 + $0x140] ss:$16 sps:$4 sm:$0xff]   ;;  %v6371_v0 = vld [vmem:[%s9195_s2 + $0x148] ss:$16 sps:$4 sm:$0xff]  }
  0xbf   :  { %1410 = vmatpush1.bf16.msra.mxu0 %v6302_v1  ;;  %1539 = vmatpush1.bf16.msra.mxu1 %v6305_v3  ;;  %v6374_v1 = vld [vmem:[%s9195_s2 + $0x160] ss:$16 sps:$4 sm:$0xff]   ;;  %v6376_v3 = vld [vmem:[%s9195_s2 + $0x164] ss:$16 sps:$4 sm:$0xff]  }
  0xc0   :  { %4444 = vmatprep.subr.bf16.mxu0 %v6310_v19  ;;  %4702 = vmatprep.subr.bf16.mxu1 %v6313_v22  ;;  %v6391_v19 = vld [vmem:[%s9195_s2 + $0x1ac] ss:$16 sps:$4 sm:$0xff]  }
  0xc1   :  { %v6397_v22 = vld [vmem:[%s9195_s2 + $0x1cc] ss:$16 sps:$4 sm:$0xff]  }
  0xc2   :  { %1412 = vmatmul.mubr.bf16.vlgmr.msra.gmra.mrb[0].mxu0 %v7226_v59  ;;  %1541 = vmatmul.mubr.bf16.vlgmr.msra.gmra.mrb[0].mxu1 %v7226_v59 }
  0xc3   :  { %4445 = vmatpush1.bf16.msra.mxu0 %v6308_v20  ;;  %4703 = vmatpush1.bf16.msra.mxu1 %v6311_v21  ;;  %v6394_v20 = vld [vmem:[%s9195_s2 + $0x1c4] ss:$16 sps:$4 sm:$0xff]   ;;  %v6389_v21 = vld [vmem:[%s9195_s2 + $0x1a8] ss:$16 sps:$4 sm:$0xff]  }
  0xc4   :  { %4446 = vmatprep.subr.bf16.mxu0 %v6316_v23  ;;  %4704 = vmatprep.subr.bf16.mxu1 %v6319_v24  ;;  %v6392_v23 = vld [vmem:[%s9195_s2 + $0x1c0] ss:$16 sps:$4 sm:$0xff]   ;;  %v6400_v24 = vld [vmem:[%s9195_s2 + $0x1e4] ss:$16 sps:$4 sm:$0xff]  }
  0xc7   :  { %4447 = vmatpush1.bf16.msra.mxu0 %v6314_v25  ;;  %4705 = vmatpush1.bf16.msra.mxu1 %v6317_v26  ;;  %v6395_v25 = vld [vmem:[%s9195_s2 + $0x1c8] ss:$16 sps:$4 sm:$0xff]   ;;  %v6403_v26 = vld [vmem:[%s9195_s2 + $0x1ec] ss:$16 sps:$4 sm:$0xff]  }
  0xc8   :  { %4448 = vmatprep.subr.bf16.mxu0 %v6322_v27  ;;  %4706 = vmatprep.subr.bf16.mxu1 %v6325_v28  ;;  %v6398_v27 = vld [vmem:[%s9195_s2 + $0x1e0] ss:$16 sps:$4 sm:$0xff]   ;;  %v6401_v28 = vld [vmem:[%s9195_s2 + $0x1e8] ss:$16 sps:$4 sm:$0xff]  }
  0xcb   :  { %4449 = vmatpush1.bf16.msra.mxu0 %v6320_v29  ;;  %4707 = vmatpush1.bf16.msra.mxu1 %v6323_v30  ;;  %v6406_v29 = vld [vmem:[%s9195_s2 + $0x204] ss:$16 sps:$4 sm:$0xff]   ;;  %v6409_v30 = vld [vmem:[%s9195_s2 + $0x20c] ss:$16 sps:$4 sm:$0xff]  }
  0xcc   :  { %4450 = vmatprep.subr.bf16.mxu0 %v6328_v31  ;;  %4708 = vmatprep.subr.bf16.mxu1 %v6331_v32 }
  0xcf   :  { %4451 = vmatpush1.bf16.msra.mxu0 %v6326_v33  ;;  %4709 = vmatpush1.bf16.msra.mxu1 %v6329_v34 }
  0xd0   :  { %4452 = vmatprep.subr.bf16.mxu0 %v6334_v35  ;;  %4710 = vmatprep.subr.bf16.mxu1 %v6337_v36 }
  0xd3   :  { %4453 = vmatpush1.bf16.msra.mxu0 %v6332_v37  ;;  %4711 = vmatpush1.bf16.msra.mxu1 %v6335_v38 }
  0xd4   :  { %4454 = vmatprep.subr.bf16.mxu0 %v6340_v41  ;;  %4712 = vmatprep.subr.bf16.mxu1 %v6343_v42 }
  0xd7   :  { %4455 = vmatpush1.bf16.msra.mxu0 %v6338_v43  ;;  %4713 = vmatpush1.bf16.msra.mxu1 %v6341_v44 }
  0xd8   :  { %4456 = vmatprep.subr.bf16.mxu0 %v6346_v45  ;;  %4714 = vmatprep.subr.bf16.mxu1 %v6349_v46 }
  0xdb   :  { %4457 = vmatpush1.bf16.msra.mxu0 %v6344_v47  ;;  %4715 = vmatpush1.bf16.msra.mxu1 %v6347_v48 }
  0xdc   :  { %4458 = vmatprep.subr.bf16.mxu0 %v6352_v49  ;;  %4716 = vmatprep.subr.bf16.mxu1 %v6355_v50 }
  0xdf   :  { %4459 = vmatpush1.bf16.msra.mxu0 %v6350_v51  ;;  %4717 = vmatpush1.bf16.msra.mxu1 %v6353_v52 }
  0xe0   :  { %4460 = vmatprep.subr.bf16.mxu0 %v6358_v53  ;;  %4718 = vmatprep.subr.bf16.mxu1 %v6361_v54 }
  0xe3   :  { %4461 = vmatpush1.bf16.msra.mxu0 %v6356_v55  ;;  %4719 = vmatpush1.bf16.msra.mxu1 %v6359_v57 }
  0xe4   :  { %4462 = vmatprep.subr.bf16.mxu0 %v6364_v58  ;;  %4720 = vmatprep.subr.bf16.mxu1 %v6367_v39 }
  0xe7   :  { %4463 = vmatpush1.bf16.msra.mxu0 %v6362_v40  ;;  %4721 = vmatpush1.bf16.msra.mxu1 %v6365_v60 }
  0xe8   :  { %4464 = vmatprep.subr.bf16.mxu0 %v6370_v61  ;;  %4722 = vmatprep.subr.bf16.mxu1 %v6373_v62 }
  0xeb   :  { %4465 = vmatpush1.bf16.msra.mxu0 %v6368_v63  ;;  %4723 = vmatpush1.bf16.msra.mxu1 %v6371_v0 }
  0xec   :  { %4466 = vmatprep.subr.bf16.mxu0 %v6376_v3 }
  0xef   :  { %4467 = vmatpush1.bf16.msra.mxu0 %v6374_v1 }
 0x195   :  { %v7593_v4 = vpop.f32.mrb[0].mxu0  ;;  %v7595_v5 = vpop.f32.mrb[0].mxu1 }
 0x196   :  { %v7597_v7 = vpop.f32.mrb[1].mxu1  ;;  %1551 = vadd.xlane.f32.xlu0 %v7593_v4  ;;  %v7600_v8 = vpop.f32.mrb[1].mxu0  ;;  %v1567_v59 = vmul.f32 %v7593_v4, %v7593_v4  ;;  %v1663_v14 = vmul.f32 %v7595_v5, %v7595_v5 }
 0x197   :  { %v7602_v9 = vpop.f32.mrb[2].mxu1  ;;  %1599 = vadd.xlane.f32.xlu1 %v7600_v8  ;;  %v7605_v10 = vpop.f32.mrb[2].mxu0  ;;  %v1615_v15 = vmul.f32 %v7600_v8, %v7600_v8  ;;  %v1711_v17 = vmul.f32 %v7597_v7, %v7597_v7 }
 0x198   :  { %v7607_v11 = vpop.f32.mrb[3].mxu0  ;;  %v7609_v12 = vpop.f32.mrb[3].mxu1  ;;  %v1568_v13 = vmul.f32 %v7605_v10, %v7605_v10  ;;  %v1664_v56 = vmul.f32 %v7602_v9, %v7602_v9 }
 0x199   :  { %v1616_v16 = vmul.f32 %v7607_v11, %v7607_v11  ;;  %v1712_v18 = vmul.f32 %v7609_v12, %v7609_v12 }
 0x19a   :  { %1647 = vadd.xlane.f32.xlu0 %v7595_v5 }
 0x19b   :  { %1649 = vadd.xlane.f32.xlu1 %v7602_v9 }
 0x19e   :  { %1695 = vadd.xlane.f32.xlu0 %v7597_v7 }
 0x19f   :  { %1601 = vadd.xlane.f32.xlu1 %v7607_v11 }
 0x1a2   :  { %1553 = vadd.xlane.f32.xlu0 %v7605_v10 }
 0x1a3   :  { %1697 = vadd.xlane.f32.xlu1 %v7609_v12 }
 0x1a6   :  { %1569 = vadd.xlane.f32.xlu0 %v1567_v59  ;;  %v6377_v59 = vld [vmem:[%s9195_s2 + $0x168] ss:$16 sps:$4 sm:$0xff]  }
 0x1a7   :  { %1571 = vadd.xlane.f32.xlu1 %v1568_v13  ;;  %v6379_v13 = vld [vmem:[%s9195_s2 + $0x16c] ss:$16 sps:$4 sm:$0xff]  }
 0x1a8   :  { %4724 = vmatprep.subr.bf16.mxu1 %v6379_v13 }
 0x1a9   :  { %4725 = vmatpush1.bf16.msra.mxu1 %v6377_v59 }
 0x1aa   :  { %1665 = vadd.xlane.f32.xlu0 %v1663_v14  ;;  %v6382_v14 = vld [vmem:[%s9195_s2 + $0x184] ss:$16 sps:$4 sm:$0xff]  }
 0x1ab   :  { %1667 = vadd.xlane.f32.xlu1 %v1664_v56  ;;  %v6385_v56 = vld [vmem:[%s9195_s2 + $0x18c] ss:$16 sps:$4 sm:$0xff]   ;;  %4468 = vmatprep.subr.bf16.mxu0 %v6382_v14 }
 0x1ac   :  { %4726 = vmatprep.subr.bf16.mxu1 %v6385_v56 }
 0x1ae   :  { %1617 = vadd.xlane.f32.xlu0 %v1615_v15  ;;  %v6380_v15 = vld [vmem:[%s9195_s2 + $0x180] ss:$16 sps:$4 sm:$0xff]  }
 0x1af   :  { %1619 = vadd.xlane.f32.xlu1 %v1616_v16  ;;  %v6388_v16 = vld [vmem:[%s9195_s2 + $0x1a4] ss:$16 sps:$4 sm:$0xff]   ;;  %4469 = vmatpush1.bf16.msra.mxu0 %v6380_v15 }
 0x1b0   :  { %4470 = vmatprep.subr.bf16.mxu0 %v6388_v16 }
 0x1b2   :  { %1713 = vadd.xlane.f32.xlu0 %v1711_v17  ;;  %v6383_v17 = vld [vmem:[%s9195_s2 + $0x188] ss:$16 sps:$4 sm:$0xff]  }
 0x1b3   :  { %1715 = vadd.xlane.f32.xlu1 %v1712_v18  ;;  %v6386_v18 = vld [vmem:[%s9195_s2 + $0x1a0] ss:$16 sps:$4 sm:$0xff]   ;;  %4727 = vmatpush1.bf16.msra.mxu1 %v6383_v17 }
 0x1b4   :  { %4728 = vmatprep.subr.bf16.mxu1 %v6391_v19  ;;  %4471 = vmatpush1.bf16.msra.mxu0 %v6386_v18  ;;  %v1746_v18 = vlaneseq }
 0x1b5   :  { %4472 = vmatprep.subr.bf16.mxu0 %v6394_v20 }
 0x1b7   :  { %4729 = vmatpush1.bf16.msra.mxu1 %v6389_v21 }
 0x1b8   :  { %4730 = vmatprep.subr.bf16.mxu1 %v6397_v22  ;;  %4473 = vmatpush1.bf16.msra.mxu0 %v6392_v23 }
 0x1b9   :  { %4474 = vmatprep.subr.bf16.mxu0 %v6400_v24 }
 0x1bb   :  { %4731 = vmatpush1.bf16.msra.mxu1 %v6395_v25 }
 0x1bc   :  { %4732 = vmatprep.subr.bf16.mxu1 %v6403_v26  ;;  %4475 = vmatpush1.bf16.msra.mxu0 %v6398_v27 }
 0x1bd   :  { %4487 = vmatprep.subr.bf16.mxu0 %v6406_v29 }
 0x1bf   :  { %4733 = vmatpush1.bf16.msra.mxu1 %v6401_v28 }
 0x1c0   :  { %4745 = vmatprep.subr.bf16.mxu1 %v6409_v30 }
 0x223   :  { %v1552_v31 = vpop.xlane.xlu0 %1551 }
 0x224   :  { %v1555_v32 = vrot.slane %v1552_v31, 4  ;;  %v1600_v33 = vpop.xlane.xlu1 %1599 }
 0x225   :  { %v1603_v34 = vrot.slane %v1600_v33, 4 }
 0x226   :  { %v1556_v35 = vadd.f32 %v1555_v32, %v1552_v31 }
 0x227   :  { %v1604_v36 = vadd.f32 %v1603_v34, %v1600_v33  ;;  %v1648_v37 = vpop.xlane.xlu0 %1647  ;;  %v7837_v33 = vshrl.u32 %v1746_v18, 7 }
 0x228   :  { %v1557_v38 = vrot.slane %v1556_v35, 2  ;;  %v1651_v41 = vrot.slane %v1648_v37, 4  ;;  %v1650_v42 = vpop.xlane.xlu1 %1649 }
 0x229   :  { %v1605_v43 = vrot.slane %v1604_v36, 2  ;;  %v1657_v44 = vrot.slane %v1650_v42, 4 }
 0x22a   :  { %v1558_v45 = vadd.f32 %v1557_v38, %v1556_v35  ;;  %v1652_v46 = vadd.f32 %v1651_v41, %v1648_v37 }
 0x22b   :  { %v1606_v47 = vadd.f32 %v1605_v43, %v1604_v36  ;;  %v1658_v48 = vadd.f32 %v1657_v44, %v1650_v42  ;;  %v1696_v49 = vpop.xlane.xlu0 %1695 }
 0x22c   :  { %v1559_v50 = vrot.slane %v1558_v45, 1  ;;  %v1653_v51 = vrot.slane %v1652_v46, 2  ;;  %v1699_v52 = vrot.slane %v1696_v49, 4  ;;  %v1602_v53 = vpop.xlane.xlu1 %1601 }
 0x22d   :  { %v1607_v54 = vrot.slane %v1606_v47, 1  ;;  %v1659_v55 = vrot.slane %v1658_v48, 2  ;;  %v1609_v57 = vrot.slane %v1602_v53, 4 }
 0x22e   :  { %v1654_v58 = vadd.f32 %v1653_v51, %v1652_v46  ;;  %v1700_v39 = vadd.f32 %v1699_v52, %v1696_v49  ;;  %v1560_v40 = vadd.f32 %v1559_v50, %v1558_v45 }
 0x22f   :  { %v1660_v60 = vadd.f32 %v1659_v55, %v1658_v48  ;;  %v1610_v61 = vadd.f32 %v1609_v57, %v1602_v53  ;;  %v1554_v62 = vpop.xlane.xlu0 %1553  ;;  %v1608_v63 = vadd.f32 %v1607_v54, %v1606_v47 }
 0x230   :  { %v1655_v0 = vrot.slane %v1654_v58, 1  ;;  %v1701_v1 = vrot.slane %v1700_v39, 2  ;;  %v1561_v3 = vrot.slane %v1554_v62, 4  ;;  %v1698_v59 = vpop.xlane.xlu1 %1697  ;;  %v7831_v19 = vmul.f32 0.0009765625, %v1560_v40 }
 0x231   :  { %v1661_v13 = vrot.slane %v1660_v60, 1  ;;  %v1611_v14 = vrot.slane %v1610_v61, 2  ;;  %v1705_v56 = vrot.slane %v1698_v59, 4  ;;  %v7833_v24 = vmul.f32 0.0009765625, %v1608_v63 }
 0x232   :  { %v1656_v15 = vadd.f32 %v1655_v0, %v1654_v58  ;;  %v1702_v16 = vadd.f32 %v1701_v1, %v1700_v39  ;;  %v1562_v17 = vadd.f32 %v1561_v3, %v1554_v62  ;;  %v7841_v35 = vmul.f32 %v7831_v19, %v7831_v19 }
 0x233   :  { %v1662_v20 = vadd.f32 %v1661_v13, %v1660_v60  ;;  %v1612_v21 = vadd.f32 %v1611_v14, %v1610_v61  ;;  %v1706_v22 = vadd.f32 %v1705_v56, %v1698_v59  ;;  %v1570_v23 = vpop.xlane.xlu0 %1569  ;;  %v7847_v42 = vmul.f32 %v7833_v24, %v7833_v24 }
 0x234   :  { %v1563_v25 = vrot.slane %v1562_v17, 2  ;;  %v1573_v26 = vrot.slane %v1570_v23, 4  ;;  %v1572_v27 = vpop.xlane.xlu1 %1571  ;;  %v7835_v28 = vmul.f32 0.0009765625, %v1656_v15  ;;  %v1703_v29 = vrot.slane %v1702_v16, 1 }
 0x235   :  { %v1579_v30 = vrot.slane %v1572_v27, 4  ;;  %v1707_v32 = vrot.slane %v1706_v22, 2  ;;  %v7843_v36 = vmul.f32 0.0009765625, %v1662_v20  ;;  %v1613_v37 = vrot.slane %v1612_v21, 1 }
 0x236   :  { %v1564_v31 = vadd.f32 %v1563_v25, %v1562_v17  ;;  %v1574_v34 = vadd.f32 %v1573_v26, %v1570_v23  ;;  %v7851_v47 = vmul.f32 %v7835_v28, %v7835_v28  ;;  %v1704_v48 = vadd.f32 %v1703_v29, %v1702_v16 }
 0x237   :  { %v1580_v38 = vadd.f32 %v1579_v30, %v1572_v27  ;;  %v1666_v41 = vpop.xlane.xlu0 %1665  ;;  %v1708_v52 = vadd.f32 %v1707_v32, %v1706_v22  ;;  %v1686_v55 = vmul.f32 %v7843_v36, %v7843_v36  ;;  %v1614_v57 = vadd.f32 %v1613_v37, %v1612_v21 }
 0x238   :  { %v1565_v43 = vrot.slane %v1564_v31, 1  ;;  %v1575_v44 = vrot.slane %v1574_v34, 2  ;;  %v1669_v45 = vrot.slane %v1666_v41, 4  ;;  %v1668_v46 = vpop.xlane.xlu1 %1667  ;;  %v7857_v1 = vmul.f32 0.0009765625, %v1704_v48 }
 0x239   :  { %v1581_v49 = vrot.slane %v1580_v38, 2  ;;  %v1675_v50 = vrot.slane %v1668_v46, 4  ;;  %v1709_v14 = vrot.slane %v1708_v52, 1 }
 0x23a   :  { %v1566_v51 = vadd.f32 %v1565_v43, %v1564_v31  ;;  %v1576_v53 = vadd.f32 %v1575_v44, %v1574_v34  ;;  %v1670_v54 = vadd.f32 %v1669_v45, %v1666_v41 }
 0x23b   :  { %v1582_v58 = vadd.f32 %v1581_v49, %v1580_v38  ;;  %v1676_v39 = vadd.f32 %v1675_v50, %v1668_v46  ;;  %v1618_v40 = vpop.xlane.xlu0 %1617  ;;  %v7862_v49 = vmul.f32 0.0009765625, %v1614_v57 }
 0x23c   :  { %v7855_v60 = vmul.f32 0.0009765625, %v1566_v51  ;;  %v1577_v61 = vrot.slane %v1576_v53, 1  ;;  %v1671_v62 = vrot.slane %v1670_v54, 2  ;;  %v1621_v63 = vrot.slane %v1618_v40, 4  ;;  %v1620_v0 = vpop.xlane.xlu1 %1619 }
 0x23d   :  { %v1583_v3 = vrot.slane %v1582_v58, 1  ;;  %v1677_v59 = vrot.slane %v1676_v39, 2  ;;  %v1627_v13 = vrot.slane %v1620_v0, 4  ;;  %v1638_v57 = vmul.f32 %v7862_v49, %v7862_v49 }
 0x23e   :  { %v1578_v56 = vadd.f32 %v1577_v61, %v1576_v53  ;;  %v1672_v15 = vadd.f32 %v1671_v62, %v1670_v54  ;;  %v1622_v16 = vadd.f32 %v1621_v63, %v1618_v40  ;;  %v1590_v17 = vmul.f32 %v7855_v60, %v7855_v60 }
 0x23f   :  { %v1584_v18 = vadd.f32 %v1583_v3, %v1582_v58  ;;  %v1678_v20 = vadd.f32 %v1677_v59, %v1676_v39  ;;  %v1628_v21 = vadd.f32 %v1627_v13, %v1620_v0  ;;  %v1714_v22 = vpop.xlane.xlu0 %1713  ;;  %v1710_v54 = vadd.f32 %v1709_v14, %v1708_v52 }
 0x240   :  { %v1587_v23 = vmul.f32 0.0009765625, %v1578_v56  ;;  %v1673_v25 = vrot.slane %v1672_v15, 1  ;;  %v1623_v26 = vrot.slane %v1622_v16, 2  ;;  %v1717_v27 = vrot.slane %v1714_v22, 4  ;;  %v1716_v29 = vpop.xlane.xlu1 %1715 }
 0x241   :  { %v1588_v30 = vmul.f32 0.0009765625, %v1584_v18  ;;  %v1679_v31 = vrot.slane %v1678_v20, 1  ;;  %v1629_v32 = vrot.slane %v1628_v21, 2  ;;  %v1723_v34 = vrot.slane %v1716_v29, 4 }
 0x242   :  { %v1591_v37 = vsub.f32 %v1587_v23, %v7841_v35  ;;  %v1674_v38 = vadd.f32 %v1673_v25, %v1672_v15  ;;  %v1624_v41 = vadd.f32 %v1623_v26, %v1622_v16  ;;  %v1718_v43 = vadd.f32 %v1717_v27, %v1714_v22 }
 0x243   :  { %v1592_v44 = vsub.f32 %v1588_v30, %v1590_v17  ;;  %v1680_v45 = vadd.f32 %v1679_v31, %v1678_v20  ;;  %v1630_v46 = vadd.f32 %v1629_v32, %v1628_v21  ;;  %v1724_v48 = vadd.f32 %v1723_v34, %v1716_v29 }
 0x244   :  { %v1683_v50 = vmul.f32 0.0009765625, %v1674_v38  ;;  %v1625_v51 = vrot.slane %v1624_v41, 1  ;;  %v1719_v53 = vrot.slane %v1718_v43, 2  ;;  %v1593_v61 = vmax.f32 %v1591_v37, 0.0 }
 0x245   :  { %v1684_v58 = vmul.f32 0.0009765625, %v1680_v45  ;;  %v1631_v39 = vrot.slane %v1630_v46, 1  ;;  %v1725_v40 = vrot.slane %v1724_v48, 2  ;;  %v1594_v0 = vmax.f32 %v1592_v44, 0.0 }
 0x246   :  { %v1687_v62 = vsub.f32 %v1683_v50, %v7851_v47  ;;  %v1626_v35 = vadd.f32 %v1625_v51, %v1624_v41  ;;  %v1720_v63 = vadd.f32 %v1719_v53, %v1718_v43  ;;  %v7867_v17 = vmul.f32 0.0009765625, %v1710_v54 }
 0x247   :  { %v1688_v3 = vsub.f32 %v1684_v58, %v1686_v55  ;;  %v1632_v59 = vadd.f32 %v1631_v39, %v1630_v46  ;;  %v1726_v13 = vadd.f32 %v1725_v40, %v1724_v48  ;;  %v1595_v20 = vadd.f32 1e-05, %v1593_v61  ;;  %v1743_v46 = vld [vmem:[%s9196_s3] sm:$0xf] }
 0x248   :  { %v1689_v56 = vmax.f32 %v1687_v62, 0.0  ;;  %v1635_v15 = vmul.f32 0.0009765625, %v1626_v35  ;;  %v1721_v16 = vrot.slane %v1720_v63, 1  ;;  %v1596_v23 = vadd.f32 1e-05, %v1594_v0 }
 0x249   :  { %v1690_v52 = vmax.f32 %v1688_v3, 0.0  ;;  %v1636_v14 = vmul.f32 0.0009765625, %v1632_v59  ;;  %v1727_v18 = vrot.slane %v1726_v13, 1  ;;  %v1733_v27 = vmul.f32 %v7857_v1, %v7857_v1 }
 0x24a   :  { %v1691_v21 = vadd.f32 1e-05, %v1689_v56  ;;  %v1639_v47 = vsub.f32 %v1635_v15, %v7847_v42  ;;  %v1722_v22 = vadd.f32 %v1721_v16, %v1720_v63  ;;  %v1734_v31 = vmul.f32 %v7867_v17, %v7867_v17 }
 0x24b   :  { %v1692_v55 = vadd.f32 1e-05, %v1690_v52  ;;  %v1640_v25 = vsub.f32 %v1636_v14, %v1638_v57  ;;  %v1728_v26 = vadd.f32 %v1727_v18, %v1726_v13  ;;  %v7875_v38 = vsub.s32 2, %v7837_v33 }
 0x24c   :  { %6884 = vrsqrt.f32 %v1691_v21  ;;  %v1641_v29 = vmax.f32 %v1639_v47, 0.0  ;;  %v1731_v30 = vmul.f32 0.0009765625, %v1722_v22  ;;  %v7881_v48 = vsub.s32 0, %v7837_v33 }
 0x24d   :  { %6886 = vrsqrt.f32 %v1692_v55  ;;  %v1642_v32 = vmax.f32 %v1640_v25, 0.0  ;;  %v1732_v34 = vmul.f32 0.0009765625, %v1728_v26  ;;  %v1757_v51 = vrot.slane %v1743_v46, %v7875_v38 }
 0x24e   :  { %6888 = vrsqrt.f32 %v1595_v20  ;;  %v1643_v37 = vadd.f32 1e-05, %v1641_v29  ;;  %v1735_v42 = vsub.f32 %v1731_v30, %v1733_v27  ;;  %v7885_v53 = vsub.s32 1, %v7837_v33 }
 0x24f   :  { %6890 = vrsqrt.f32 %v1596_v23  ;;  %v1644_v41 = vadd.f32 1e-05, %v1642_v32  ;;  %v1736_v43 = vsub.f32 %v1732_v34, %v1734_v31  ;;  %v1749_v40 = vrot.slane %v1743_v46, %v7881_v48 }
 0x250   :  { %6892 = vrsqrt.f32 %v1643_v37  ;;  %v1737_v44 = vmax.f32 %v1735_v42, 0.0  ;;  %v1753_v62 = vrot.slane %v1743_v46, %v7885_v53  ;;  %v7890_v35 = vsub.s32 3, %v7837_v33 }
 0x251   :  { %6894 = vrsqrt.f32 %v1644_v41  ;;  %v1738_v45 = vmax.f32 %v1736_v43, 0.0  ;;  %v6916_v13 = vmov 1966171168  }
 0x252   :  { %v1739_v50 = vadd.f32 1e-05, %v1737_v44  ;;  %v1793_v57 = vunpack.c.l.s4 %v6916_v13  ;;  %v1761_v18 = vrot.slane %v1743_v46, %v7890_v35 }
 0x253   :  { %v1740_v54 = vadd.f32 1e-05, %v1738_v45 }
 0x254   :  { %6896 = vrsqrt.f32 %v1739_v50  ;;  %v1794_v23 = vunpack.c.0.s8 %v1793_v57 }
 0x255   :  { %6898 = vrsqrt.f32 %v1740_v54 }
 0x256   :  { %v6885_v58 = vpop.eup %6884 }
 0x257   :  { %v6887_v39 = vpop.eup %6886  ;;  %v1768_v61 = vmul.f32 %v6885_v58, %v1757_v51 }
 0x258   :  { %v6889_v63 = vpop.eup %6888  ;;  %v1772_v0 = vmul.f32 %v6887_v39, %v1757_v51 }
 0x259   :  { %v6891_v3 = vpop.eup %6890  ;;  %v1853_v59 = vrot.slane %v1768_v61, %v7881_v48  ;;  %v1766_v52 = vmul.f32 %v6889_v63, %v1749_v40  ;;  %v1776_v34 = vmul.f32 %v1768_v61, %v7835_v28 }
 0x25a   :  { %v6893_v56 = vpop.eup %6892  ;;  %v1869_v15 = vrot.slane %v1772_v0, %v7881_v48  ;;  %v1770_v21 = vmul.f32 %v6891_v3, %v1749_v40 }
 0x25b   :  { %v6895_v16 = vpop.eup %6894  ;;  %v1767_v14 = vmul.f32 %v6893_v56, %v1753_v62  ;;  %v1876_v20 = vmul.f32 %v1853_v59, %v7595_v5  ;;  %v1774_v29 = vmul.f32 %v1766_v52, %v7831_v19  ;;  %v7903_v5 = vsub.s32 %v1794_v23, %v7837_v33  ;;  %v1744_v33 = vld [vmem:[%s9197_s4] sm:$0xf] }
 0x25c   :  { %v1771_v47 = vmul.f32 %v6895_v16, %v1753_v62  ;;  %v1880_v22 = vmul.f32 %v1869_v15, %v7602_v9  ;;  %v1778_v31 = vmul.f32 %v1770_v21, %v7855_v60 }
 0x25d   :  { %v1775_v55 = vmul.f32 %v1767_v14, %v7833_v24  ;;  %v1780_v24 = vmul.f32 %v1772_v0, %v7843_v36  ;;  %v1861_v36 = vrot.slane %v1770_v21, %v7881_v48 }
 0x25e   :  { %v6897_v25 = vpop.eup %6896  ;;  %v1779_v26 = vmul.f32 %v1771_v47, %v7862_v49  ;;  %v1865_v50 = vrot.slane %v1771_v47, %v7881_v48 }
 0x25f   :  { %v6899_v27 = vpop.eup %6898  ;;  %v1769_v30 = vmul.f32 %v6897_v25, %v1761_v18  ;;  %v1790_v37 = vcombine.low %v1774_v29, %v1775_v55  ;;  %v1878_v63 = vmul.f32 %v1861_v36, %v7605_v10 }
 0x260   :  { %v1773_v32 = vmul.f32 %v6899_v27, %v1761_v18  ;;  %v1814_v42 = vcombine.low %v1778_v31, %v1779_v26  ;;  %v1879_v3 = vmul.f32 %v1865_v50, %v7607_v11 }
 0x261   :  { %v1777_v9 = vmul.f32 %v1769_v30, %v7857_v1  ;;  %v1798_v19 = vrot.slane %v1790_v37, %v7903_v5  ;;  %v1845_v1 = vrot.slane %v1766_v52, %v7881_v48  ;;  %v1857_v51 = vrot.slane %v1769_v30, %v7881_v48 }
 0x262   :  { %v1781_v49 = vmul.f32 %v1773_v32, %v7867_v17  ;;  %v1822_v44 = vrot.slane %v1814_v42, %v7903_v5  ;;  %v1849_v17 = vrot.slane %v1767_v14, %v7881_v48  ;;  %v1873_v54 = vrot.slane %v1773_v32, %v7881_v48 }
 0x263   :  { %v1791_v41 = vcombine.low %v1776_v34, %v1777_v9  ;;  %v1874_v62 = vmul.f32 %v1845_v1, %v7593_v4  ;;  %v1877_v59 = vmul.f32 %v1857_v51, %v7597_v7 }
 0x264   :  { %v1815_v43 = vcombine.low %v1780_v24, %v1781_v49  ;;  %v1875_v61 = vmul.f32 %v1849_v17, %v7600_v8  ;;  %v1881_v13 = vmul.f32 %v1873_v54, %v7609_v12 }
 0x265   :  { %v1805_v60 = vrot.slane %v1791_v41, %v7903_v5 }
 0x266   :  { %v1829_v28 = vrot.slane %v1815_v43, %v7903_v5 }
 0x267   :  { %v1806_v45 = vcombine.low %v1798_v19, %v1805_v60 }
 0x268   :  { %v1830_v46 = vcombine.low %v1822_v44, %v1829_v28 }
 0x269   :  { %v1813_v58 = vrot.slane %v1806_v45, %v7903_v5 }
 0x26a   :  { %v1837_v39 = vrot.slane %v1830_v46, %v7903_v5 }
 0x26b   :  { %v1840_v40 = vsub.f32 %v1744_v33, %v1813_v58 }
 0x26c   :  { %v1841_v0 = vsub.f32 %v1744_v33, %v1837_v39 }
 0x26d   :  { %v1891_v57 = vrot.slane %v1840_v40, %v7885_v53  ;;  %v1887_v56 = vrot.slane %v1840_v40, %v7881_v48  ;;  %v1899_v15 = vrot.slane %v1840_v40, %v7890_v35  ;;  %v1895_v16 = vrot.slane %v1840_v40, %v7875_v38 }
 0x26e   :  { %v1907_v8 = vrot.slane %v1841_v0, %v7885_v53  ;;  %v1903_v4 = vrot.slane %v1841_v0, %v7881_v48  ;;  %v1915_v10 = vrot.slane %v1841_v0, %v7890_v35  ;;  %v1911_v11 = vrot.slane %v1841_v0, %v7875_v38 }
 0x26f   :  { %v7937_v52 = vadd.f32 %v1891_v57, %v1875_v61  ;;  %v7939_v7 = vadd.f32 %v1887_v56, %v1874_v62  ;;  %v7941_v12 = vadd.f32 %v1899_v15, %v1877_v59  ;;  %v7943_v14 = vadd.f32 %v1895_v16, %v1876_v20  ;;  %v6404_v57 = vld [vmem:[%s9195_s2 + $0x200] ss:$16 sps:$4 sm:$0xff]  }
 0x270   :  { %v7945_v18 = vadd.f32 %v1907_v8, %v1879_v3  ;;  %v7947_v21 = vadd.f32 %v1903_v4, %v1878_v63  ;;  %v7949_v47 = vadd.f32 %v1915_v10, %v1881_v13  ;;  %v7951_v23 = vadd.f32 %v1911_v11, %v1880_v22  ;;  %v6407_v4 = vld [vmem:[%s9195_s2 + $0x208] ss:$16 sps:$4 sm:$0xff]  }
 0x271   :  { %v1933_v55 = vpack.c.bf16 %v7937_v52, %v7937_v52  ;;  %v1932_v25 = vpack.c.bf16 %v7939_v7, %v7939_v7  ;;  %v1935_v26 = vpack.c.bf16 %v7941_v12, %v7941_v12  ;;  %v1934_v20 = vpack.c.bf16 %v7943_v14, %v7943_v14 }
 0x272   :  { %9206 = vst [vmem:[#allocation2_spill] sm:$0xff] %v7949_v47  ;;  %v1937_v27 = vpack.c.bf16 %v7945_v18, %v7945_v18  ;;  %v1936_v29 = vpack.c.bf16 %v7947_v21, %v7947_v21  ;;  %v1939_v22 = vpack.c.bf16 %v7949_v47, %v7949_v47  ;;  %v7969_v30 = vpack.c.bf16 %v7951_v23, %v7951_v23 }
 0x273   :  { %v1948_v31 = vshrl.u32 %v1933_v55, 16  ;;  %v1951_v32 = vshll.u32 %v1933_v55, 16  ;;  %v1941_v34 = vshrl.u32 %v1932_v25, 16  ;;  %v1944_v37 = vshll.u32 %v1932_v25, 16 }
 0x274   :  { %v1976_v9 = vshrl.u32 %v1937_v27, 16  ;;  %v1979_v24 = vshll.u32 %v1937_v27, 16  ;;  %v1969_v42 = vshrl.u32 %v1936_v29, 16  ;;  %v1972_v49 = vshll.u32 %v1936_v29, 16  ;;  %v6415_v29 = vld [vmem:[%s9195_s2 + $0x22c] ss:$16 sps:$4 sm:$0xff]  }
 0x275   :  { %v1950_v41 = vrot.slane %v1948_v31, 7  ;;  %v1943_v43 = vrot.slane %v1941_v34, 7  ;;  %v1962_v19 = vshrl.u32 %v1935_v26, 16  ;;  %v1965_v60 = vshll.u32 %v1935_v26, 16  ;;  %v6412_v26 = vld [vmem:[%s9195_s2 + $0x224] ss:$16 sps:$4 sm:$0xff]  }
 0x276   :  { %v1978_v44 = vrot.slane %v1976_v9, 7  ;;  %v1971_v28 = vrot.slane %v1969_v42, 7  ;;  %v1990_v33 = vshrl.u32 %v1939_v22, 16  ;;  %v1993_v1 = vshll.u32 %v1939_v22, 16  ;;  %v6413_v9 = vld [vmem:[%s9195_s2 + $0x228] ss:$16 sps:$4 sm:$0xff]  }
 0x277   :  { %v1953_v36 = vor.u32 %v1951_v32, %v1950_v41  ;;  %v1946_v45 = vor.u32 %v1944_v37, %v1943_v43  ;;  %v1964_v17 = vrot.slane %v1962_v19, 7  ;;  %v1955_v46 = vshrl.u32 %v1934_v20, 16  ;;  %v6410_v37 = vld [vmem:[%s9195_s2 + $0x220] ss:$16 sps:$4 sm:$0xff]   ;;  %v6421_v42 = vld [vmem:[%s9195_s2 + $0x24c] ss:$16 sps:$4 sm:$0xff]  }
 0x278   :  { %v1981_v50 = vor.u32 %v1979_v24, %v1978_v44  ;;  %v1974_v51 = vor.u32 %v1972_v49, %v1971_v28  ;;  %v1992_v54 = vrot.slane %v1990_v33, 7  ;;  %v1958_v58 = vshll.u32 %v1934_v20, 16  ;;  %v6416_v43 = vld [vmem:[%s9195_s2 + $0x240] ss:$16 sps:$4 sm:$0xff]  }
 0x279   :  { %v2005_v39 = vsel %vm7133_vm4, 0, %v1953_v36  ;;  %v2004_v40 = vsel %vm7133_vm4, 0, %v1946_v45  ;;  %v1967_v61 = vor.u32 %v1965_v60, %v1964_v17  ;;  %v1957_v62 = vrot.slane %v1955_v46, 7  ;;  %v6419_v17 = vld [vmem:[%s9195_s2 + $0x248] ss:$16 sps:$4 sm:$0xff]  }
 0x27a   :  { %v2009_v63 = vsel %vm7133_vm4, 0, %v1981_v50  ;;  %v7979_v0 = vsel %vm7139_vm5, %v2005_v39, 0  ;;  %v2008_v3 = vsel %vm7133_vm4, 0, %v1974_v51  ;;  %v7985_v59 = vsel %vm7139_vm5, %v2004_v40, 0  ;;  %v6425_v40 = vld [vmem:[%s9195_s2 + $0x268] ss:$16 sps:$4 sm:$0xff]  }
 0x27b   :  { %v7989_v13 = vsel %vm7139_vm5, %v2009_v63, 0  ;;  %v7996_v56 = vsel %vm7139_vm5, %v2008_v3, 0  ;;  %v1995_v15 = vor.u32 %v1993_v1, %v1992_v54  ;;  %v2007_v16 = vsel %vm7133_vm4, 0, %v1967_v61  ;;  %v6424_v54 = vld [vmem:[%s9195_s2 + $0x264] ss:$16 sps:$4 sm:$0xff]  }
 0x27c   :  { %v5568_v8 = vcombine.low %v7979_v0, %v7989_v13  ;;  %v5567_v10 = vcombine.low %v7985_v59, %v7996_v56  ;;  %v8009_v11 = vsel %vm7139_vm5, %v2007_v16, 0  ;;  %v1960_v55 = vor.u32 %v1958_v58, %v1957_v62  ;;  %v6427_v58 = vld [vmem:[%s9195_s2 + $0x26c] ss:$16 sps:$4 sm:$0xff]   ;;  %v6430_v3 = vld [vmem:[%s9195_s2 + $0x284] ss:$16 sps:$4 sm:$0xff]  }
 0x27d   :  { %v2011_v25 = vsel %vm7133_vm4, 0, %v1995_v15  ;;  %v1983_v20 = vshrl.u32 %v7969_v30, 16  ;;  %v1986_v32 = vshll.u32 %v7969_v30, 16  ;;  %v2023_v24 = vshll.u32 %v7985_v59, 16  ;;  %v6418_v30 = vld [vmem:[%s9195_s2 + $0x244] ss:$16 sps:$4 sm:$0xff]  }
 0x27e   :  { %4476 = vmatprep.mubr.bf16.mxu0 %v5568_v8  ;;  %4734 = vmatprep.mubr.bf16.mxu1 %v5568_v8  ;;  %v8019_v27 = vsel %vm7139_vm5, %v2011_v25, 0  ;;  %v2006_v34 = vsel %vm7133_vm4, 0, %v1960_v55  ;;  %v2051_v41 = vshll.u32 %v7996_v56, 16  ;;  %v2021_v60 = vshrl.u32 %v7985_v59, 16  ;;  %v6433_v55 = vld [vmem:[%s9195_s2 + $0x28c] ss:$16 sps:$4 sm:$0xff]  }
 0x27f   :  { %4477 = vmatmul.mubr.bf16.vlgmr.msra.gmra.mrb[4].mxu0 %v5567_v10  ;;  %4735 = vmatmul.mubr.bf16.vlgmr.msra.gmra.mrb[4].mxu1 %v5567_v10  ;;  %v5570_v22 = vcombine.low %v8009_v11, %v8019_v27  ;;  %v1985_v31 = vrot.slane %v1983_v20, 7  ;;  %v8048_v19 = vsel %vm7139_vm5, %v2006_v34, 0  ;;  %v2025_v44 = vrot.slane %v2023_v24, 1 }
 0x280   :  { %4488 = vmatpush1.bf16.msra.mxu0 %v6404_v57  ;;  %4746 = vmatpush1.bf16.msra.mxu1 %v6407_v4  ;;  %v2044_v28 = vshll.u32 %v8009_v11, 16  ;;  %v2049_v1 = vshrl.u32 %v7996_v56, 16  ;;  %v2053_v36 = vrot.slane %v2051_v41, 1  ;;  %v2042_v45 = vshrl.u32 %v8009_v11, 16 }
 0x281   :  { %4519 = vmatprep.mubr.bf16.mxu0 %v5570_v22  ;;  %4777 = vmatprep.mubr.bf16.mxu1 %v5570_v22  ;;  %v1988_v49 = vor.u32 %v1986_v32, %v1985_v31  ;;  %v2026_v50 = vor.u32 %v2025_v44, %v2021_v60  ;;  %v2072_v2 = vshll.u32 %v8019_v27, 16  ;;  %v2070_v62 = vshrl.u32 %v8019_v27, 16  ;;  %v6431_v22 = vld [vmem:[%s9195_s2 + $0x288] ss:$16 sps:$4 sm:$0xff]   ;;  %v6434_v60 = vld [vmem:[%s9195_s2 + $0x2a0] ss:$16 sps:$4 sm:$0xff]  }
 0x282   :  { %4489 = vmatprep.subr.bf16.mxu0 %v6412_v26  ;;  %4747 = vmatprep.subr.bf16.mxu1 %v6415_v29  ;;  %v2046_v51 = vrot.slane %v2044_v28, 1  ;;  %v2054_v39 = vor.u32 %v2053_v36, %v2049_v1  ;;  %v2037_v15 = vshll.u32 %v8048_v19, 16  ;;  %v2085_v4 = vrot.slane %v7979_v0, 1  ;;  %v6428_v29 = vld [vmem:[%s9195_s2 + $0x280] ss:$16 sps:$4 sm:$0xff]  }
 0x283   :  { %v2010_v33 = vsel %vm7133_vm4, 0, %v1988_v49  ;;  %v2074_v63 = vrot.slane %v2072_v2, 1  ;;  %v2089_v10 = vrot.slane %v7989_v13, 1  ;;  %v2035_v25 = vshrl.u32 %v8048_v19, 16  ;;  %v6437_v44 = vld [vmem:[%s9195_s2 + $0x2a8] ss:$16 sps:$4 sm:$0xff]  }
 0x284   :  { %4490 = vmatpush1.bf16.msra.mxu0 %v6410_v37  ;;  %4748 = vmatpush1.bf16.msra.mxu1 %v6413_v9  ;;  %v8061_v46 = vsel %vm7139_vm5, %v2010_v33, 0  ;;  %v2047_v61 = vor.u32 %v2046_v51, %v2042_v45  ;;  %v8080_v57 = vcombine.low %v2026_v50, %v2054_v39  ;;  %v2084_v20 = vrot.slane %v7985_v59, 1  ;;  %v6442_v1 = vld [vmem:[%s9195_s2 + $0x2c4] ss:$16 sps:$4 sm:$0xff]   ;;  %v6445_v36 = vld [vmem:[%s9195_s2 + $0x2cc] ss:$16 sps:$4 sm:$0xff]  }
 0x285   :  { %4491 = vmatprep.subr.bf16.mxu0 %v6418_v30  ;;  %4749 = vmatprep.subr.bf16.mxu1 %v6421_v42  ;;  %v2065_v16 = vshll.u32 %v8061_v46, 16  ;;  %v2075_v8 = vor.u32 %v2074_v63, %v2070_v62  ;;  %v2063_v26 = vshrl.u32 %v8061_v46, 16  ;;  %v2039_v32 = vrot.slane %v2037_v15, 1  ;;  %v6440_v45 = vld [vmem:[%s9195_s2 + $0x2c0] ss:$16 sps:$4 sm:$0xff]  }
 0x286   :  { %v8100_v37 = vcombine.low %v2085_v4, %v2089_v10  ;;  %v2088_v9 = vrot.slane %v7996_v56, 1  ;;  %v2087_v24 = vrot.slane %v8009_v11, 1  ;;  %v2091_v59 = vrot.slane %v8019_v27, 1  ;;  %v6439_v56 = vld [vmem:[%s9195_s2 + $0x2ac] ss:$16 sps:$4 sm:$0xff]  }
 0x287   :  { %v8098_v31 = vcombine.low %v2047_v61, %v2075_v8  ;;  %v2067_v34 = vrot.slane %v2065_v16, 1  ;;  %v2040_v30 = vor.u32 %v2039_v32, %v2035_v25  ;;  %v2086_v49 = vrot.slane %v8048_v19, 1  ;;  %v6448_v50 = vld [vmem:[%s9195_s2 + $0x2e4] ss:$16 sps:$4 sm:$0xff]   ;;  %v6451_v51 = vld [vmem:[%s9195_s2 + $0x2ec] ss:$16 sps:$4 sm:$0xff]  }
 0x288   :  { %4492 = vmatpush1.bf16.msra.mxu0 %v6416_v43  ;;  %4750 = vmatpush1.bf16.msra.mxu1 %v6419_v17  ;;  %v2090_v41 = vrot.slane %v8061_v46, 1  ;;  %v6436_v43 = vld [vmem:[%s9195_s2 + $0x2a4] ss:$16 sps:$4 sm:$0xff]   ;;  %v8113_v11 = vcombine.low %v2084_v20, %v2088_v9  ;;  %v8115_v27 = vcombine.low %v2087_v24, %v2091_v59  ;;  %v6443_v17 = vld [vmem:[%s9195_s2 + $0x2c8] ss:$16 sps:$4 sm:$0xff]  }
 0x289   :  { %4493 = vmatprep.subr.bf16.mxu0 %v6424_v54  ;;  %4751 = vmatprep.subr.bf16.mxu1 %v6427_v58  ;;  %v2068_v42 = vor.u32 %v2067_v34, %v2063_v26  ;;  %v6446_v2 = vld [vmem:[%s9195_s2 + $0x2e0] ss:$16 sps:$4 sm:$0xff]   ;;  %v6449_v54 = vld [vmem:[%s9195_s2 + $0x2e8] ss:$16 sps:$4 sm:$0xff]   ;;  %v6454_v58 = vld [vmem:[%s9195_s2 + $0x304] ss:$16 sps:$4 sm:$0xff]  }
 0x28a   :  { %v8125_v33 = vcombine.low %v2086_v49, %v2090_v41  ;;  %v6457_v39 = vld [vmem:[%s9195_s2 + $0x30c] ss:$16 sps:$4 sm:$0xff]   ;;  %v6460_v61 = vld [vmem:[%s9195_s2 + $0x324] ss:$16 sps:$4 sm:$0xff]   ;;  %v6458_v63 = vld [vmem:[%s9195_s2 + $0x320] ss:$16 sps:$4 sm:$0xff]  }
 0x28b   :  { %v8123_v28 = vcombine.low %v2040_v30, %v2068_v42  ;;  %v6463_v62 = vld [vmem:[%s9195_s2 + $0x32c] ss:$16 sps:$4 sm:$0xff]   ;;  %v6466_v15 = vld [vmem:[%s9195_s2 + $0x344] ss:$16 sps:$4 sm:$0xff]   ;;  %v6464_v8 = vld [vmem:[%s9195_s2 + $0x340] ss:$16 sps:$4 sm:$0xff]  }
 0x28c   :  { %4494 = vmatpush1.bf16.msra.mxu0 %v6422_v6  ;;  %4752 = vmatpush1.bf16.msra.mxu1 %v6425_v40  ;;  %v6452_v6 = vld [vmem:[%s9195_s2 + $0x300] ss:$16 sps:$4 sm:$0xff]   ;;  %v6455_v40 = vld [vmem:[%s9195_s2 + $0x308] ss:$16 sps:$4 sm:$0xff]   ;;  %v6469_v16 = vld [vmem:[%s9195_s2 + $0x34c] ss:$16 sps:$4 sm:$0xff]  }
 0x28d   :  { %4495 = vmatprep.subr.bf16.mxu0 %v6430_v3  ;;  %4753 = vmatprep.subr.bf16.mxu1 %v6433_v55  ;;  %v6461_v3 = vld [vmem:[%s9195_s2 + $0x328] ss:$16 sps:$4 sm:$0xff]   ;;  %v6472_v10 = vld [vmem:[%s9195_s2 + $0x364] ss:$16 sps:$4 sm:$0xff]   ;;  %v6475_v55 = vld [vmem:[%s9195_s2 + $0x36c] ss:$16 sps:$4 sm:$0xff]  }
 0x28e   :  { %v6467_v4 = vld [vmem:[%s9195_s2 + $0x348] ss:$16 sps:$4 sm:$0xff]   ;;  %v6470_v25 = vld [vmem:[%s9195_s2 + $0x360] ss:$16 sps:$4 sm:$0xff]   ;;  %v6478_v20 = vld [vmem:[%s9195_s2 + $0x384] ss:$16 sps:$4 sm:$0xff]  }
 0x28f   :  { %v6473_v26 = vld [vmem:[%s9195_s2 + $0x368] ss:$16 sps:$4 sm:$0xff]   ;;  %v6484_v34 = vld [vmem:[%s9195_s2 + $0x3a4] ss:$16 sps:$4 sm:$0xff]   ;;  %v6487_v9 = vld [vmem:[%s9195_s2 + $0x3ac] ss:$16 sps:$4 sm:$0xff]  }
 0x290   :  { %4496 = vmatpush1.bf16.msra.mxu0 %v6428_v29  ;;  %4754 = vmatpush1.bf16.msra.mxu1 %v6431_v22  ;;  %v6481_v29 = vld [vmem:[%s9195_s2 + $0x38c] ss:$16 sps:$4 sm:$0xff]   ;;  %v6476_v22 = vld [vmem:[%s9195_s2 + $0x380] ss:$16 sps:$4 sm:$0xff]   ;;  %v6479_v32 = vld [vmem:[%s9195_s2 + $0x388] ss:$16 sps:$4 sm:$0xff]  }
 0x291   :  { %4497 = vmatprep.subr.bf16.mxu0 %v6436_v43  ;;  %4755 = vmatprep.subr.bf16.mxu1 %v6439_v56  ;;  %v6482_v24 = vld [vmem:[%s9195_s2 + $0x3a0] ss:$16 sps:$4 sm:$0xff]   ;;  %v6485_v59 = vld [vmem:[%s9195_s2 + $0x3a8] ss:$16 sps:$4 sm:$0xff]   ;;  %v6490_v30 = vld [vmem:[%s9195_s2 + $0x3c4] ss:$16 sps:$4 sm:$0xff]  }
 0x292   :  { %v6493_v42 = vld [vmem:[%s9195_s2 + $0x3cc] ss:$16 sps:$4 sm:$0xff]   ;;  %v2030_v49 = vshll.u32 %v7979_v0, 16  ;;  %v2058_v41 = vshll.u32 %v7989_v13, 16  ;;  %v6488_v43 = vld [vmem:[%s9195_s2 + $0x3c0] ss:$16 sps:$4 sm:$0xff]  }
 0x293   :  { %v6491_v56 = vld [vmem:[%s9195_s2 + $0x3c8] ss:$16 sps:$4 sm:$0xff]  }
 0x294   :  { %4498 = vmatpush1.bf16.msra.mxu0 %v6434_v60  ;;  %4756 = vmatpush1.bf16.msra.mxu1 %v6437_v44  ;;  %v6496_v60 = vld [vmem:[%s9195_s2 + $0x3e4] ss:$16 sps:$4 sm:$0xff]   ;;  %v6499_v44 = vld [vmem:[%s9195_s2 + $0x3ec] ss:$16 sps:$4 sm:$0xff]  }
 0x295   :  { %4499 = vmatprep.subr.bf16.mxu0 %v6442_v1  ;;  %4757 = vmatprep.subr.bf16.mxu1 %v6445_v36  ;;  %v2032_v1 = vrot.slane %v2030_v49, 1  ;;  %v2060_v36 = vrot.slane %v2058_v41, 1  ;;  %v6544_v49 = vld [vmem:[%s9195_s2 + $0x4e4] ss:$16 sps:$4 sm:$0xff]   ;;  %v6547_v41 = vld [vmem:[%s9195_s2 + $0x4ec] ss:$16 sps:$4 sm:$0xff]  }
 0x298   :  { %4500 = vmatpush1.bf16.msra.mxu0 %v6440_v45  ;;  %4758 = vmatpush1.bf16.msra.mxu1 %v6443_v17  ;;  %v6494_v45 = vld [vmem:[%s9195_s2 + $0x3e0] ss:$16 sps:$4 sm:$0xff]   ;;  %v6497_v17 = vld [vmem:[%s9195_s2 + $0x3e8] ss:$16 sps:$4 sm:$0xff]  }
 0x299   :  { %4501 = vmatprep.subr.bf16.mxu0 %v6448_v50  ;;  %4759 = vmatprep.subr.bf16.mxu1 %v6451_v51  ;;  %v2028_v50 = vshrl.u32 %v7979_v0, 16  ;;  %v2056_v51 = vshrl.u32 %v7989_v13, 16  ;;  %v6500_v0 = vld [vmem:[%s9195_s2 + $0x400] ss:$16 sps:$4 sm:$0xff]   ;;  %v5569_v13 = vcombine.low %v8048_v19, %v8061_v46  ;;  %v6509_v46 = vld [vmem:[%s9195_s2 + $0x428] ss:$16 sps:$4 sm:$0xff]  }
 0x29a   :  { %v6506_v19 = vld [vmem:[%s9195_s2 + $0x420] ss:$16 sps:$4 sm:$0xff]  }
 0x29c   :  { %4502 = vmatpush1.bf16.msra.mxu0 %v6446_v2  ;;  %4760 = vmatpush1.bf16.msra.mxu1 %v6449_v54  ;;  %v6502_v2 = vld [vmem:[%s9195_s2 + $0x404] ss:$16 sps:$4 sm:$0xff]   ;;  %v6505_v54 = vld [vmem:[%s9195_s2 + $0x40c] ss:$16 sps:$4 sm:$0xff]  }
 0x29d   :  { %4503 = vmatprep.subr.bf16.mxu0 %v6454_v58  ;;  %4761 = vmatprep.subr.bf16.mxu1 %v6457_v39  ;;  %v2033_v58 = vor.u32 %v2032_v1, %v2028_v50  ;;  %v2061_v39 = vor.u32 %v2060_v36, %v2056_v51  ;;  %v6548_v1 = vld [vmem:[%s9195_s2 + $0x500] ss:$16 sps:$4 sm:$0xff]   ;;  %v6551_v36 = vld [vmem:[%s9195_s2 + $0x508] ss:$16 sps:$4 sm:$0xff]  }
 0x29e   :  { %v6554_v50 = vld [vmem:[%s9195_s2 + $0x520] ss:$16 sps:$4 sm:$0xff]   ;;  %v6557_v51 = vld [vmem:[%s9195_s2 + $0x528] ss:$16 sps:$4 sm:$0xff]  }
 0x2a0   :  { %4504 = vmatpush1.bf16.msra.mxu0 %v6452_v6  ;;  %4762 = vmatpush1.bf16.msra.mxu1 %v6455_v40  ;;  %v6503_v6 = vld [vmem:[%s9195_s2 + $0x408] ss:$16 sps:$4 sm:$0xff]   ;;  %v5572_v40 = vcombine.low %v2033_v58, %v2061_v39  ;;  %v6560_v58 = vld [vmem:[%s9195_s2 + $0x540] ss:$16 sps:$4 sm:$0xff]  }
 0x2a1   :  { %4505 = vmatprep.subr.bf16.mxu0 %v6460_v61  ;;  %4763 = vmatprep.subr.bf16.mxu1 %v6463_v62  ;;  %v6508_v61 = vld [vmem:[%s9195_s2 + $0x424] ss:$16 sps:$4 sm:$0xff]   ;;  %v6511_v62 = vld [vmem:[%s9195_s2 + $0x42c] ss:$16 sps:$4 sm:$0xff]   ;;  %v6563_v39 = vld [vmem:[%s9195_s2 + $0x548] ss:$16 sps:$4 sm:$0xff]  }
 0x2a4   :  { %4506 = vmatpush1.bf16.msra.mxu0 %v6458_v63  ;;  %4764 = vmatpush1.bf16.msra.mxu1 %v6461_v3  ;;  %v6514_v63 = vld [vmem:[%s9195_s2 + $0x444] ss:$16 sps:$4 sm:$0xff]   ;;  %v6517_v3 = vld [vmem:[%s9195_s2 + $0x44c] ss:$16 sps:$4 sm:$0xff]  }
 0x2a5   :  { %4507 = vmatprep.subr.bf16.mxu0 %v6466_v15  ;;  %4765 = vmatprep.subr.bf16.mxu1 %v6469_v16  ;;  %v6512_v15 = vld [vmem:[%s9195_s2 + $0x440] ss:$16 sps:$4 sm:$0xff]   ;;  %v6515_v16 = vld [vmem:[%s9195_s2 + $0x448] ss:$16 sps:$4 sm:$0xff]  }
 0x2a8   :  { %4508 = vmatpush1.bf16.msra.mxu0 %v6464_v8  ;;  %4766 = vmatpush1.bf16.msra.mxu1 %v6467_v4  ;;  %v6520_v8 = vld [vmem:[%s9195_s2 + $0x464] ss:$16 sps:$4 sm:$0xff]   ;;  %v6523_v4 = vld [vmem:[%s9195_s2 + $0x46c] ss:$16 sps:$4 sm:$0xff]  }
 0x2a9   :  { %4509 = vmatprep.subr.bf16.mxu0 %v6472_v10  ;;  %4767 = vmatprep.subr.bf16.mxu1 %v6475_v55  ;;  %v6518_v10 = vld [vmem:[%s9195_s2 + $0x460] ss:$16 sps:$4 sm:$0xff]   ;;  %v6521_v55 = vld [vmem:[%s9195_s2 + $0x468] ss:$16 sps:$4 sm:$0xff]  }
 0x2ac   :  { %4510 = vmatpush1.bf16.msra.mxu0 %v6470_v25  ;;  %4768 = vmatpush1.bf16.msra.mxu1 %v6473_v26  ;;  %v6526_v25 = vld [vmem:[%s9195_s2 + $0x484] ss:$16 sps:$4 sm:$0xff]   ;;  %v6529_v26 = vld [vmem:[%s9195_s2 + $0x48c] ss:$16 sps:$4 sm:$0xff]  }
 0x2ad   :  { %4511 = vmatprep.subr.bf16.mxu0 %v6478_v20  ;;  %4769 = vmatprep.subr.bf16.mxu1 %v6481_v29  ;;  %v6524_v20 = vld [vmem:[%s9195_s2 + $0x480] ss:$16 sps:$4 sm:$0xff]   ;;  %v6527_v29 = vld [vmem:[%s9195_s2 + $0x488] ss:$16 sps:$4 sm:$0xff]  }
 0x2b0   :  { %4512 = vmatpush1.bf16.msra.mxu0 %v6476_v22  ;;  %4770 = vmatpush1.bf16.msra.mxu1 %v6479_v32  ;;  %v6532_v22 = vld [vmem:[%s9195_s2 + $0x4a4] ss:$16 sps:$4 sm:$0xff]   ;;  %v6535_v32 = vld [vmem:[%s9195_s2 + $0x4ac] ss:$16 sps:$4 sm:$0xff]  }
 0x2b1   :  { %4513 = vmatprep.subr.bf16.mxu0 %v6484_v34  ;;  %4771 = vmatprep.subr.bf16.mxu1 %v6487_v9  ;;  %v6530_v34 = vld [vmem:[%s9195_s2 + $0x4a0] ss:$16 sps:$4 sm:$0xff]   ;;  %v6533_v9 = vld [vmem:[%s9195_s2 + $0x4a8] ss:$16 sps:$4 sm:$0xff]  }
 0x2b4   :  { %4514 = vmatpush1.bf16.msra.mxu0 %v6482_v24  ;;  %4772 = vmatpush1.bf16.msra.mxu1 %v6485_v59  ;;  %v6538_v24 = vld [vmem:[%s9195_s2 + $0x4c4] ss:$16 sps:$4 sm:$0xff]   ;;  %v6541_v59 = vld [vmem:[%s9195_s2 + $0x4cc] ss:$16 sps:$4 sm:$0xff]  }
 0x2b5   :  { %4515 = vmatprep.subr.bf16.mxu0 %v6490_v30  ;;  %4773 = vmatprep.subr.bf16.mxu1 %v6493_v42  ;;  %v6536_v30 = vld [vmem:[%s9195_s2 + $0x4c0] ss:$16 sps:$4 sm:$0xff]   ;;  %v6539_v42 = vld [vmem:[%s9195_s2 + $0x4c8] ss:$16 sps:$4 sm:$0xff]  }
 0x2b8   :  { %4516 = vmatpush1.bf16.msra.mxu0 %v6488_v43  ;;  %4774 = vmatpush1.bf16.msra.mxu1 %v6491_v56  ;;  %v6542_v43 = vld [vmem:[%s9195_s2 + $0x4e0] ss:$16 sps:$4 sm:$0xff]   ;;  %v6545_v56 = vld [vmem:[%s9195_s2 + $0x4e8] ss:$16 sps:$4 sm:$0xff]  }
 0x2b9   :  { %4517 = vmatprep.subr.bf16.mxu0 %v6496_v60  ;;  %4775 = vmatprep.subr.bf16.mxu1 %v6499_v44  ;;  %v6550_v60 = vld [vmem:[%s9195_s2 + $0x504] ss:$16 sps:$4 sm:$0xff]   ;;  %v6553_v44 = vld [vmem:[%s9195_s2 + $0x50c] ss:$16 sps:$4 sm:$0xff]  }
 0x2bc   :  { %4518 = vmatpush1.bf16.msra.mxu0 %v6494_v45  ;;  %4776 = vmatpush1.bf16.msra.mxu1 %v6497_v17  ;;  %v6556_v45 = vld [vmem:[%s9195_s2 + $0x524] ss:$16 sps:$4 sm:$0xff]   ;;  %v6559_v17 = vld [vmem:[%s9195_s2 + $0x52c] ss:$16 sps:$4 sm:$0xff]  }
 0x2bd   :  { %4530 = vmatprep.subr.bf16.mxu0 %v6502_v2  ;;  %4788 = vmatprep.subr.bf16.mxu1 %v6505_v54  ;;  %v6562_v2 = vld [vmem:[%s9195_s2 + $0x544] ss:$16 sps:$4 sm:$0xff]   ;;  %v6565_v54 = vld [vmem:[%s9195_s2 + $0x54c] ss:$16 sps:$4 sm:$0xff]  }
 0x2bf   :  { %4520 = vmatmul.mubr.bf16.vlgmr.msra.gmra.mrb[4].mxu0 %v5569_v13  ;;  %4778 = vmatmul.mubr.bf16.vlgmr.msra.gmra.mrb[4].mxu1 %v5569_v13  ;;  %v6571_v13 = vld [vmem:[%s9195_s2 + $0x56c] ss:$16 sps:$4 sm:$0xff]  }
 0x2c0   :  { %4531 = vmatpush1.bf16.msra.mxu0 %v6500_v0  ;;  %4562 = vmatprep.mubr.bf16.mxu0 %v5572_v40  ;;  %v6568_v0 = vld [vmem:[%s9195_s2 + $0x564] ss:$16 sps:$4 sm:$0xff]  }
 0x2c1   :  { %4789 = vmatpush1.bf16.msra.mxu1 %v6503_v6  ;;  %4820 = vmatprep.mubr.bf16.mxu1 %v5572_v40  ;;  %v6566_v6 = vld [vmem:[%s9195_s2 + $0x560] ss:$16 sps:$4 sm:$0xff]   ;;  %v6569_v40 = vld [vmem:[%s9195_s2 + $0x568] ss:$16 sps:$4 sm:$0xff]  }
 0x2c2   :  { %4532 = vmatprep.subr.bf16.mxu0 %v6508_v61  ;;  %4790 = vmatprep.subr.bf16.mxu1 %v6511_v62  ;;  %v6574_v61 = vld [vmem:[%s9195_s2 + $0x584] ss:$16 sps:$4 sm:$0xff]   ;;  %v6577_v62 = vld [vmem:[%s9195_s2 + $0x58c] ss:$16 sps:$4 sm:$0xff]  }
 0x2c4   :  { %4533 = vmatpush1.bf16.msra.mxu0 %v6506_v19  ;;  %v6572_v19 = vld [vmem:[%s9195_s2 + $0x580] ss:$16 sps:$4 sm:$0xff]  }
 0x2c5   :  { %4791 = vmatpush1.bf16.msra.mxu1 %v6509_v46  ;;  %4534 = vmatprep.subr.bf16.mxu0 %v6514_v63  ;;  %v6575_v46 = vld [vmem:[%s9195_s2 + $0x588] ss:$16 sps:$4 sm:$0xff]   ;;  %v6580_v63 = vld [vmem:[%s9195_s2 + $0x5a4] ss:$16 sps:$4 sm:$0xff]  }
 0x2c6   :  { %4792 = vmatprep.subr.bf16.mxu1 %v6517_v3  ;;  %v6583_v3 = vld [vmem:[%s9195_s2 + $0x5ac] ss:$16 sps:$4 sm:$0xff]  }
 0x2c8   :  { %4535 = vmatpush1.bf16.msra.mxu0 %v6512_v15  ;;  %v6578_v15 = vld [vmem:[%s9195_s2 + $0x5a0] ss:$16 sps:$4 sm:$0xff]  }
 0x2c9   :  { %4793 = vmatpush1.bf16.msra.mxu1 %v6515_v16  ;;  %4536 = vmatprep.subr.bf16.mxu0 %v6520_v8  ;;  %v6581_v16 = vld [vmem:[%s9195_s2 + $0x5a8] ss:$16 sps:$4 sm:$0xff]   ;;  %v6586_v8 = vld [vmem:[%s9195_s2 + $0x5c4] ss:$16 sps:$4 sm:$0xff]  }
 0x2ca   :  { %4794 = vmatprep.subr.bf16.mxu1 %v6523_v4  ;;  %v6589_v4 = vld [vmem:[%s9195_s2 + $0x5cc] ss:$16 sps:$4 sm:$0xff]  }
 0x2cc   :  { %4537 = vmatpush1.bf16.msra.mxu0 %v6518_v10  ;;  %v6584_v10 = vld [vmem:[%s9195_s2 + $0x5c0] ss:$16 sps:$4 sm:$0xff]  }
 0x2cd   :  { %4795 = vmatpush1.bf16.msra.mxu1 %v6521_v55  ;;  %4538 = vmatprep.subr.bf16.mxu0 %v6526_v25  ;;  %v6587_v55 = vld [vmem:[%s9195_s2 + $0x5c8] ss:$16 sps:$4 sm:$0xff]   ;;  %v6592_v25 = vld [vmem:[%s9195_s2 + $0x5e4] ss:$16 sps:$4 sm:$0xff]  }
 0x2ce   :  { %4796 = vmatprep.subr.bf16.mxu1 %v6529_v26  ;;  %v6595_v26 = vld [vmem:[%s9195_s2 + $0x5ec] ss:$16 sps:$4 sm:$0xff]  }
 0x2d0   :  { %4539 = vmatpush1.bf16.msra.mxu0 %v6524_v20  ;;  %v6590_v20 = vld [vmem:[%s9195_s2 + $0x5e0] ss:$16 sps:$4 sm:$0xff]  }
 0x2d1   :  { %4797 = vmatpush1.bf16.msra.mxu1 %v6527_v29  ;;  %4540 = vmatprep.subr.bf16.mxu0 %v6532_v22  ;;  %v6593_v29 = vld [vmem:[%s9195_s2 + $0x5e8] ss:$16 sps:$4 sm:$0xff]   ;;  %v6598_v22 = vld [vmem:[%s9195_s2 + $0x604] ss:$16 sps:$4 sm:$0xff]  }
 0x2d2   :  { %4798 = vmatprep.subr.bf16.mxu1 %v6535_v32  ;;  %v6601_v32 = vld [vmem:[%s9195_s2 + $0x60c] ss:$16 sps:$4 sm:$0xff]  }
 0x2d4   :  { %4541 = vmatpush1.bf16.msra.mxu0 %v6530_v34  ;;  %v6596_v34 = vld [vmem:[%s9195_s2 + $0x600] ss:$16 sps:$4 sm:$0xff]  }
 0x2d5   :  { %4799 = vmatpush1.bf16.msra.mxu1 %v6533_v9  ;;  %4542 = vmatprep.subr.bf16.mxu0 %v6538_v24  ;;  %v6599_v9 = vld [vmem:[%s9195_s2 + $0x608] ss:$16 sps:$4 sm:$0xff]   ;;  %v6604_v24 = vld [vmem:[%s9195_s2 + $0x624] ss:$16 sps:$4 sm:$0xff]  }
 0x2d6   :  { %4800 = vmatprep.subr.bf16.mxu1 %v6541_v59  ;;  %v6607_v59 = vld [vmem:[%s9195_s2 + $0x62c] ss:$16 sps:$4 sm:$0xff]  }
 0x2d8   :  { %4543 = vmatpush1.bf16.msra.mxu0 %v6536_v30  ;;  %v6602_v30 = vld [vmem:[%s9195_s2 + $0x620] ss:$16 sps:$4 sm:$0xff]  }
 0x2d9   :  { %4801 = vmatpush1.bf16.msra.mxu1 %v6539_v42  ;;  %4544 = vmatprep.subr.bf16.mxu0 %v6544_v49  ;;  %v6605_v42 = vld [vmem:[%s9195_s2 + $0x628] ss:$16 sps:$4 sm:$0xff]   ;;  %v6610_v49 = vld [vmem:[%s9195_s2 + $0x644] ss:$16 sps:$4 sm:$0xff]  }
 0x2da   :  { %4802 = vmatprep.subr.bf16.mxu1 %v6547_v41  ;;  %v6608_v41 = vld [vmem:[%s9195_s2 + $0x640] ss:$16 sps:$4 sm:$0xff]  }
 0x2dc   :  { %4545 = vmatpush1.bf16.msra.mxu0 %v6542_v43  ;;  %v6611_v43 = vld [vmem:[%s9195_s2 + $0x648] ss:$16 sps:$4 sm:$0xff]  }
 0x2dd   :  { %4803 = vmatpush1.bf16.msra.mxu1 %v6545_v56  ;;  %4546 = vmatprep.subr.bf16.mxu0 %v6550_v60  ;;  %v6619_v56 = vld [vmem:[%s9195_s2 + $0x66c] ss:$16 sps:$4 sm:$0xff]   ;;  %v6614_v60 = vld [vmem:[%s9195_s2 + $0x660] ss:$16 sps:$4 sm:$0xff]  }
 0x2de   :  { %4804 = vmatprep.subr.bf16.mxu1 %v6553_v44  ;;  %v6617_v44 = vld [vmem:[%s9195_s2 + $0x668] ss:$16 sps:$4 sm:$0xff]  }
 0x2e0   :  { %4547 = vmatpush1.bf16.msra.mxu0 %v6548_v1  ;;  %v6622_v1 = vld [vmem:[%s9195_s2 + $0x684] ss:$16 sps:$4 sm:$0xff]  }
 0x2e1   :  { %4805 = vmatpush1.bf16.msra.mxu1 %v6551_v36  ;;  %4548 = vmatprep.subr.bf16.mxu0 %v6556_v45  ;;  %v6625_v36 = vld [vmem:[%s9195_s2 + $0x68c] ss:$16 sps:$4 sm:$0xff]   ;;  %v6620_v45 = vld [vmem:[%s9195_s2 + $0x680] ss:$16 sps:$4 sm:$0xff]  }
 0x2e2   :  { %4806 = vmatprep.subr.bf16.mxu1 %v6559_v17  ;;  %v6623_v17 = vld [vmem:[%s9195_s2 + $0x688] ss:$16 sps:$4 sm:$0xff]  }
 0x2e4   :  { %4549 = vmatpush1.bf16.msra.mxu0 %v6554_v50  ;;  %v6628_v50 = vld [vmem:[%s9195_s2 + $0x6a4] ss:$16 sps:$4 sm:$0xff]  }
 0x2e5   :  { %4807 = vmatpush1.bf16.msra.mxu1 %v6557_v51  ;;  %4550 = vmatprep.subr.bf16.mxu0 %v6562_v2  ;;  %v6631_v51 = vld [vmem:[%s9195_s2 + $0x6ac] ss:$16 sps:$4 sm:$0xff]   ;;  %v6626_v2 = vld [vmem:[%s9195_s2 + $0x6a0] ss:$16 sps:$4 sm:$0xff]  }
 0x2e6   :  { %4808 = vmatprep.subr.bf16.mxu1 %v6565_v54  ;;  %v6629_v54 = vld [vmem:[%s9195_s2 + $0x6a8] ss:$16 sps:$4 sm:$0xff]  }
 0x2e8   :  { %4551 = vmatpush1.bf16.msra.mxu0 %v6560_v58  ;;  %v6634_v58 = vld [vmem:[%s9195_s2 + $0x6c4] ss:$16 sps:$4 sm:$0xff]  }
 0x2e9   :  { %4809 = vmatpush1.bf16.msra.mxu1 %v6563_v39  ;;  %4552 = vmatprep.subr.bf16.mxu0 %v6568_v0  ;;  %v6637_v39 = vld [vmem:[%s9195_s2 + $0x6cc] ss:$16 sps:$4 sm:$0xff]   ;;  %v6632_v0 = vld [vmem:[%s9195_s2 + $0x6c0] ss:$16 sps:$4 sm:$0xff]  }
 0x2ea   :  { %4810 = vmatprep.subr.bf16.mxu1 %v6571_v13  ;;  %v6635_v13 = vld [vmem:[%s9195_s2 + $0x6c8] ss:$16 sps:$4 sm:$0xff]  }
 0x2ec   :  { %4553 = vmatpush1.bf16.msra.mxu0 %v6566_v6  ;;  %v6640_v6 = vld [vmem:[%s9195_s2 + $0x6e4] ss:$16 sps:$4 sm:$0xff]  }
 0x2ed   :  { %4811 = vmatpush1.bf16.msra.mxu1 %v6569_v40  ;;  %4554 = vmatprep.subr.bf16.mxu0 %v6574_v61  ;;  %v6643_v40 = vld [vmem:[%s9195_s2 + $0x6ec] ss:$16 sps:$4 sm:$0xff]   ;;  %v6638_v61 = vld [vmem:[%s9195_s2 + $0x6e0] ss:$16 sps:$4 sm:$0xff]  }
 0x2ee   :  { %4812 = vmatprep.subr.bf16.mxu1 %v6577_v62  ;;  %v6641_v62 = vld [vmem:[%s9195_s2 + $0x6e8] ss:$16 sps:$4 sm:$0xff]  }
 0x2f0   :  { %4555 = vmatpush1.bf16.msra.mxu0 %v6572_v19  ;;  %v6646_v19 = vld [vmem:[%s9195_s2 + $0x704] ss:$16 sps:$4 sm:$0xff]  }
 0x2f1   :  { %4813 = vmatpush1.bf16.msra.mxu1 %v6575_v46  ;;  %4556 = vmatprep.subr.bf16.mxu0 %v6580_v63  ;;  %v6649_v46 = vld [vmem:[%s9195_s2 + $0x70c] ss:$16 sps:$4 sm:$0xff]   ;;  %v6644_v63 = vld [vmem:[%s9195_s2 + $0x700] ss:$16 sps:$4 sm:$0xff]  }
 0x2f2   :  { %4814 = vmatprep.subr.bf16.mxu1 %v6583_v3  ;;  %v6647_v3 = vld [vmem:[%s9195_s2 + $0x708] ss:$16 sps:$4 sm:$0xff]  }
 0x2f4   :  { %4557 = vmatpush1.bf16.msra.mxu0 %v6578_v15  ;;  %v6652_v15 = vld [vmem:[%s9195_s2 + $0x724] ss:$16 sps:$4 sm:$0xff]  }
 0x2f5   :  { %4815 = vmatpush1.bf16.msra.mxu1 %v6581_v16  ;;  %4558 = vmatprep.subr.bf16.mxu0 %v6586_v8  ;;  %v6655_v16 = vld [vmem:[%s9195_s2 + $0x72c] ss:$16 sps:$4 sm:$0xff]   ;;  %v6650_v8 = vld [vmem:[%s9195_s2 + $0x720] ss:$16 sps:$4 sm:$0xff]  }
 0x2f6   :  { %4816 = vmatprep.subr.bf16.mxu1 %v6589_v4  ;;  %v6653_v4 = vld [vmem:[%s9195_s2 + $0x728] ss:$16 sps:$4 sm:$0xff]  }
 0x2f8   :  { %4559 = vmatpush1.bf16.msra.mxu0 %v6584_v10  ;;  %v6658_v10 = vld [vmem:[%s9195_s2 + $0x744] ss:$16 sps:$4 sm:$0xff]  }
 0x2f9   :  { %4817 = vmatpush1.bf16.msra.mxu1 %v6587_v55  ;;  %4560 = vmatprep.subr.bf16.mxu0 %v6592_v25  ;;  %v6661_v55 = vld [vmem:[%s9195_s2 + $0x74c] ss:$16 sps:$4 sm:$0xff]   ;;  %v6656_v25 = vld [vmem:[%s9195_s2 + $0x740] ss:$16 sps:$4 sm:$0xff]  }
 0x2fa   :  { %4818 = vmatprep.subr.bf16.mxu1 %v6595_v26  ;;  %v6659_v26 = vld [vmem:[%s9195_s2 + $0x748] ss:$16 sps:$4 sm:$0xff]  }
 0x2fc   :  { %4561 = vmatpush1.bf16.msra.mxu0 %v6590_v20  ;;  %v6664_v20 = vld [vmem:[%s9195_s2 + $0x764] ss:$16 sps:$4 sm:$0xff]  }
 0x2fd   :  { %4819 = vmatpush1.bf16.msra.mxu1 %v6593_v29  ;;  %4573 = vmatprep.subr.bf16.mxu0 %v6598_v22  ;;  %v6667_v29 = vld [vmem:[%s9195_s2 + $0x76c] ss:$16 sps:$4 sm:$0xff]   ;;  %v6662_v22 = vld [vmem:[%s9195_s2 + $0x760] ss:$16 sps:$4 sm:$0xff]  }
 0x2fe   :  { %4831 = vmatprep.subr.bf16.mxu1 %v6601_v32  ;;  %v6665_v32 = vld [vmem:[%s9195_s2 + $0x768] ss:$16 sps:$4 sm:$0xff]  }
 0x2ff   :  { %4563 = vmatmul.mubr.bf16.vlgmr.msra.gmra.mrb[4].mxu0 %v8080_v57 }
 0x300   :  { %4821 = vmatmul.mubr.bf16.vlgmr.msra.gmra.mrb[4].mxu1 %v8080_v57  ;;  %4574 = vmatpush1.bf16.msra.mxu0 %v6596_v34  ;;  %v6613_v57 = vld [vmem:[%s9195_s2 + $0x64c] ss:$16 sps:$4 sm:$0xff]   ;;  %v6670_v34 = vld [vmem:[%s9195_s2 + $0x784] ss:$16 sps:$4 sm:$0xff]  }
 0x301   :  { %4605 = vmatprep.mubr.bf16.mxu0 %v8098_v31  ;;  %4832 = vmatpush1.bf16.msra.mxu1 %v6599_v9  ;;  %v6673_v9 = vld [vmem:[%s9195_s2 + $0x78c] ss:$16 sps:$4 sm:$0xff]  }
 0x302   :  { %4863 = vmatprep.mubr.bf16.mxu1 %v8098_v31  ;;  %4575 = vmatprep.subr.bf16.mxu0 %v6604_v24  ;;  %v6616_v31 = vld [vmem:[%s9195_s2 + $0x664] ss:$16 sps:$4 sm:$0xff]   ;;  %v6668_v24 = vld [vmem:[%s9195_s2 + $0x780] ss:$16 sps:$4 sm:$0xff]  }
 0x303   :  { %4833 = vmatprep.subr.bf16.mxu1 %v6607_v59  ;;  %v6671_v59 = vld [vmem:[%s9195_s2 + $0x788] ss:$16 sps:$4 sm:$0xff]  }
 0x304   :  { %4576 = vmatpush1.bf16.msra.mxu0 %v6602_v30  ;;  %v6676_v30 = vld [vmem:[%s9195_s2 + $0x7a4] ss:$16 sps:$4 sm:$0xff]  }
 0x305   :  { %4834 = vmatpush1.bf16.msra.mxu1 %v6605_v42  ;;  %4577 = vmatprep.subr.bf16.mxu0 %v6610_v49  ;;  %v6679_v42 = vld [vmem:[%s9195_s2 + $0x7ac] ss:$16 sps:$4 sm:$0xff]   ;;  %v6674_v49 = vld [vmem:[%s9195_s2 + $0x7a0] ss:$16 sps:$4 sm:$0xff]  }
 0x306   :  { %4835 = vmatprep.subr.bf16.mxu1 %v6613_v57  ;;  %v6677_v57 = vld [vmem:[%s9195_s2 + $0x7a8] ss:$16 sps:$4 sm:$0xff]  }
 0x308   :  { %4578 = vmatpush1.bf16.msra.mxu0 %v6608_v41  ;;  %v6682_v41 = vld [vmem:[%s9195_s2 + $0x7c4] ss:$16 sps:$4 sm:$0xff]  }
 0x309   :  { %4836 = vmatpush1.bf16.msra.mxu1 %v6611_v43  ;;  %4579 = vmatprep.subr.bf16.mxu0 %v6616_v31  ;;  %v6685_v43 = vld [vmem:[%s9195_s2 + $0x7cc] ss:$16 sps:$4 sm:$0xff]   ;;  %v6680_v31 = vld [vmem:[%s9195_s2 + $0x7c0] ss:$16 sps:$4 sm:$0xff]  }
 0x30a   :  { %4837 = vmatprep.subr.bf16.mxu1 %v6619_v56  ;;  %v6683_v56 = vld [vmem:[%s9195_s2 + $0x7c8] ss:$16 sps:$4 sm:$0xff]  }
 0x30c   :  { %4580 = vmatpush1.bf16.msra.mxu0 %v6614_v60  ;;  %v6688_v60 = vld [vmem:[%s9195_s2 + $0x7e4] ss:$16 sps:$4 sm:$0xff]  }
 0x30d   :  { %4838 = vmatpush1.bf16.msra.mxu1 %v6617_v44  ;;  %4581 = vmatprep.subr.bf16.mxu0 %v6622_v1  ;;  %v6691_v44 = vld [vmem:[%s9195_s2 + $0x7ec] ss:$16 sps:$4 sm:$0xff]   ;;  %v6686_v1 = vld [vmem:[%s9195_s2 + $0x7e0] ss:$16 sps:$4 sm:$0xff]  }
 0x30e   :  { %4839 = vmatprep.subr.bf16.mxu1 %v6625_v36  ;;  %v6689_v36 = vld [vmem:[%s9195_s2 + $0x7e8] ss:$16 sps:$4 sm:$0xff]  }
 0x310   :  { %4582 = vmatpush1.bf16.msra.mxu0 %v6620_v45  ;;  %v6694_v45 = vld [vmem:[%s9195_s2 + $0x804] ss:$16 sps:$4 sm:$0xff]  }
 0x311   :  { %4840 = vmatpush1.bf16.msra.mxu1 %v6623_v17  ;;  %4583 = vmatprep.subr.bf16.mxu0 %v6628_v50  ;;  %v6697_v17 = vld [vmem:[%s9195_s2 + $0x80c] ss:$16 sps:$4 sm:$0xff]   ;;  %v6692_v50 = vld [vmem:[%s9195_s2 + $0x800] ss:$16 sps:$4 sm:$0xff]  }
 0x312   :  { %4841 = vmatprep.subr.bf16.mxu1 %v6631_v51  ;;  %v6695_v51 = vld [vmem:[%s9195_s2 + $0x808] ss:$16 sps:$4 sm:$0xff]  }
 0x314   :  { %4584 = vmatpush1.bf16.msra.mxu0 %v6626_v2  ;;  %v6700_v2 = vld [vmem:[%s9195_s2 + $0x824] ss:$16 sps:$4 sm:$0xff]  }
 0x315   :  { %4842 = vmatpush1.bf16.msra.mxu1 %v6629_v54  ;;  %4585 = vmatprep.subr.bf16.mxu0 %v6634_v58  ;;  %v6703_v54 = vld [vmem:[%s9195_s2 + $0x82c] ss:$16 sps:$4 sm:$0xff]   ;;  %v6698_v58 = vld [vmem:[%s9195_s2 + $0x820] ss:$16 sps:$4 sm:$0xff]  }
 0x316   :  { %4843 = vmatprep.subr.bf16.mxu1 %v6637_v39  ;;  %v6701_v39 = vld [vmem:[%s9195_s2 + $0x828] ss:$16 sps:$4 sm:$0xff]  }
 0x318   :  { %4586 = vmatpush1.bf16.msra.mxu0 %v6632_v0  ;;  %v6706_v0 = vld [vmem:[%s9195_s2 + $0x844] ss:$16 sps:$4 sm:$0xff]  }
 0x319   :  { %4844 = vmatpush1.bf16.msra.mxu1 %v6635_v13  ;;  %4587 = vmatprep.subr.bf16.mxu0 %v6640_v6  ;;  %v6704_v13 = vld [vmem:[%s9195_s2 + $0x840] ss:$16 sps:$4 sm:$0xff]   ;;  %v6707_v6 = vld [vmem:[%s9195_s2 + $0x848] ss:$16 sps:$4 sm:$0xff]  }
 0x31a   :  { %4845 = vmatprep.subr.bf16.mxu1 %v6643_v40  ;;  %v6715_v40 = vld [vmem:[%s9195_s2 + $0x86c] ss:$16 sps:$4 sm:$0xff]  }
 0x31c   :  { %4588 = vmatpush1.bf16.msra.mxu0 %v6638_v61  ;;  %v6710_v61 = vld [vmem:[%s9195_s2 + $0x860] ss:$16 sps:$4 sm:$0xff]  }
 0x31d   :  { %4846 = vmatpush1.bf16.msra.mxu1 %v6641_v62  ;;  %4589 = vmatprep.subr.bf16.mxu0 %v6646_v19  ;;  %v6713_v62 = vld [vmem:[%s9195_s2 + $0x868] ss:$16 sps:$4 sm:$0xff]   ;;  %v6718_v19 = vld [vmem:[%s9195_s2 + $0x884] ss:$16 sps:$4 sm:$0xff]  }
 0x31e   :  { %4847 = vmatprep.subr.bf16.mxu1 %v6649_v46  ;;  %v6721_v46 = vld [vmem:[%s9195_s2 + $0x88c] ss:$16 sps:$4 sm:$0xff]  }
 0x320   :  { %4590 = vmatpush1.bf16.msra.mxu0 %v6644_v63  ;;  %v6716_v63 = vld [vmem:[%s9195_s2 + $0x880] ss:$16 sps:$4 sm:$0xff]  }
 0x321   :  { %4848 = vmatpush1.bf16.msra.mxu1 %v6647_v3  ;;  %4591 = vmatprep.subr.bf16.mxu0 %v6652_v15  ;;  %v6719_v3 = vld [vmem:[%s9195_s2 + $0x888] ss:$16 sps:$4 sm:$0xff]   ;;  %v6724_v15 = vld [vmem:[%s9195_s2 + $0x8a4] ss:$16 sps:$4 sm:$0xff]  }
 0x322   :  { %4849 = vmatprep.subr.bf16.mxu1 %v6655_v16  ;;  %v6727_v16 = vld [vmem:[%s9195_s2 + $0x8ac] ss:$16 sps:$4 sm:$0xff]  }
 0x324   :  { %4592 = vmatpush1.bf16.msra.mxu0 %v6650_v8  ;;  %v6722_v8 = vld [vmem:[%s9195_s2 + $0x8a0] ss:$16 sps:$4 sm:$0xff]  }
 0x325   :  { %4850 = vmatpush1.bf16.msra.mxu1 %v6653_v4  ;;  %4593 = vmatprep.subr.bf16.mxu0 %v6658_v10  ;;  %v6725_v4 = vld [vmem:[%s9195_s2 + $0x8a8] ss:$16 sps:$4 sm:$0xff]   ;;  %v6730_v10 = vld [vmem:[%s9195_s2 + $0x8c4] ss:$16 sps:$4 sm:$0xff]  }
 0x326   :  { %4851 = vmatprep.subr.bf16.mxu1 %v6661_v55  ;;  %v6733_v55 = vld [vmem:[%s9195_s2 + $0x8cc] ss:$16 sps:$4 sm:$0xff]  }
 0x328   :  { %4594 = vmatpush1.bf16.msra.mxu0 %v6656_v25  ;;  %v6728_v25 = vld [vmem:[%s9195_s2 + $0x8c0] ss:$16 sps:$4 sm:$0xff]  }
 0x329   :  { %4852 = vmatpush1.bf16.msra.mxu1 %v6659_v26  ;;  %4595 = vmatprep.subr.bf16.mxu0 %v6664_v20  ;;  %v6731_v26 = vld [vmem:[%s9195_s2 + $0x8c8] ss:$16 sps:$4 sm:$0xff]   ;;  %v6736_v20 = vld [vmem:[%s9195_s2 + $0x8e4] ss:$16 sps:$4 sm:$0xff]  }
 0x32a   :  { %4853 = vmatprep.subr.bf16.mxu1 %v6667_v29  ;;  %v6739_v29 = vld [vmem:[%s9195_s2 + $0x8ec] ss:$16 sps:$4 sm:$0xff]  }
 0x32c   :  { %4596 = vmatpush1.bf16.msra.mxu0 %v6662_v22  ;;  %v6734_v22 = vld [vmem:[%s9195_s2 + $0x8e0] ss:$16 sps:$4 sm:$0xff]  }
 0x32d   :  { %4854 = vmatpush1.bf16.msra.mxu1 %v6665_v32  ;;  %4597 = vmatprep.subr.bf16.mxu0 %v6670_v34  ;;  %v6737_v32 = vld [vmem:[%s9195_s2 + $0x8e8] ss:$16 sps:$4 sm:$0xff]   ;;  %v6742_v34 = vld [vmem:[%s9195_s2 + $0x904] ss:$16 sps:$4 sm:$0xff]  }
 0x32e   :  { %4855 = vmatprep.subr.bf16.mxu1 %v6673_v9  ;;  %v6745_v9 = vld [vmem:[%s9195_s2 + $0x90c] ss:$16 sps:$4 sm:$0xff]  }
 0x330   :  { %4598 = vmatpush1.bf16.msra.mxu0 %v6668_v24  ;;  %v6740_v24 = vld [vmem:[%s9195_s2 + $0x900] ss:$16 sps:$4 sm:$0xff]  }
 0x331   :  { %4856 = vmatpush1.bf16.msra.mxu1 %v6671_v59  ;;  %4599 = vmatprep.subr.bf16.mxu0 %v6676_v30  ;;  %v6743_v59 = vld [vmem:[%s9195_s2 + $0x908] ss:$16 sps:$4 sm:$0xff]   ;;  %v6748_v30 = vld [vmem:[%s9195_s2 + $0x924] ss:$16 sps:$4 sm:$0xff]  }
 0x332   :  { %4857 = vmatprep.subr.bf16.mxu1 %v6679_v42  ;;  %v6751_v42 = vld [vmem:[%s9195_s2 + $0x92c] ss:$16 sps:$4 sm:$0xff]  }
 0x334   :  { %4600 = vmatpush1.bf16.msra.mxu0 %v6674_v49  ;;  %v6746_v49 = vld [vmem:[%s9195_s2 + $0x920] ss:$16 sps:$4 sm:$0xff]  }
 0x335   :  { %4858 = vmatpush1.bf16.msra.mxu1 %v6677_v57  ;;  %4601 = vmatprep.subr.bf16.mxu0 %v6682_v41  ;;  %v6749_v57 = vld [vmem:[%s9195_s2 + $0x928] ss:$16 sps:$4 sm:$0xff]   ;;  %v6754_v41 = vld [vmem:[%s9195_s2 + $0x944] ss:$16 sps:$4 sm:$0xff]  }
 0x336   :  { %4859 = vmatprep.subr.bf16.mxu1 %v6685_v43  ;;  %v6757_v43 = vld [vmem:[%s9195_s2 + $0x94c] ss:$16 sps:$4 sm:$0xff]  }
 0x338   :  { %4602 = vmatpush1.bf16.msra.mxu0 %v6680_v31  ;;  %v6752_v31 = vld [vmem:[%s9195_s2 + $0x940] ss:$16 sps:$4 sm:$0xff]  }
 0x339   :  { %4860 = vmatpush1.bf16.msra.mxu1 %v6683_v56  ;;  %4603 = vmatprep.subr.bf16.mxu0 %v6688_v60  ;;  %v6755_v56 = vld [vmem:[%s9195_s2 + $0x948] ss:$16 sps:$4 sm:$0xff]   ;;  %v6760_v60 = vld [vmem:[%s9195_s2 + $0x964] ss:$16 sps:$4 sm:$0xff]  }
 0x33a   :  { %4861 = vmatprep.subr.bf16.mxu1 %v6691_v44  ;;  %v6763_v44 = vld [vmem:[%s9195_s2 + $0x96c] ss:$16 sps:$4 sm:$0xff]  }
 0x33c   :  { %4604 = vmatpush1.bf16.msra.mxu0 %v6686_v1  ;;  %v6758_v1 = vld [vmem:[%s9195_s2 + $0x960] ss:$16 sps:$4 sm:$0xff]  }
 0x33d   :  { %4862 = vmatpush1.bf16.msra.mxu1 %v6689_v36  ;;  %4616 = vmatprep.subr.bf16.mxu0 %v6694_v45  ;;  %v6761_v36 = vld [vmem:[%s9195_s2 + $0x968] ss:$16 sps:$4 sm:$0xff]   ;;  %v6766_v45 = vld [vmem:[%s9195_s2 + $0x984] ss:$16 sps:$4 sm:$0xff]  }
 0x33e   :  { %4874 = vmatprep.subr.bf16.mxu1 %v6697_v17  ;;  %v6769_v17 = vld [vmem:[%s9195_s2 + $0x98c] ss:$16 sps:$4 sm:$0xff]  }
 0x33f   :  { %4606 = vmatmul.mubr.bf16.vlgmr.msra.gmra.mrb[4].mxu0 %v8123_v28 }
 0x340   :  { %4864 = vmatmul.mubr.bf16.vlgmr.msra.gmra.mrb[4].mxu1 %v8123_v28  ;;  %4617 = vmatpush1.bf16.msra.mxu0 %v6692_v50  ;;  %v6709_v28 = vld [vmem:[%s9195_s2 + $0x84c] ss:$16 sps:$4 sm:$0xff]   ;;  %v6764_v50 = vld [vmem:[%s9195_s2 + $0x980] ss:$16 sps:$4 sm:$0xff]  }
 0x341   :  { %4648 = vmatprep.mubr.bf16.mxu0 %v8100_v37  ;;  %4875 = vmatpush1.bf16.msra.mxu1 %v6695_v51  ;;  %v6767_v51 = vld [vmem:[%s9195_s2 + $0x988] ss:$16 sps:$4 sm:$0xff]  }
 0x342   :  { %4906 = vmatprep.mubr.bf16.mxu1 %v8100_v37  ;;  %4618 = vmatprep.subr.bf16.mxu0 %v6700_v2  ;;  %v6712_v37 = vld [vmem:[%s9195_s2 + $0x864] ss:$16 sps:$4 sm:$0xff]  }
 0x343   :  { %4876 = vmatprep.subr.bf16.mxu1 %v6703_v54  ;;  %v6772_v2 = vld [vmem:[%s9195_s2 + $0x9a4] ss:$16 sps:$4 sm:$0xff]   ;;  %v6775_v54 = vld [vmem:[%s9195_s2 + $0x9ac] ss:$16 sps:$4 sm:$0xff]  }
 0x344   :  { %4619 = vmatpush1.bf16.msra.mxu0 %v6698_v58  ;;  %v6770_v58 = vld [vmem:[%s9195_s2 + $0x9a0] ss:$16 sps:$4 sm:$0xff]  }
 0x345   :  { %4877 = vmatpush1.bf16.msra.mxu1 %v6701_v39  ;;  %4620 = vmatprep.subr.bf16.mxu0 %v6706_v0  ;;  %v6773_v39 = vld [vmem:[%s9195_s2 + $0x9a8] ss:$16 sps:$4 sm:$0xff]   ;;  %v6778_v0 = vld [vmem:[%s9195_s2 + $0x9c4] ss:$16 sps:$4 sm:$0xff]  }
 0x346   :  { %4878 = vmatprep.subr.bf16.mxu1 %v6709_v28  ;;  %v6781_v28 = vld [vmem:[%s9195_s2 + $0x9cc] ss:$16 sps:$4 sm:$0xff]  }
 0x348   :  { %4621 = vmatpush1.bf16.msra.mxu0 %v6704_v13  ;;  %v6776_v13 = vld [vmem:[%s9195_s2 + $0x9c0] ss:$16 sps:$4 sm:$0xff]  }
 0x349   :  { %4879 = vmatpush1.bf16.msra.mxu1 %v6707_v6  ;;  %4622 = vmatprep.subr.bf16.mxu0 %v6712_v37  ;;  %v6779_v6 = vld [vmem:[%s9195_s2 + $0x9c8] ss:$16 sps:$4 sm:$0xff]   ;;  %v6784_v37 = vld [vmem:[%s9195_s2 + $0x9e4] ss:$16 sps:$4 sm:$0xff]  }
 0x34a   :  { %4880 = vmatprep.subr.bf16.mxu1 %v6715_v40  ;;  %v6787_v40 = vld [vmem:[%s9195_s2 + $0x9ec] ss:$16 sps:$4 sm:$0xff]  }
 0x34c   :  { %4623 = vmatpush1.bf16.msra.mxu0 %v6710_v61  ;;  %v6782_v61 = vld [vmem:[%s9195_s2 + $0x9e0] ss:$16 sps:$4 sm:$0xff]  }
 0x34d   :  { %4881 = vmatpush1.bf16.msra.mxu1 %v6713_v62  ;;  %4624 = vmatprep.subr.bf16.mxu0 %v6718_v19  ;;  %v6785_v62 = vld [vmem:[%s9195_s2 + $0x9e8] ss:$16 sps:$4 sm:$0xff]   ;;  %v6790_v19 = vld [vmem:[%s9195_s2 + $0xa04] ss:$16 sps:$4 sm:$0xff]  }
 0x34e   :  { %4882 = vmatprep.subr.bf16.mxu1 %v6721_v46  ;;  %v6793_v46 = vld [vmem:[%s9195_s2 + $0xa0c] ss:$16 sps:$4 sm:$0xff]  }
 0x350   :  { %4625 = vmatpush1.bf16.msra.mxu0 %v6716_v63  ;;  %v6788_v63 = vld [vmem:[%s9195_s2 + $0xa00] ss:$16 sps:$4 sm:$0xff]  }
 0x351   :  { %4883 = vmatpush1.bf16.msra.mxu1 %v6719_v3  ;;  %4626 = vmatprep.subr.bf16.mxu0 %v6724_v15  ;;  %v6791_v3 = vld [vmem:[%s9195_s2 + $0xa08] ss:$16 sps:$4 sm:$0xff]   ;;  %v6796_v15 = vld [vmem:[%s9195_s2 + $0xa24] ss:$16 sps:$4 sm:$0xff]  }
 0x352   :  { %4884 = vmatprep.subr.bf16.mxu1 %v6727_v16  ;;  %v6799_v16 = vld [vmem:[%s9195_s2 + $0xa2c] ss:$16 sps:$4 sm:$0xff]  }
 0x354   :  { %4627 = vmatpush1.bf16.msra.mxu0 %v6722_v8  ;;  %v6794_v8 = vld [vmem:[%s9195_s2 + $0xa20] ss:$16 sps:$4 sm:$0xff]  }
 0x355   :  { %4885 = vmatpush1.bf16.msra.mxu1 %v6725_v4  ;;  %4628 = vmatprep.subr.bf16.mxu0 %v6730_v10  ;;  %v6797_v4 = vld [vmem:[%s9195_s2 + $0xa28] ss:$16 sps:$4 sm:$0xff]   ;;  %v6802_v10 = vld [vmem:[%s9195_s2 + $0xa44] ss:$16 sps:$4 sm:$0xff]  }
 0x356   :  { %4886 = vmatprep.subr.bf16.mxu1 %v6733_v55  ;;  %v6800_v55 = vld [vmem:[%s9195_s2 + $0xa40] ss:$16 sps:$4 sm:$0xff]  }
 0x358   :  { %4629 = vmatpush1.bf16.msra.mxu0 %v6728_v25  ;;  %v6803_v25 = vld [vmem:[%s9195_s2 + $0xa48] ss:$16 sps:$4 sm:$0xff]  }
 0x359   :  { %4887 = vmatpush1.bf16.msra.mxu1 %v6731_v26  ;;  %4630 = vmatprep.subr.bf16.mxu0 %v6736_v20  ;;  %v6811_v26 = vld [vmem:[%s9195_s2 + $0xa6c] ss:$16 sps:$4 sm:$0xff]   ;;  %v6806_v20 = vld [vmem:[%s9195_s2 + $0xa60] ss:$16 sps:$4 sm:$0xff]  }
 0x35a   :  { %4888 = vmatprep.subr.bf16.mxu1 %v6739_v29  ;;  %v6809_v29 = vld [vmem:[%s9195_s2 + $0xa68] ss:$16 sps:$4 sm:$0xff]  }
 0x35c   :  { %4631 = vmatpush1.bf16.msra.mxu0 %v6734_v22  ;;  %v6814_v22 = vld [vmem:[%s9195_s2 + $0xa84] ss:$16 sps:$4 sm:$0xff]  }
 0x35d   :  { %4889 = vmatpush1.bf16.msra.mxu1 %v6737_v32  ;;  %4632 = vmatprep.subr.bf16.mxu0 %v6742_v34  ;;  %v6817_v32 = vld [vmem:[%s9195_s2 + $0xa8c] ss:$16 sps:$4 sm:$0xff]   ;;  %v6812_v34 = vld [vmem:[%s9195_s2 + $0xa80] ss:$16 sps:$4 sm:$0xff]  }
 0x35e   :  { %4890 = vmatprep.subr.bf16.mxu1 %v6745_v9  ;;  %v6815_v9 = vld [vmem:[%s9195_s2 + $0xa88] ss:$16 sps:$4 sm:$0xff]  }
 0x360   :  { %4633 = vmatpush1.bf16.msra.mxu0 %v6740_v24  ;;  %v6820_v24 = vld [vmem:[%s9195_s2 + $0xaa4] ss:$16 sps:$4 sm:$0xff]  }
 0x361   :  { %4891 = vmatpush1.bf16.msra.mxu1 %v6743_v59  ;;  %4634 = vmatprep.subr.bf16.mxu0 %v6748_v30  ;;  %v6823_v59 = vld [vmem:[%s9195_s2 + $0xaac] ss:$16 sps:$4 sm:$0xff]   ;;  %v6818_v30 = vld [vmem:[%s9195_s2 + $0xaa0] ss:$16 sps:$4 sm:$0xff]  }
 0x362   :  { %4892 = vmatprep.subr.bf16.mxu1 %v6751_v42  ;;  %v6821_v42 = vld [vmem:[%s9195_s2 + $0xaa8] ss:$16 sps:$4 sm:$0xff]  }
 0x364   :  { %4635 = vmatpush1.bf16.msra.mxu0 %v6746_v49  ;;  %v6826_v49 = vld [vmem:[%s9195_s2 + $0xac4] ss:$16 sps:$4 sm:$0xff]  }
 0x365   :  { %4893 = vmatpush1.bf16.msra.mxu1 %v6749_v57  ;;  %4636 = vmatprep.subr.bf16.mxu0 %v6754_v41  ;;  %v6829_v57 = vld [vmem:[%s9195_s2 + $0xacc] ss:$16 sps:$4 sm:$0xff]   ;;  %v6824_v41 = vld [vmem:[%s9195_s2 + $0xac0] ss:$16 sps:$4 sm:$0xff]  }
 0x366   :  { %4894 = vmatprep.subr.bf16.mxu1 %v6757_v43  ;;  %v6827_v43 = vld [vmem:[%s9195_s2 + $0xac8] ss:$16 sps:$4 sm:$0xff]  }
 0x368   :  { %4637 = vmatpush1.bf16.msra.mxu0 %v6752_v31  ;;  %v6832_v31 = vld [vmem:[%s9195_s2 + $0xae4] ss:$16 sps:$4 sm:$0xff]  }
 0x369   :  { %4895 = vmatpush1.bf16.msra.mxu1 %v6755_v56  ;;  %4638 = vmatprep.subr.bf16.mxu0 %v6760_v60  ;;  %v6835_v56 = vld [vmem:[%s9195_s2 + $0xaec] ss:$16 sps:$4 sm:$0xff]   ;;  %v6830_v60 = vld [vmem:[%s9195_s2 + $0xae0] ss:$16 sps:$4 sm:$0xff]  }
 0x36a   :  { %4896 = vmatprep.subr.bf16.mxu1 %v6763_v44  ;;  %v6833_v44 = vld [vmem:[%s9195_s2 + $0xae8] ss:$16 sps:$4 sm:$0xff]  }
 0x36c   :  { %4639 = vmatpush1.bf16.msra.mxu0 %v6758_v1  ;;  %v6838_v1 = vld [vmem:[%s9195_s2 + $0xb04] ss:$16 sps:$4 sm:$0xff]  }
 0x36d   :  { %4897 = vmatpush1.bf16.msra.mxu1 %v6761_v36  ;;  %4640 = vmatprep.subr.bf16.mxu0 %v6766_v45  ;;  %v6841_v36 = vld [vmem:[%s9195_s2 + $0xb0c] ss:$16 sps:$4 sm:$0xff]   ;;  %v6836_v45 = vld [vmem:[%s9195_s2 + $0xb00] ss:$16 sps:$4 sm:$0xff]  }
 0x36e   :  { %4898 = vmatprep.subr.bf16.mxu1 %v6769_v17  ;;  %v6839_v17 = vld [vmem:[%s9195_s2 + $0xb08] ss:$16 sps:$4 sm:$0xff]  }
 0x370   :  { %4641 = vmatpush1.bf16.msra.mxu0 %v6764_v50  ;;  %v6844_v50 = vld [vmem:[%s9195_s2 + $0xb24] ss:$16 sps:$4 sm:$0xff]  }
 0x371   :  { %4899 = vmatpush1.bf16.msra.mxu1 %v6767_v51  ;;  %4642 = vmatprep.subr.bf16.mxu0 %v6772_v2  ;;  %v6847_v51 = vld [vmem:[%s9195_s2 + $0xb2c] ss:$16 sps:$4 sm:$0xff]   ;;  %v6842_v2 = vld [vmem:[%s9195_s2 + $0xb20] ss:$16 sps:$4 sm:$0xff]  }
 0x372   :  { %4900 = vmatprep.subr.bf16.mxu1 %v6775_v54  ;;  %v6845_v54 = vld [vmem:[%s9195_s2 + $0xb28] ss:$16 sps:$4 sm:$0xff]  }
 0x374   :  { %4643 = vmatpush1.bf16.msra.mxu0 %v6770_v58  ;;  %v6850_v58 = vld [vmem:[%s9195_s2 + $0xb44] ss:$16 sps:$4 sm:$0xff]  }
 0x375   :  { %4901 = vmatpush1.bf16.msra.mxu1 %v6773_v39  ;;  %4644 = vmatprep.subr.bf16.mxu0 %v6778_v0  ;;  %v6853_v39 = vld [vmem:[%s9195_s2 + $0xb4c] ss:$16 sps:$4 sm:$0xff]   ;;  %v6848_v0 = vld [vmem:[%s9195_s2 + $0xb40] ss:$16 sps:$4 sm:$0xff]  }
 0x376   :  { %4902 = vmatprep.subr.bf16.mxu1 %v6781_v28  ;;  %v6851_v28 = vld [vmem:[%s9195_s2 + $0xb48] ss:$16 sps:$4 sm:$0xff]  }
 0x378   :  { %4645 = vmatpush1.bf16.msra.mxu0 %v6776_v13  ;;  %v6856_v13 = vld [vmem:[%s9195_s2 + $0xb64] ss:$16 sps:$4 sm:$0xff]  }
 0x379   :  { %4903 = vmatpush1.bf16.msra.mxu1 %v6779_v6  ;;  %4646 = vmatprep.subr.bf16.mxu0 %v6784_v37  ;;  %v6859_v6 = vld [vmem:[%s9195_s2 + $0xb6c] ss:$16 sps:$4 sm:$0xff]   ;;  %v6854_v37 = vld [vmem:[%s9195_s2 + $0xb60] ss:$16 sps:$4 sm:$0xff]  }
 0x37a   :  { %4904 = vmatprep.subr.bf16.mxu1 %v6787_v40  ;;  %v6857_v40 = vld [vmem:[%s9195_s2 + $0xb68] ss:$16 sps:$4 sm:$0xff]  }
 0x37c   :  { %4647 = vmatpush1.bf16.msra.mxu0 %v6782_v61  ;;  %v6862_v61 = vld [vmem:[%s9195_s2 + $0xb84] ss:$16 sps:$4 sm:$0xff]  }
 0x37d   :  { %4905 = vmatpush1.bf16.msra.mxu1 %v6785_v62  ;;  %4659 = vmatprep.subr.bf16.mxu0 %v6790_v19  ;;  %v6865_v62 = vld [vmem:[%s9195_s2 + $0xb8c] ss:$16 sps:$4 sm:$0xff]   ;;  %v6860_v19 = vld [vmem:[%s9195_s2 + $0xb80] ss:$16 sps:$4 sm:$0xff]  }
 0x37e   :  { %4917 = vmatprep.subr.bf16.mxu1 %v6793_v46  ;;  %v6863_v46 = vld [vmem:[%s9195_s2 + $0xb88] ss:$16 sps:$4 sm:$0xff]  }
 0x37f   :  { %4649 = vmatmul.mubr.bf16.vlgmr.msra.gmra.mrb[4].mxu0 %v8113_v11 }
 0x380   :  { %4907 = vmatmul.mubr.bf16.vlgmr.msra.gmra.mrb[4].mxu1 %v8113_v11  ;;  %4660 = vmatpush1.bf16.msra.mxu0 %v6788_v63  ;;  %v6805_v11 = vld [vmem:[%s9195_s2 + $0xa4c] ss:$16 sps:$4 sm:$0xff]   ;;  %v6868_v63 = vld [vmem:[%s9195_s2 + $0xba4] ss:$16 sps:$4 sm:$0xff]  }
 0x381   :  { %4691 = vmatprep.mubr.bf16.mxu0 %v8115_v27  ;;  %4918 = vmatpush1.bf16.msra.mxu1 %v6791_v3  ;;  %v6871_v3 = vld [vmem:[%s9195_s2 + $0xbac] ss:$16 sps:$4 sm:$0xff]  }
 0x382   :  { %4949 = vmatprep.mubr.bf16.mxu1 %v8115_v27  ;;  %4661 = vmatprep.subr.bf16.mxu0 %v6796_v15  ;;  %v6808_v27 = vld [vmem:[%s9195_s2 + $0xa64] ss:$16 sps:$4 sm:$0xff]   ;;  %v6866_v15 = vld [vmem:[%s9195_s2 + $0xba0] ss:$16 sps:$4 sm:$0xff]  }
 0x383   :  { %4919 = vmatprep.subr.bf16.mxu1 %v6799_v16  ;;  %v6869_v16 = vld [vmem:[%s9195_s2 + $0xba8] ss:$16 sps:$4 sm:$0xff]  }
 0x384   :  { %4662 = vmatpush1.bf16.msra.mxu0 %v6794_v8  ;;  %v6874_v8 = vld [vmem:[%s9195_s2 + $0xbc4] ss:$16 sps:$4 sm:$0xff]  }
 0x385   :  { %4920 = vmatpush1.bf16.msra.mxu1 %v6797_v4  ;;  %4663 = vmatprep.subr.bf16.mxu0 %v6802_v10  ;;  %v6877_v4 = vld [vmem:[%s9195_s2 + $0xbcc] ss:$16 sps:$4 sm:$0xff]   ;;  %v6872_v10 = vld [vmem:[%s9195_s2 + $0xbc0] ss:$16 sps:$4 sm:$0xff]  }
 0x386   :  { %4921 = vmatprep.subr.bf16.mxu1 %v6805_v11  ;;  %v6875_v11 = vld [vmem:[%s9195_s2 + $0xbc8] ss:$16 sps:$4 sm:$0xff]  }
 0x388   :  { %4664 = vmatpush1.bf16.msra.mxu0 %v6800_v55  ;;  %v6880_v55 = vld [vmem:[%s9195_s2 + $0xbe4] ss:$16 sps:$4 sm:$0xff]  }
 0x389   :  { %4922 = vmatpush1.bf16.msra.mxu1 %v6803_v25  ;;  %4665 = vmatprep.subr.bf16.mxu0 %v6808_v27  ;;  %v6883_v25 = vld [vmem:[%s9195_s2 + $0xbec] ss:$16 sps:$4 sm:$0xff]   ;;  %v6878_v27 = vld [vmem:[%s9195_s2 + $0xbe0] ss:$16 sps:$4 sm:$0xff]  }
 0x38a   :  { %4923 = vmatprep.subr.bf16.mxu1 %v6811_v26  ;;  %v6881_v26 = vld [vmem:[%s9195_s2 + $0xbe8] ss:$16 sps:$4 sm:$0xff]  }
 0x38c   :  { %4666 = vmatpush1.bf16.msra.mxu0 %v6806_v20 }
 0x38d   :  { %4924 = vmatpush1.bf16.msra.mxu1 %v6809_v29  ;;  %4667 = vmatprep.subr.bf16.mxu0 %v6814_v22 }
 0x38e   :  { %4925 = vmatprep.subr.bf16.mxu1 %v6817_v32 }
 0x390   :  { %4668 = vmatpush1.bf16.msra.mxu0 %v6812_v34 }
 0x391   :  { %4926 = vmatpush1.bf16.msra.mxu1 %v6815_v9  ;;  %4669 = vmatprep.subr.bf16.mxu0 %v6820_v24 }
 0x392   :  { %4927 = vmatprep.subr.bf16.mxu1 %v6823_v59 }
 0x394   :  { %4670 = vmatpush1.bf16.msra.mxu0 %v6818_v30 }
 0x395   :  { %4928 = vmatpush1.bf16.msra.mxu1 %v6821_v42  ;;  %4671 = vmatprep.subr.bf16.mxu0 %v6826_v49 }
 0x396   :  { %4929 = vmatprep.subr.bf16.mxu1 %v6829_v57 }
 0x398   :  { %4672 = vmatpush1.bf16.msra.mxu0 %v6824_v41 }
 0x399   :  { %4930 = vmatpush1.bf16.msra.mxu1 %v6827_v43  ;;  %4673 = vmatprep.subr.bf16.mxu0 %v6832_v31 }
 0x39a   :  { %4931 = vmatprep.subr.bf16.mxu1 %v6835_v56 }
 0x39c   :  { %4674 = vmatpush1.bf16.msra.mxu0 %v6830_v60 }
 0x39d   :  { %4932 = vmatpush1.bf16.msra.mxu1 %v6833_v44  ;;  %4675 = vmatprep.subr.bf16.mxu0 %v6838_v1 }
 0x39e   :  { %4933 = vmatprep.subr.bf16.mxu1 %v6841_v36 }
 0x3a0   :  { %4676 = vmatpush1.bf16.msra.mxu0 %v6836_v45 }
 0x3a1   :  { %4934 = vmatpush1.bf16.msra.mxu1 %v6839_v17  ;;  %4677 = vmatprep.subr.bf16.mxu0 %v6844_v50 }
 0x3a2   :  { %4935 = vmatprep.subr.bf16.mxu1 %v6847_v51 }
 0x3a4   :  { %4678 = vmatpush1.bf16.msra.mxu0 %v6842_v2 }
 0x3a5   :  { %4936 = vmatpush1.bf16.msra.mxu1 %v6845_v54  ;;  %4679 = vmatprep.subr.bf16.mxu0 %v6850_v58 }
 0x3a6   :  { %4937 = vmatprep.subr.bf16.mxu1 %v6853_v39 }
 0x3a8   :  { %4680 = vmatpush1.bf16.msra.mxu0 %v6848_v0 }
 0x3a9   :  { %4938 = vmatpush1.bf16.msra.mxu1 %v6851_v28  ;;  %4681 = vmatprep.subr.bf16.mxu0 %v6856_v13 }
 0x3aa   :  { %4939 = vmatprep.subr.bf16.mxu1 %v6859_v6 }
 0x3ac   :  { %4682 = vmatpush1.bf16.msra.mxu0 %v6854_v37 }
 0x3ad   :  { %4940 = vmatpush1.bf16.msra.mxu1 %v6857_v40  ;;  %4683 = vmatprep.subr.bf16.mxu0 %v6862_v61 }
 0x3ae   :  { %4941 = vmatprep.subr.bf16.mxu1 %v6865_v62 }
 0x3b0   :  { %4684 = vmatpush1.bf16.msra.mxu0 %v6860_v19 }
 0x3b1   :  { %4942 = vmatpush1.bf16.msra.mxu1 %v6863_v46  ;;  %4685 = vmatprep.subr.bf16.mxu0 %v6868_v63 }
 0x3b2   :  { %4943 = vmatprep.subr.bf16.mxu1 %v6871_v3 }
 0x3b4   :  { %4686 = vmatpush1.bf16.msra.mxu0 %v6866_v15 }
 0x3b5   :  { %4944 = vmatpush1.bf16.msra.mxu1 %v6869_v16  ;;  %4687 = vmatprep.subr.bf16.mxu0 %v6874_v8 }
 0x3b6   :  { %4945 = vmatprep.subr.bf16.mxu1 %v6877_v4 }
 0x3b8   :  { %4688 = vmatpush1.bf16.msra.mxu0 %v6872_v10 }
 0x3b9   :  { %4946 = vmatpush1.bf16.msra.mxu1 %v6875_v11  ;;  %4689 = vmatprep.subr.bf16.mxu0 %v6880_v55 }
 0x3ba   :  { %4947 = vmatprep.subr.bf16.mxu1 %v6883_v25 }
 0x3bc   :  { %4690 = vmatpush1.bf16.msra.mxu0 %v6878_v27 }
 0x3bd   :  { %4948 = vmatpush1.bf16.msra.mxu1 %v6881_v26 }
 0x3bf   :  { %4692 = vmatmul.mubr.bf16.vlgmr.msra.gmra.mrb[4].mxu0 %v8125_v33 }
 0x3c0   :  { %4950 = vmatmul.mubr.bf16.vlgmr.msra.gmra.mrb[4].mxu1 %v8125_v33 }
 0x492   :  { %v9035_v20 = vpop.f32.mrb[4].mxu0 }
 0x493   :  { %v9037_v29 = vpop.f32.mrb[4].mxu1  ;;  %4960 = vadd.xlane.f32.xlu0 %v9035_v20  ;;  %v9040_v22 = vpop.f32.mrb[5].mxu0  ;;  %v4976_v33 = vmul.f32 %v9035_v20, %v9035_v20 }
 0x494   :  { %v9042_v32 = vpop.f32.mrb[5].mxu1  ;;  %v9044_v34 = vpop.f32.mrb[6].mxu0  ;;  %v5072_v42 = vmul.f32 %v9037_v29, %v9037_v29  ;;  %v5024_v57 = vmul.f32 %v9040_v22, %v9040_v22 }
 0x495   :  { %v9046_v9 = vpop.f32.mrb[6].mxu1  ;;  %4962 = vadd.xlane.f32.xlu1 %v9044_v34  ;;  %v9049_v24 = vpop.f32.mrb[7].mxu0  ;;  %v4977_v30 = vmul.f32 %v9044_v34, %v9044_v34  ;;  %v5120_v43 = vmul.f32 %v9042_v32, %v9042_v32 }
 0x496   :  { %v9051_v59 = vpop.f32.mrb[7].mxu1  ;;  %v5073_v49 = vmul.f32 %v9046_v9, %v9046_v9  ;;  %v5025_v41 = vmul.f32 %v9049_v24, %v9049_v24 }
 0x497   :  { %5056 = vadd.xlane.f32.xlu0 %v9037_v29  ;;  %v5121_v31 = vmul.f32 %v9051_v59, %v9051_v59 }
 0x499   :  { %5058 = vadd.xlane.f32.xlu1 %v9046_v9 }
 0x49b   :  { %5008 = vadd.xlane.f32.xlu0 %v9040_v22 }
 0x49d   :  { %5010 = vadd.xlane.f32.xlu1 %v9049_v24 }
 0x49f   :  { %5104 = vadd.xlane.f32.xlu0 %v9042_v32 }
 0x4a1   :  { %5106 = vadd.xlane.f32.xlu1 %v9051_v59 }
 0x4a3   :  { %4978 = vadd.xlane.f32.xlu0 %v4976_v33 }
 0x4a5   :  { %4980 = vadd.xlane.f32.xlu1 %v4977_v30 }
 0x4a7   :  { %5074 = vadd.xlane.f32.xlu0 %v5072_v42 }
 0x4a9   :  { %5076 = vadd.xlane.f32.xlu1 %v5073_v49 }
 0x4ab   :  { %5026 = vadd.xlane.f32.xlu0 %v5024_v57 }
 0x4ad   :  { %5028 = vadd.xlane.f32.xlu1 %v5025_v41 }
 0x4af   :  { %5122 = vadd.xlane.f32.xlu0 %v5120_v43 }
 0x4b1   :  { %5124 = vadd.xlane.f32.xlu1 %v5121_v31 }
 0x520   :  { %v4961_v56 = vpop.xlane.xlu0 %4960 }
 0x521   :  { %v4964_v60 = vrot.slane %v4961_v56, 4 }
 0x522   :  { %v4963_v44 = vpop.xlane.xlu1 %4962 }
 0x523   :  { %v4965_v1 = vadd.f32 %v4964_v60, %v4961_v56  ;;  %v4970_v36 = vrot.slane %v4963_v44, 4 }
 0x524   :  { %v5057_v45 = vpop.xlane.xlu0 %5056 }
 0x525   :  { %v4966_v17 = vrot.slane %v4965_v1, 2  ;;  %v4971_v50 = vadd.f32 %v4970_v36, %v4963_v44  ;;  %v5060_v51 = vrot.slane %v5057_v45, 4 }
 0x526   :  { %v5059_v2 = vpop.xlane.xlu1 %5058 }
 0x527   :  { %v4967_v54 = vadd.f32 %v4966_v17, %v4965_v1  ;;  %v4972_v58 = vrot.slane %v4971_v50, 2  ;;  %v5061_v39 = vadd.f32 %v5060_v51, %v5057_v45  ;;  %v5066_v0 = vrot.slane %v5059_v2, 4 }
 0x528   :  { %v5009_v28 = vpop.xlane.xlu0 %5008 }
 0x529   :  { %v4968_v13 = vrot.slane %v4967_v54, 1  ;;  %v4973_v6 = vadd.f32 %v4972_v58, %v4971_v50  ;;  %v5062_v37 = vrot.slane %v5061_v39, 2  ;;  %v5067_v40 = vadd.f32 %v5066_v0, %v5059_v2 }
 0x52a   :  { %v5012_v61 = vrot.slane %v5009_v28, 4  ;;  %v5011_v62 = vpop.xlane.xlu1 %5010 }
 0x52b   :  { %v4974_v19 = vrot.slane %v4973_v6, 1  ;;  %v5063_v46 = vadd.f32 %v5062_v37, %v5061_v39  ;;  %v5068_v63 = vrot.slane %v5067_v40, 2  ;;  %v5018_v15 = vrot.slane %v5011_v62, 4 }
 0x52c   :  { %v5013_v3 = vadd.f32 %v5012_v61, %v5009_v28  ;;  %v5105_v16 = vpop.xlane.xlu0 %5104  ;;  %v4969_v8 = vadd.f32 %v4968_v13, %v4967_v54 }
 0x52d   :  { %v5064_v4 = vrot.slane %v5063_v46, 1  ;;  %v5069_v10 = vadd.f32 %v5068_v63, %v5067_v40  ;;  %v5019_v55 = vadd.f32 %v5018_v15, %v5011_v62  ;;  %v5108_v25 = vrot.slane %v5105_v16, 4 }
 0x52e   :  { %v5014_v11 = vrot.slane %v5013_v3, 2  ;;  %v5107_v27 = vpop.xlane.xlu1 %5106  ;;  %v4975_v26 = vadd.f32 %v4974_v19, %v4973_v6  ;;  %v9075_v31 = vmul.f32 0.0009765625, %v4969_v8 }
 0x52f   :  { %v5065_v33 = vadd.f32 %v5064_v4, %v5063_v46  ;;  %v5070_v30 = vrot.slane %v5069_v10, 1  ;;  %v5020_v49 = vrot.slane %v5019_v55, 2  ;;  %v5109_v57 = vadd.f32 %v5108_v25, %v5105_v16 }
 0x530   :  { %v5015_v42 = vadd.f32 %v5014_v11, %v5013_v3  ;;  %v5114_v41 = vrot.slane %v5107_v27, 4  ;;  %v4979_v43 = vpop.xlane.xlu0 %4978  ;;  %v9077_v51 = vmul.f32 0.0009765625, %v4975_v26  ;;  %v4998_v6 = vmul.f32 %v9075_v31, %v9075_v31 }
 0x531   :  { %v4982_v56 = vrot.slane %v4979_v43, 4  ;;  %v5071_v60 = vadd.f32 %v5070_v30, %v5069_v10  ;;  %v5021_v1 = vadd.f32 %v5020_v49, %v5019_v55  ;;  %v9079_v2 = vmul.f32 0.0009765625, %v5065_v33 }
 0x532   :  { %v5016_v44 = vrot.slane %v5015_v42, 1  ;;  %v5115_v36 = vadd.f32 %v5114_v41, %v5107_v27  ;;  %v4981_v45 = vpop.xlane.xlu1 %4980  ;;  %v5110_v58 = vrot.slane %v5109_v57, 2  ;;  %v4999_v15 = vmul.f32 %v9077_v51, %v9077_v51 }
 0x533   :  { %v4983_v17 = vadd.f32 %v4982_v56, %v4979_v43  ;;  %v4988_v50 = vrot.slane %v4981_v45, 4  ;;  %v5022_v54 = vrot.slane %v5021_v1, 1  ;;  %v9083_v37 = vmul.f32 0.0009765625, %v5071_v60 }
 0x534   :  { %v5075_v39 = vpop.xlane.xlu0 %5074  ;;  %v5017_v40 = vadd.f32 %v5016_v44, %v5015_v42  ;;  %v5116_v61 = vrot.slane %v5115_v36, 2  ;;  %v9089_v16 = vmul.f32 %v9079_v2, %v9079_v2  ;;  %v5111_v4 = vadd.f32 %v5110_v58, %v5109_v57 }
 0x535   :  { %v4984_v0 = vrot.slane %v4983_v17, 2  ;;  %v4989_v28 = vadd.f32 %v4988_v50, %v4981_v45  ;;  %v5078_v13 = vrot.slane %v5075_v39, 4  ;;  %v5023_v8 = vadd.f32 %v5022_v54, %v5021_v1 }
 0x536   :  { %v5077_v62 = vpop.xlane.xlu1 %5076  ;;  %v9093_v26 = vmul.f32 %v9083_v37, %v9083_v37  ;;  %v9095_v33 = vmul.f32 0.0009765625, %v5017_v40  ;;  %v5117_v30 = vadd.f32 %v5116_v61, %v5115_v36  ;;  %v5112_v57 = vrot.slane %v5111_v4, 1 }
 0x537   :  { %v4985_v19 = vadd.f32 %v4984_v0, %v4983_v17  ;;  %v4990_v46 = vrot.slane %v4989_v28, 2  ;;  %v5079_v63 = vadd.f32 %v5078_v13, %v5075_v39  ;;  %v5084_v3 = vrot.slane %v5077_v62, 4 }
 0x538   :  { %v5027_v10 = vpop.xlane.xlu0 %5026  ;;  %v9097_v44 = vmul.f32 0.0009765625, %v5023_v8  ;;  %v5118_v0 = vrot.slane %v5117_v30, 1 }
 0x539   :  { %v4986_v11 = vrot.slane %v4985_v19, 1  ;;  %v4991_v55 = vadd.f32 %v4990_v46, %v4989_v28  ;;  %v5080_v25 = vrot.slane %v5079_v63, 2  ;;  %v5085_v27 = vadd.f32 %v5084_v3, %v5077_v62 }
 0x53a   :  { %v5030_v42 = vrot.slane %v5027_v10, 4  ;;  %v5029_v49 = vpop.xlane.xlu1 %5028  ;;  %v5119_v47 = vadd.f32 %v5118_v0, %v5117_v30 }
 0x53b   :  { %v4987_v41 = vadd.f32 %v4986_v11, %v4985_v19  ;;  %v4992_v43 = vrot.slane %v4991_v55, 1  ;;  %v5081_v56 = vadd.f32 %v5080_v25, %v5079_v63  ;;  %v5086_v60 = vrot.slane %v5085_v27, 2 }
 0x53c   :  { %v5031_v1 = vadd.f32 %v5030_v42, %v5027_v10  ;;  %v5036_v45 = vrot.slane %v5029_v49, 4  ;;  %v5123_v17 = vpop.xlane.xlu0 %5122  ;;  %v5113_v10 = vadd.f32 %v5112_v57, %v5111_v4  ;;  %v9107_v0 = vmul.f32 0.0009765625, %v5119_v47 }
 0x53d   :  { %v4996_v50 = vmul.f32 0.0009765625, %v4987_v41  ;;  %v4993_v54 = vadd.f32 %v4992_v43, %v4991_v55  ;;  %v5082_v58 = vrot.slane %v5081_v56, 1  ;;  %v5087_v39 = vadd.f32 %v5086_v60, %v5085_v27 }
 0x53e   :  { %v5032_v28 = vrot.slane %v5031_v1, 2  ;;  %v5037_v13 = vadd.f32 %v5036_v45, %v5029_v49  ;;  %v5126_v36 = vrot.slane %v5123_v17, 4  ;;  %v5125_v40 = vpop.xlane.xlu1 %5124  ;;  %v9102_v4 = vmul.f32 0.0009765625, %v5113_v10 }
 0x53f   :  { %v5000_v61 = vsub.f32 %v4996_v50, %v4998_v6  ;;  %v4997_v62 = vmul.f32 0.0009765625, %v4993_v54  ;;  %v5083_v19 = vadd.f32 %v5082_v58, %v5081_v56  ;;  %v5088_v46 = vrot.slane %v5087_v39, 1 }
 0x540   :  { %v5033_v63 = vadd.f32 %v5032_v28, %v5031_v1  ;;  %v5038_v3 = vrot.slane %v5037_v13, 2  ;;  %v5127_v8 = vadd.f32 %v5126_v36, %v5123_v17  ;;  %v5132_v11 = vrot.slane %v5125_v40, 4 }
 0x541   :  { %v5001_v25 = vsub.f32 %v4997_v62, %v4999_v15  ;;  %v5092_v42 = vmul.f32 0.0009765625, %v5083_v19  ;;  %v5089_v41 = vadd.f32 %v5088_v46, %v5087_v39  ;;  %v5002_v49 = vmax.f32 %v5000_v61, 0.0 }
 0x542   :  { %v5034_v55 = vrot.slane %v5033_v63, 1  ;;  %v5039_v43 = vadd.f32 %v5038_v3, %v5037_v13  ;;  %v5128_v27 = vrot.slane %v5127_v8, 2  ;;  %v5133_v60 = vadd.f32 %v5132_v11, %v5125_v40 }
 0x543   :  { %v5096_v45 = vsub.f32 %v5092_v42, %v9089_v16  ;;  %v5093_v6 = vmul.f32 0.0009765625, %v5089_v41  ;;  %v5046_v17 = vmul.f32 %v9095_v33, %v9095_v33  ;;  %v5003_v15 = vmax.f32 %v5001_v25, 0.0 }
 0x544   :  { %v5035_v50 = vadd.f32 %v5034_v55, %v5033_v63  ;;  %v5040_v56 = vrot.slane %v5039_v43, 1  ;;  %v5129_v54 = vadd.f32 %v5128_v27, %v5127_v8  ;;  %v5134_v1 = vrot.slane %v5133_v60, 2 }
 0x545   :  { %v5097_v57 = vsub.f32 %v5093_v6, %v9093_v26  ;;  %v5047_v16 = vmul.f32 %v9097_v44, %v9097_v44  ;;  %v5004_v13 = vadd.f32 1e-05, %v5002_v49  ;;  %v5098_v36 = vmax.f32 %v5096_v45, 0.0 }
 0x546   :  { %v5044_v58 = vmul.f32 0.0009765625, %v5035_v50  ;;  %v5041_v39 = vadd.f32 %v5040_v56, %v5039_v43  ;;  %v5130_v28 = vrot.slane %v5129_v54, 1  ;;  %v5135_v30 = vadd.f32 %v5134_v1, %v5133_v60  ;;  %v5152_v56 = vld [vmem:[%s9198_s5] sm:$0xf] }
 0x547   :  { %v5142_v46 = vmul.f32 %v9102_v4, %v9102_v4  ;;  %v5005_v63 = vadd.f32 1e-05, %v5003_v15  ;;  %v5099_v26 = vmax.f32 %v5097_v57, 0.0  ;;  %v5143_v25 = vmul.f32 %v9107_v0, %v9107_v0 }
 0x548   :  { %v5048_v40 = vsub.f32 %v5044_v58, %v5046_v17  ;;  %v5045_v61 = vmul.f32 0.0009765625, %v5041_v39  ;;  %v5131_v62 = vadd.f32 %v5130_v28, %v5129_v54  ;;  %v5136_v19 = vrot.slane %v5135_v30, 1 }
 0x549   :  { %6900 = vrsqrt.f32 %v5004_v13  ;;  %v5100_v47 = vadd.f32 1e-05, %v5098_v36  ;;  %v5101_v27 = vadd.f32 1e-05, %v5099_v26  ;;  %v5162_v17 = vrot.slane %v5152_v56, %v7885_v53 }
 0x54a   :  { %v5050_v3 = vmax.f32 %v5048_v40, 0.0  ;;  %v5049_v8 = vsub.f32 %v5045_v61, %v5047_v16  ;;  %v5140_v11 = vmul.f32 0.0009765625, %v5131_v62  ;;  %v5137_v10 = vadd.f32 %v5136_v19, %v5135_v30 }
 0x54b   :  { %6902 = vrsqrt.f32 %v5005_v63  ;;  %v5158_v15 = vrot.slane %v5152_v56, %v7881_v48  ;;  %v5166_v39 = vrot.slane %v5152_v56, %v7875_v38  ;;  %v5170_v36 = vrot.slane %v5152_v56, %v7890_v35 }
 0x54c   :  { %v5052_v42 = vadd.f32 1e-05, %v5050_v3  ;;  %v5051_v41 = vmax.f32 %v5049_v8, 0.0  ;;  %v5144_v55 = vsub.f32 %v5140_v11, %v5142_v46  ;;  %v5141_v43 = vmul.f32 0.0009765625, %v5137_v10 }
 0x54e   :  { %6904 = vrsqrt.f32 %v5052_v42  ;;  %v5053_v60 = vadd.f32 1e-05, %v5051_v41  ;;  %v5146_v49 = vmax.f32 %v5144_v55, 0.0  ;;  %v5145_v45 = vsub.f32 %v5141_v43, %v5143_v25 }
 0x54f   :  { %6906 = vrsqrt.f32 %v5100_v47 }
 0x550   :  { %6908 = vrsqrt.f32 %v5053_v60  ;;  %v5148_v6 = vadd.f32 1e-05, %v5146_v49  ;;  %v5147_v50 = vmax.f32 %v5145_v45, 0.0 }
 0x551   :  { %6910 = vrsqrt.f32 %v5101_v27 }
 0x552   :  { %6912 = vrsqrt.f32 %v5148_v6  ;;  %v5149_v54 = vadd.f32 1e-05, %v5147_v50 }
 0x553   :  { %v6901_v1 = vpop.eup %6900 }
 0x554   :  { %6914 = vrsqrt.f32 %v5149_v54  ;;  %v5175_v13 = vmul.f32 %v6901_v1, %v5158_v15 }
 0x555   :  { %v6903_v57 = vpop.eup %6902 }
 0x556   :  { %v5179_v61 = vmul.f32 %v6903_v57, %v5158_v15  ;;  %v5183_v26 = vmul.f32 %v5175_v13, %v9075_v31  ;;  %v5254_v45 = vrot.slane %v5175_v13, %v7881_v48 }
 0x558   :  { %v6905_v58 = vpop.eup %6904  ;;  %v5187_v25 = vmul.f32 %v5179_v61, %v9077_v51 }
 0x559   :  { %v6907_v28 = vpop.eup %6906  ;;  %v5176_v30 = vmul.f32 %v6905_v58, %v5162_v17  ;;  %v5283_v58 = vmul.f32 %v5254_v45, %v9035_v20 }
 0x55a   :  { %v6909_v16 = vpop.eup %6908  ;;  %v5177_v46 = vmul.f32 %v6907_v28, %v5166_v39 }
 0x55b   :  { %v6911_v40 = vpop.eup %6910  ;;  %v5180_v62 = vmul.f32 %v6909_v16, %v5162_v17  ;;  %v5184_v63 = vmul.f32 %v5176_v30, %v9095_v33  ;;  %v5258_v50 = vrot.slane %v5176_v30, %v7881_v48 }
 0x55c   :  { %v6913_v19 = vpop.eup %6912  ;;  %v5181_v3 = vmul.f32 %v6911_v40, %v5166_v39  ;;  %v5185_v47 = vmul.f32 %v5177_v46, %v9079_v2 }
 0x55d   :  { %v5188_v8 = vmul.f32 %v5180_v62, %v9097_v44  ;;  %v5178_v11 = vmul.f32 %v6913_v19, %v5170_v36  ;;  %v5199_v42 = vcombine.low %v5183_v26, %v5184_v63  ;;  %v5274_v15 = vrot.slane %v5180_v62, %v7881_v48 }
 0x55e   :  { %v6915_v10 = vpop.eup %6914  ;;  %v5189_v43 = vmul.f32 %v5181_v3, %v9083_v37  ;;  %v5262_v37 = vrot.slane %v5177_v46, %v7881_v48  ;;  %v5278_v17 = vrot.slane %v5181_v3, %v7881_v48  ;;  %v5284_v13 = vmul.f32 %v5258_v50, %v9040_v22 }
 0x55f   :  { %v5186_v41 = vmul.f32 %v5178_v11, %v9102_v4  ;;  %v5182_v55 = vmul.f32 %v6915_v10, %v5170_v36  ;;  %v5223_v27 = vcombine.low %v5187_v25, %v5188_v8  ;;  %v5207_v31 = vrot.slane %v5199_v42, %v7903_v5 }
 0x560   :  { %v5270_v4 = vrot.slane %v5179_v61, %v7881_v48  ;;  %v5266_v56 = vrot.slane %v5178_v11, %v7881_v48  ;;  %v5285_v16 = vmul.f32 %v5262_v37, %v9037_v29  ;;  %v5289_v20 = vmul.f32 %v5278_v17, %v9046_v9 }
 0x561   :  { %v5200_v60 = vcombine.low %v5185_v47, %v5186_v41  ;;  %v5190_v33 = vmul.f32 %v5182_v55, %v9107_v0  ;;  %v5231_v51 = vrot.slane %v5223_v27, %v7903_v5  ;;  %v5153_v0 = vld [vmem:[%s9199_s6] sm:$0xf]  ;;  %v5282_v57 = vrot.slane %v5182_v55, %v7881_v48 }
 0x562   :  { %v5287_v30 = vmul.f32 %v5270_v4, %v9044_v34  ;;  %v5286_v36 = vmul.f32 %v5266_v56, %v9042_v32  ;;  %v9207_v27 = vld [vmem:[#allocation2_spill] sm:$0xff] }
 0x563   :  { %v5214_v44 = vrot.slane %v5200_v60, %v7903_v5  ;;  %v5224_v49 = vcombine.low %v5189_v43, %v5190_v33  ;;  %v5290_v34 = vmul.f32 %v5282_v57, %v9051_v59 }
 0x565   :  { %v5215_v2 = vcombine.low %v5207_v31, %v5214_v44  ;;  %v5238_v6 = vrot.slane %v5224_v49, %v7903_v5 }
 0x567   :  { %v5222_v54 = vrot.slane %v5215_v2, %v7903_v5  ;;  %v5239_v1 = vcombine.low %v5231_v51, %v5238_v6 }
 0x569   :  { %v5249_v39 = vsub.f32 %v5153_v0, %v5222_v54  ;;  %v5246_v28 = vrot.slane %v5239_v1, %v7903_v5  ;;  %v5288_v5 = vmul.f32 %v5274_v15, %v9049_v24 }
 0x56b   :  { %v5296_v40 = vrot.slane %v5249_v39, %v7881_v48  ;;  %v5300_v61 = vrot.slane %v5249_v39, %v7885_v53  ;;  %v5304_v62 = vrot.slane %v5249_v39, %v7875_v38  ;;  %v5308_v19 = vrot.slane %v5249_v39, %v7890_v35 }
 0x56c   :  { %v5250_v46 = vsub.f32 %v5153_v0, %v5246_v28 }
 0x56d   :  { %v5333_v29 = vadd.f32 %v5296_v40, %v5283_v58  ;;  %v5334_v63 = vadd.f32 %v5300_v61, %v5284_v13  ;;  %v5335_v22 = vadd.f32 %v5304_v62, %v5285_v16  ;;  %v5336_v26 = vadd.f32 %v5308_v19, %v5286_v36 }
 0x56e   :  { %v5312_v32 = vrot.slane %v5250_v46, %v7881_v48  ;;  %v5316_v3 = vrot.slane %v5250_v46, %v7885_v53  ;;  %v5320_v8 = vrot.slane %v5250_v46, %v7875_v38  ;;  %v5324_v11 = vrot.slane %v5250_v46, %v7890_v35 }
 0x56f   :  { %v5341_v10 = vadd.f32 %v5333_v29, %v7939_v7  ;;  %v5342_v9 = vadd.f32 %v5334_v63, %v7937_v52  ;;  %v5343_v24 = vadd.f32 %v5335_v22, %v7943_v14  ;;  %v5344_v59 = vadd.f32 %v5336_v26, %v7941_v12 }
 0x570   :  { %v5337_v25 = vadd.f32 %v5312_v32, %v5287_v30  ;;  %v5338_v47 = vadd.f32 %v5316_v3, %v5288_v5  ;;  %v5339_v42 = vadd.f32 %v5320_v8, %v5289_v20  ;;  %v5340_v41 = vadd.f32 %v5324_v11, %v5290_v34 }
 0x571   :  { %v5349_v55 = vmax.f32 %v5341_v10, 0.0  ;;  %v5350_v48 = vmax.f32 %v5342_v9, 0.0  ;;  %v5351_v43 = vmax.f32 %v5343_v24, 0.0  ;;  %v5352_v53 = vmax.f32 %v5344_v59, 0.0 }
 0x572   :  { %v5345_v38 = vadd.f32 %v5337_v25, %v7947_v21  ;;  %v5346_v35 = vadd.f32 %v5338_v47, %v7945_v18  ;;  %v5347_v7 = vadd.f32 %v5339_v42, %v7951_v23  ;;  %v5348_v52 = vadd.f32 %v5340_v41, %v9207_v27 }
 0x573   :  { %5357 = vst [vmem:[%s9200_s7] sm:$0xff] %v5349_v55  ;;  %5358 = vst [vmem:[%s9200_s7 + $0x8] sm:$0xff] %v5350_v48 }
 0x574   :  { %5359 = vst [vmem:[%s9200_s7 + $0x10] sm:$0xff] %v5351_v43  ;;  %5360 = vst [vmem:[%s9200_s7 + $0x18] sm:$0xff] %v5352_v53  ;;  %v5353_v12 = vmax.f32 %v5345_v38, 0.0  ;;  %v5354_v14 = vmax.f32 %v5346_v35, 0.0  ;;  %v5355_v18 = vmax.f32 %v5347_v7, 0.0  ;;  %v5356_v21 = vmax.f32 %v5348_v52, 0.0 }
 0x576   :  { %5361 = vst [vmem:[%s9200_s7 + $0x20] sm:$0xff] %v5353_v12  ;;  %5362 = vst [vmem:[%s9200_s7 + $0x28] sm:$0xff] %v5354_v14 }
 0x577   :  { %5363 = vst [vmem:[%s9200_s7 + $0x30] sm:$0xff] %v5355_v18  ;;  %5364 = vst [vmem:[%s9200_s7 + $0x38] sm:$0xff] %v5356_v21 }

</bundles_post_ra>
